<compile_context>
chip_gen: v6e
topology: v6e:2x2x1
jax: 0.10.0
libtpu: 0.0.40
codegen_flags: <defaults>
</compile_context>

<pallas_src>
import functools

import jax
import jax.numpy as jnp
from jax import lax
from jax.experimental import pallas as pl
from jax.experimental.pallas import tpu as pltpu


# ----------------------------- Pallas kernel --------------------------------
def _rnn_kernel(xproj_ref,    # (S*B, H)  embedded tokens already projected by W_ih1 (+b1), f32
                whh1_ref,     # (H, H)    layer-1 recurrent weight (transposed), bf16
                wih2_ref,     # (H, H)    layer-2 input weight (transposed), bf16
                whh2_ref,     # (H, H)    layer-2 recurrent weight (transposed), bf16
                b2_ref,       # (1, H)    fused layer-2 bias (b_ih2 + b_hh2), f32
                wfc1_ref,     # (H, F)    head Linear(H,256) weight with BN scale folded in, bf16
                bhead_ref,    # (1, F)    folded head bias (bfc1*scale + beta - mean*scale), f32
                wfc2_ref,     # (F, 2)    head Linear(256->2) weight (transposed), bf16
                bfc2_ref,     # (1, 2)    f32
                out_ref,      # (B, 2)    sigmoid probabilities, f32
                *, seq_len, batch):
    S, B = seq_len, batch
    H = whh1_ref.shape[0]

    # Hoisted: single VMEM read + broadcast of the layer-2 bias (the unrolled loop
    # would otherwise emit S separate broadcast_in_dim + loads).
    b2 = jnp.broadcast_to(b2_ref[...], (B, H))

    h0 = jnp.zeros((B, H), jnp.float32)

    # ---- serial recurrence over time; hidden states live in vregs (loop carry),
    # never round-tripped through VMEM.  Matmul LHS/RHS are bf16, accumulation f32.
    def step(t, carry):
        h1, h2 = carry

        # Layer-2 recurrent half: depends only on the PREVIOUS carry, so it is issued
        # first and runs off the critical path / on the other MXU.
        g2 = jnp.dot(h2.astype(jnp.bfloat16), whh2_ref[...],
                     preferred_element_type=jnp.float32) + b2

        # Layer 1: precomputed input projection + recurrent matmul.
        row = pl.multiple_of(t * B, B)                       # sublane-aligned (B multiple of 8)
        x_t = xproj_ref[pl.ds(row, B), :]                    # (B, H) = x@W_ih1^T + b1  (f32)
        h1 = jnp.tanh(x_t + jnp.dot(h1.astype(jnp.bfloat16), whh1_ref[...],
                                    preferred_element_type=jnp.float32))

        # Layer 2: only the h1-dependent half remains on the critical path.
        h2 = jnp.tanh(g2 + jnp.dot(h1.astype(jnp.bfloat16), wih2_ref[...],
                                   preferred_element_type=jnp.float32))
        return h1, h2

    _, h2 = lax.fori_loop(0, S, step, (h0, h0), unroll=True)

    # ---- classification head on rnn_output[-1, :, :] (runs once).
    # BatchNorm1d (eval) is pre-folded into wfc1/bhead; Dropout is identity in eval.
    z = jnp.dot(h2.astype(jnp.bfloat16), wfc1_ref[...],
                preferred_element_type=jnp.float32) + bhead_ref[...]
    z = jnp.maximum(z, 0.0)                                   # ReLU (f32)
    logits = jnp.dot(z.astype(jnp.bfloat16), wfc2_ref[...],
                     preferred_element_type=jnp.float32) + bfc2_ref[...]
    out_ref[...] = jax.nn.sigmoid(logits)


# ------------------------------ wrapper --------------------------------------
@jax.jit
def rnn_forward(text, params):
    """text: (S, B) int32 token ids, time-major. Returns (B, 2) float32."""
    S, B = text.shape
    H = params["whh1"].shape[0]
    F = params["wfc1"].shape[0]  # 256

    # Fold W_ih1 and the fused layer-1 bias into the embedding table, then gather:
    # produces a lane-dense (S*B, 256) input; no sliver matmul inside the kernel.
    b1 = params["bih1"] + params["bhh1"]
    emb_proj_table = params["embedding"] @ params["wih1"].T + b1          # (V, H)
    xproj = jnp.take(emb_proj_table, text, axis=0).reshape(S * B, H)      # (S*B, H) f32
    xproj = xproj.astype(jnp.float32)

    b2 = (params["bih2"] + params["bhh2"]).reshape(1, H).astype(jnp.float32)

    # Fold eval-mode BatchNorm into the first head Linear.
    eps = 1e-5
    bn_scale = params["bn_gamma"] / jnp.sqrt(params["bn_var"] + eps)      # (F,)
    wfc1_bn = params["wfc1"].T * bn_scale[None, :]                        # (H, F)
    bhead = (params["bfc1"] * bn_scale + params["bn_beta"]
             - params["bn_mean"] * bn_scale).reshape(1, F).astype(jnp.float32)

    bf16 = lambda a: a.astype(jnp.bfloat16)
    vmem = pl.BlockSpec(memory_space=pltpu.MemorySpace.VMEM)  # whole array, resident once

    out = pl.pallas_call(
        functools.partial(_rnn_kernel, seq_len=S, batch=B),
        out_shape=jax.ShapeDtypeStruct((B, 2), jnp.float32),
        in_specs=[vmem] * 9,
        out_specs=vmem,
    )(xproj,
      bf16(params["whh1"].T), bf16(params["wih2"].T), bf16(params["whh2"].T),
      b2,
      bf16(wfc1_bn), bhead,
      bf16(params["wfc2"].T), params["bfc2"].reshape(1, 2).astype(jnp.float32))
    return out


# ------------------------- pure-JAX reference (f32) --------------------------
def rnn_reference(text, params):
    emb = jnp.take(params["embedding"], text, axis=0).astype(jnp.float32)
    S, B, E = emb.shape
    H = params["whh1"].shape[0]
    h1 = jnp.zeros((B, H), jnp.float32)
    h2 = jnp.zeros((B, H), jnp.float32)
    for t in range(S):
        h1 = jnp.tanh(emb[t] @ params["wih1"].T + params["bih1"]
                      + h1 @ params["whh1"].T + params["bhh1"])
        h2 = jnp.tanh(h1 @ params["wih2"].T + params["bih2"]
                      + h2 @ params["whh2"].T + params["bhh2"])
    z = h2 @ params["wfc1"].T + params["bfc1"]
    eps = 1e-5
    z = (z - params["bn_mean"]) / jnp.sqrt(params["bn_var"] + eps) * params["bn_gamma"] \
        + params["bn_beta"]
    z = jnp.maximum(z, 0.0)
    return jax.nn.sigmoid(z @ params["wfc2"].T + params["bfc2"])


# ------------------------------ parameter init --------------------------------
def init_params(key, num_embeddings, embedding_dim, hidden_size):
    E, H, F = embedding_dim, hidden_size, 256
    ks = jax.random.split(key, 12)
    u = lambda k, shape, bound: jax.random.uniform(k, shape, jnp.float32, -bound, bound)
    kh = 1.0 / jnp.sqrt(H)
    kf2 = 1.0 / jnp.sqrt(F)
    return {
        "embedding": jax.random.normal(ks[0], (num_embeddings, E), jnp.float32),
        # nn.RNN layer 0
        "wih1": u(ks[1], (H, E), kh), "whh1": u(ks[2], (H, H), kh),
        "bih1": u(ks[3], (H,), kh),   "bhh1": u(ks[4], (H,), kh),
        # nn.RNN layer 1
        "wih2": u(ks[5], (H, H), kh), "whh2": u(ks[6], (H, H), kh),
        "bih2": u(ks[7], (H,), kh),   "bhh2": u(ks[8], (H,), kh),
        # head
        "wfc1": u(ks[9], (F, H), kh),  "bfc1": u(ks[10], (F,), kh),
        "bn_gamma": jnp.ones((F,), jnp.float32), "bn_beta": jnp.zeros((F,), jnp.float32),
        "bn_mean": jnp.zeros((F,), jnp.float32), "bn_var": jnp.ones((F,), jnp.float32),
        "wfc2": u(ks[11], (2, F), kf2),   # shape matches nn.Linear(F, 2).weight
        "bfc2": jnp.zeros((2,), jnp.float32),
    }


if __name__ == "__main__":
    # Small, self-consistent hyper-parameters (scaled down from 500/500/500).
    SEQ_LEN = 8
    BATCH = 8            # full f32 sublane group -> padded sublanes do useful work
    NUM_EMBEDDINGS = 64
    EMBEDDING_DIM = 32
    HIDDEN_SIZE = 256    # must be 256 for the module's head to be shape-consistent

    key = jax.random.PRNGKey(0)
    k_text, k_params = jax.random.split(key)
    text = jax.random.randint(k_text, (SEQ_LEN, BATCH), 0, NUM_EMBEDDINGS, dtype=jnp.int32)
    params = init_params(k_params, NUM_EMBEDDINGS, EMBEDDING_DIM, HIDDEN_SIZE)

    out = jax.block_until_ready(rnn_forward(text, params))
    ref = rnn_reference(text, params)
    assert out.shape == (BATCH, 2), out.shape
    # bf16 MXU operands through 8 recurrent tanh steps -> looser tolerance vs. f32 ref.
    assert jnp.allclose(out, ref, atol=5e-2, rtol=0.0), (out, ref)
    assert bool(jnp.all(jnp.isfinite(out)))
    print("KERNEL_OK")
</pallas_src>

<mosaic_0001>
module attributes {stable_mosaic.version = 11 : i64} {
  func.func @_rnn_kernel(%arg0: memref<64x256xf32, #tpu.memory_space<vmem>>, %arg1: memref<256x256xbf16, #tpu.memory_space<vmem>>, %arg2: memref<256x256xbf16, #tpu.memory_space<vmem>>, %arg3: memref<256x256xbf16, #tpu.memory_space<vmem>>, %arg4: memref<1x256xf32, #tpu.memory_space<vmem>>, %arg5: memref<256x256xbf16, #tpu.memory_space<vmem>>, %arg6: memref<1x256xf32, #tpu.memory_space<vmem>>, %arg7: memref<256x2xbf16, #tpu.memory_space<vmem>>, %arg8: memref<1x2xf32, #tpu.memory_space<vmem>>, %arg9: memref<8x2xf32, #tpu.memory_space<vmem>>) attributes {dimension_semantics = [], scalar_prefetch = 0 : i64, scratch_operands = 0 : i64, tpu.core_type = #tpu.core_type<tc>} {
    %c0 = arith.constant 0 : index
    %c0_0 = arith.constant 0 : index
    %0 = vector.load %arg4[%c0, %c0_0] : memref<1x256xf32, #tpu.memory_space<vmem>>, vector<1x256xf32>
    %1 = vector.shape_cast %0 : vector<1x256xf32> to vector<1x256xf32>
    %2 = vector.broadcast %1 : vector<1x256xf32> to vector<8x256xf32>
    %cst = arith.constant 0.000000e+00 : f32
    %3 = vector.broadcast %cst : f32 to vector<8x256xf32>
    %c0_i32 = arith.constant 0 : i32
    %4 = arith.truncf %3 : vector<8x256xf32> to vector<8x256xbf16>
    %c0_1 = arith.constant 0 : index
    %c0_2 = arith.constant 0 : index
    %5 = vector.load %arg3[%c0_1, %c0_2] : memref<256x256xbf16, #tpu.memory_space<vmem>>, vector<256x256xbf16>
    %cst_3 = arith.constant dense<0.000000e+00> : vector<8x256xf32>
    %6 = tpu.matmul %4, %5, %cst_3 {dimension_numbers = #tpu.dot_dimension_numbers<[1], [0], [0], [1], [0, 0, 1, 1], [], []>} : vector<8x256xbf16>, vector<256x256xbf16>, vector<8x256xf32> -> vector<8x256xf32>
    %7 = arith.addf %6, %2 : vector<8x256xf32>
    %c8_i32 = arith.constant 8 : i32
    %8 = arith.muli %c0_i32, %c8_i32 : i32
    %9 = tpu.assume_multiple %8, 8 : i32
    %10 = arith.index_cast %9 : i32 to index
    %c0_4 = arith.constant 0 : index
    %11 = vector.load %arg0[%10, %c0_4] : memref<64x256xf32, #tpu.memory_space<vmem>>, vector<8x256xf32>
    %12 = arith.truncf %3 : vector<8x256xf32> to vector<8x256xbf16>
    %c0_5 = arith.constant 0 : index
    %c0_6 = arith.constant 0 : index
    %13 = vector.load %arg1[%c0_5, %c0_6] : memref<256x256xbf16, #tpu.memory_space<vmem>>, vector<256x256xbf16>
    %cst_7 = arith.constant dense<0.000000e+00> : vector<8x256xf32>
    %14 = tpu.matmul %12, %13, %cst_7 {dimension_numbers = #tpu.dot_dimension_numbers<[1], [0], [0], [1], [0, 0, 1, 1], [], []>} : vector<8x256xbf16>, vector<256x256xbf16>, vector<8x256xf32> -> vector<8x256xf32>
    %15 = arith.addf %11, %14 : vector<8x256xf32>
    %16 = math.tanh %15 : vector<8x256xf32>
    %17 = arith.truncf %16 : vector<8x256xf32> to vector<8x256xbf16>
    %c0_8 = arith.constant 0 : index
    %c0_9 = arith.constant 0 : index
    %18 = vector.load %arg2[%c0_8, %c0_9] : memref<256x256xbf16, #tpu.memory_space<vmem>>, vector<256x256xbf16>
    %cst_10 = arith.constant dense<0.000000e+00> : vector<8x256xf32>
    %19 = tpu.matmul %17, %18, %cst_10 {dimension_numbers = #tpu.dot_dimension_numbers<[1], [0], [0], [1], [0, 0, 1, 1], [], []>} : vector<8x256xbf16>, vector<256x256xbf16>, vector<8x256xf32> -> vector<8x256xf32>
    %20 = arith.addf %7, %19 : vector<8x256xf32>
    %21 = math.tanh %20 : vector<8x256xf32>
    %c1_i32 = arith.constant 1 : i32
    %22 = arith.truncf %21 : vector<8x256xf32> to vector<8x256xbf16>
    %c0_11 = arith.constant 0 : index
    %c0_12 = arith.constant 0 : index
    %23 = vector.load %arg3[%c0_11, %c0_12] : memref<256x256xbf16, #tpu.memory_space<vmem>>, vector<256x256xbf16>
    %cst_13 = arith.constant dense<0.000000e+00> : vector<8x256xf32>
    %24 = tpu.matmul %22, %23, %cst_13 {dimension_numbers = #tpu.dot_dimension_numbers<[1], [0], [0], [1], [0, 0, 1, 1], [], []>} : vector<8x256xbf16>, vector<256x256xbf16>, vector<8x256xf32> -> vector<8x256xf32>
    %25 = arith.addf %24, %2 : vector<8x256xf32>
    %c8_i32_14 = arith.constant 8 : i32
    %26 = arith.muli %c1_i32, %c8_i32_14 : i32
    %27 = tpu.assume_multiple %26, 8 : i32
    %28 = arith.index_cast %27 : i32 to index
    %c0_15 = arith.constant 0 : index
    %29 = vector.load %arg0[%28, %c0_15] : memref<64x256xf32, #tpu.memory_space<vmem>>, vector<8x256xf32>
    %30 = arith.truncf %16 : vector<8x256xf32> to vector<8x256xbf16>
    %c0_16 = arith.constant 0 : index
    %c0_17 = arith.constant 0 : index
    %31 = vector.load %arg1[%c0_16, %c0_17] : memref<256x256xbf16, #tpu.memory_space<vmem>>, vector<256x256xbf16>
    %cst_18 = arith.constant dense<0.000000e+00> : vector<8x256xf32>
    %32 = tpu.matmul %30, %31, %cst_18 {dimension_numbers = #tpu.dot_dimension_numbers<[1], [0], [0], [1], [0, 0, 1, 1], [], []>} : vector<8x256xbf16>, vector<256x256xbf16>, vector<8x256xf32> -> vector<8x256xf32>
    %33 = arith.addf %29, %32 : vector<8x256xf32>
    %34 = math.tanh %33 : vector<8x256xf32>
    %35 = arith.truncf %34 : vector<8x256xf32> to vector<8x256xbf16>
    %c0_19 = arith.constant 0 : index
    %c0_20 = arith.constant 0 : index
    %36 = vector.load %arg2[%c0_19, %c0_20] : memref<256x256xbf16, #tpu.memory_space<vmem>>, vector<256x256xbf16>
    %cst_21 = arith.constant dense<0.000000e+00> : vector<8x256xf32>
    %37 = tpu.matmul %35, %36, %cst_21 {dimension_numbers = #tpu.dot_dimension_numbers<[1], [0], [0], [1], [0, 0, 1, 1], [], []>} : vector<8x256xbf16>, vector<256x256xbf16>, vector<8x256xf32> -> vector<8x256xf32>
    %38 = arith.addf %25, %37 : vector<8x256xf32>
    %39 = math.tanh %38 : vector<8x256xf32>
    %c2_i32 = arith.constant 2 : i32
    %40 = arith.truncf %39 : vector<8x256xf32> to vector<8x256xbf16>
    %c0_22 = arith.constant 0 : index
    %c0_23 = arith.constant 0 : index
    %41 = vector.load %arg3[%c0_22, %c0_23] : memref<256x256xbf16, #tpu.memory_space<vmem>>, vector<256x256xbf16>
    %cst_24 = arith.constant dense<0.000000e+00> : vector<8x256xf32>
    %42 = tpu.matmul %40, %41, %cst_24 {dimension_numbers = #tpu.dot_dimension_numbers<[1], [0], [0], [1], [0, 0, 1, 1], [], []>} : vector<8x256xbf16>, vector<256x256xbf16>, vector<8x256xf32> -> vector<8x256xf32>
    %43 = arith.addf %42, %2 : vector<8x256xf32>
    %c8_i32_25 = arith.constant 8 : i32
    %44 = arith.muli %c2_i32, %c8_i32_25 : i32
    %45 = tpu.assume_multiple %44, 8 : i32
    %46 = arith.index_cast %45 : i32 to index
    %c0_26 = arith.constant 0 : index
    %47 = vector.load %arg0[%46, %c0_26] : memref<64x256xf32, #tpu.memory_space<vmem>>, vector<8x256xf32>
    %48 = arith.truncf %34 : vector<8x256xf32> to vector<8x256xbf16>
    %c0_27 = arith.constant 0 : index
    %c0_28 = arith.constant 0 : index
    %49 = vector.load %arg1[%c0_27, %c0_28] : memref<256x256xbf16, #tpu.memory_space<vmem>>, vector<256x256xbf16>
    %cst_29 = arith.constant dense<0.000000e+00> : vector<8x256xf32>
    %50 = tpu.matmul %48, %49, %cst_29 {dimension_numbers = #tpu.dot_dimension_numbers<[1], [0], [0], [1], [0, 0, 1, 1], [], []>} : vector<8x256xbf16>, vector<256x256xbf16>, vector<8x256xf32> -> vector<8x256xf32>
    %51 = arith.addf %47, %50 : vector<8x256xf32>
    %52 = math.tanh %51 : vector<8x256xf32>
    %53 = arith.truncf %52 : vector<8x256xf32> to vector<8x256xbf16>
    %c0_30 = arith.constant 0 : index
    %c0_31 = arith.constant 0 : index
    %54 = vector.load %arg2[%c0_30, %c0_31] : memref<256x256xbf16, #tpu.memory_space<vmem>>, vector<256x256xbf16>
    %cst_32 = arith.constant dense<0.000000e+00> : vector<8x256xf32>
    %55 = tpu.matmul %53, %54, %cst_32 {dimension_numbers = #tpu.dot_dimension_numbers<[1], [0], [0], [1], [0, 0, 1, 1], [], []>} : vector<8x256xbf16>, vector<256x256xbf16>, vector<8x256xf32> -> vector<8x256xf32>
    %56 = arith.addf %43, %55 : vector<8x256xf32>
    %57 = math.tanh %56 : vector<8x256xf32>
    %c3_i32 = arith.constant 3 : i32
    %58 = arith.truncf %57 : vector<8x256xf32> to vector<8x256xbf16>
    %c0_33 = arith.constant 0 : index
    %c0_34 = arith.constant 0 : index
    %59 = vector.load %arg3[%c0_33, %c0_34] : memref<256x256xbf16, #tpu.memory_space<vmem>>, vector<256x256xbf16>
    %cst_35 = arith.constant dense<0.000000e+00> : vector<8x256xf32>
    %60 = tpu.matmul %58, %59, %cst_35 {dimension_numbers = #tpu.dot_dimension_numbers<[1], [0], [0], [1], [0, 0, 1, 1], [], []>} : vector<8x256xbf16>, vector<256x256xbf16>, vector<8x256xf32> -> vector<8x256xf32>
    %61 = arith.addf %60, %2 : vector<8x256xf32>
    %c8_i32_36 = arith.constant 8 : i32
    %62 = arith.muli %c3_i32, %c8_i32_36 : i32
    %63 = tpu.assume_multiple %62, 8 : i32
    %64 = arith.index_cast %63 : i32 to index
    %c0_37 = arith.constant 0 : index
    %65 = vector.load %arg0[%64, %c0_37] : memref<64x256xf32, #tpu.memory_space<vmem>>, vector<8x256xf32>
    %66 = arith.truncf %52 : vector<8x256xf32> to vector<8x256xbf16>
    %c0_38 = arith.constant 0 : index
    %c0_39 = arith.constant 0 : index
    %67 = vector.load %arg1[%c0_38, %c0_39] : memref<256x256xbf16, #tpu.memory_space<vmem>>, vector<256x256xbf16>
    %cst_40 = arith.constant dense<0.000000e+00> : vector<8x256xf32>
    %68 = tpu.matmul %66, %67, %cst_40 {dimension_numbers = #tpu.dot_dimension_numbers<[1], [0], [0], [1], [0, 0, 1, 1], [], []>} : vector<8x256xbf16>, vector<256x256xbf16>, vector<8x256xf32> -> vector<8x256xf32>
    %69 = arith.addf %65, %68 : vector<8x256xf32>
    %70 = math.tanh %69 : vector<8x256xf32>
    %71 = arith.truncf %70 : vector<8x256xf32> to vector<8x256xbf16>
    %c0_41 = arith.constant 0 : index
    %c0_42 = arith.constant 0 : index
    %72 = vector.load %arg2[%c0_41, %c0_42] : memref<256x256xbf16, #tpu.memory_space<vmem>>, vector<256x256xbf16>
    %cst_43 = arith.constant dense<0.000000e+00> : vector<8x256xf32>
    %73 = tpu.matmul %71, %72, %cst_43 {dimension_numbers = #tpu.dot_dimension_numbers<[1], [0], [0], [1], [0, 0, 1, 1], [], []>} : vector<8x256xbf16>, vector<256x256xbf16>, vector<8x256xf32> -> vector<8x256xf32>
    %74 = arith.addf %61, %73 : vector<8x256xf32>
    %75 = math.tanh %74 : vector<8x256xf32>
    %c4_i32 = arith.constant 4 : i32
    %76 = arith.truncf %75 : vector<8x256xf32> to vector<8x256xbf16>
    %c0_44 = arith.constant 0 : index
    %c0_45 = arith.constant 0 : index
    %77 = vector.load %arg3[%c0_44, %c0_45] : memref<256x256xbf16, #tpu.memory_space<vmem>>, vector<256x256xbf16>
    %cst_46 = arith.constant dense<0.000000e+00> : vector<8x256xf32>
    %78 = tpu.matmul %76, %77, %cst_46 {dimension_numbers = #tpu.dot_dimension_numbers<[1], [0], [0], [1], [0, 0, 1, 1], [], []>} : vector<8x256xbf16>, vector<256x256xbf16>, vector<8x256xf32> -> vector<8x256xf32>
    %79 = arith.addf %78, %2 : vector<8x256xf32>
    %c8_i32_47 = arith.constant 8 : i32
    %80 = arith.muli %c4_i32, %c8_i32_47 : i32
    %81 = tpu.assume_multiple %80, 8 : i32
    %82 = arith.index_cast %81 : i32 to index
    %c0_48 = arith.constant 0 : index
    %83 = vector.load %arg0[%82, %c0_48] : memref<64x256xf32, #tpu.memory_space<vmem>>, vector<8x256xf32>
    %84 = arith.truncf %70 : vector<8x256xf32> to vector<8x256xbf16>
    %c0_49 = arith.constant 0 : index
    %c0_50 = arith.constant 0 : index
    %85 = vector.load %arg1[%c0_49, %c0_50] : memref<256x256xbf16, #tpu.memory_space<vmem>>, vector<256x256xbf16>
    %cst_51 = arith.constant dense<0.000000e+00> : vector<8x256xf32>
    %86 = tpu.matmul %84, %85, %cst_51 {dimension_numbers = #tpu.dot_dimension_numbers<[1], [0], [0], [1], [0, 0, 1, 1], [], []>} : vector<8x256xbf16>, vector<256x256xbf16>, vector<8x256xf32> -> vector<8x256xf32>
    %87 = arith.addf %83, %86 : vector<8x256xf32>
    %88 = math.tanh %87 : vector<8x256xf32>
    %89 = arith.truncf %88 : vector<8x256xf32> to vector<8x256xbf16>
    %c0_52 = arith.constant 0 : index
    %c0_53 = arith.constant 0 : index
    %90 = vector.load %arg2[%c0_52, %c0_53] : memref<256x256xbf16, #tpu.memory_space<vmem>>, vector<256x256xbf16>
    %cst_54 = arith.constant dense<0.000000e+00> : vector<8x256xf32>
    %91 = tpu.matmul %89, %90, %cst_54 {dimension_numbers = #tpu.dot_dimension_numbers<[1], [0], [0], [1], [0, 0, 1, 1], [], []>} : vector<8x256xbf16>, vector<256x256xbf16>, vector<8x256xf32> -> vector<8x256xf32>
    %92 = arith.addf %79, %91 : vector<8x256xf32>
    %93 = math.tanh %92 : vector<8x256xf32>
    %c5_i32 = arith.constant 5 : i32
    %94 = arith.truncf %93 : vector<8x256xf32> to vector<8x256xbf16>
    %c0_55 = arith.constant 0 : index
    %c0_56 = arith.constant 0 : index
    %95 = vector.load %arg3[%c0_55, %c0_56] : memref<256x256xbf16, #tpu.memory_space<vmem>>, vector<256x256xbf16>
    %cst_57 = arith.constant dense<0.000000e+00> : vector<8x256xf32>
    %96 = tpu.matmul %94, %95, %cst_57 {dimension_numbers = #tpu.dot_dimension_numbers<[1], [0], [0], [1], [0, 0, 1, 1], [], []>} : vector<8x256xbf16>, vector<256x256xbf16>, vector<8x256xf32> -> vector<8x256xf32>
    %97 = arith.addf %96, %2 : vector<8x256xf32>
    %c8_i32_58 = arith.constant 8 : i32
    %98 = arith.muli %c5_i32, %c8_i32_58 : i32
    %99 = tpu.assume_multiple %98, 8 : i32
    %100 = arith.index_cast %99 : i32 to index
    %c0_59 = arith.constant 0 : index
    %101 = vector.load %arg0[%100, %c0_59] : memref<64x256xf32, #tpu.memory_space<vmem>>, vector<8x256xf32>
    %102 = arith.truncf %88 : vector<8x256xf32> to vector<8x256xbf16>
    %c0_60 = arith.constant 0 : index
    %c0_61 = arith.constant 0 : index
    %103 = vector.load %arg1[%c0_60, %c0_61] : memref<256x256xbf16, #tpu.memory_space<vmem>>, vector<256x256xbf16>
    %cst_62 = arith.constant dense<0.000000e+00> : vector<8x256xf32>
    %104 = tpu.matmul %102, %103, %cst_62 {dimension_numbers = #tpu.dot_dimension_numbers<[1], [0], [0], [1], [0, 0, 1, 1], [], []>} : vector<8x256xbf16>, vector<256x256xbf16>, vector<8x256xf32> -> vector<8x256xf32>
    %105 = arith.addf %101, %104 : vector<8x256xf32>
    %106 = math.tanh %105 : vector<8x256xf32>
    %107 = arith.truncf %106 : vector<8x256xf32> to vector<8x256xbf16>
    %c0_63 = arith.constant 0 : index
    %c0_64 = arith.constant 0 : index
    %108 = vector.load %arg2[%c0_63, %c0_64] : memref<256x256xbf16, #tpu.memory_space<vmem>>, vector<256x256xbf16>
    %cst_65 = arith.constant dense<0.000000e+00> : vector<8x256xf32>
    %109 = tpu.matmul %107, %108, %cst_65 {dimension_numbers = #tpu.dot_dimension_numbers<[1], [0], [0], [1], [0, 0, 1, 1], [], []>} : vector<8x256xbf16>, vector<256x256xbf16>, vector<8x256xf32> -> vector<8x256xf32>
    %110 = arith.addf %97, %109 : vector<8x256xf32>
    %111 = math.tanh %110 : vector<8x256xf32>
    %c6_i32 = arith.constant 6 : i32
    %112 = arith.truncf %111 : vector<8x256xf32> to vector<8x256xbf16>
    %c0_66 = arith.constant 0 : index
    %c0_67 = arith.constant 0 : index
    %113 = vector.load %arg3[%c0_66, %c0_67] : memref<256x256xbf16, #tpu.memory_space<vmem>>, vector<256x256xbf16>
    %cst_68 = arith.constant dense<0.000000e+00> : vector<8x256xf32>
    %114 = tpu.matmul %112, %113, %cst_68 {dimension_numbers = #tpu.dot_dimension_numbers<[1], [0], [0], [1], [0, 0, 1, 1], [], []>} : vector<8x256xbf16>, vector<256x256xbf16>, vector<8x256xf32> -> vector<8x256xf32>
    %115 = arith.addf %114, %2 : vector<8x256xf32>
    %c8_i32_69 = arith.constant 8 : i32
    %116 = arith.muli %c6_i32, %c8_i32_69 : i32
    %117 = tpu.assume_multiple %116, 8 : i32
    %118 = arith.index_cast %117 : i32 to index
    %c0_70 = arith.constant 0 : index
    %119 = vector.load %arg0[%118, %c0_70] : memref<64x256xf32, #tpu.memory_space<vmem>>, vector<8x256xf32>
    %120 = arith.truncf %106 : vector<8x256xf32> to vector<8x256xbf16>
    %c0_71 = arith.constant 0 : index
    %c0_72 = arith.constant 0 : index
    %121 = vector.load %arg1[%c0_71, %c0_72] : memref<256x256xbf16, #tpu.memory_space<vmem>>, vector<256x256xbf16>
    %cst_73 = arith.constant dense<0.000000e+00> : vector<8x256xf32>
    %122 = tpu.matmul %120, %121, %cst_73 {dimension_numbers = #tpu.dot_dimension_numbers<[1], [0], [0], [1], [0, 0, 1, 1], [], []>} : vector<8x256xbf16>, vector<256x256xbf16>, vector<8x256xf32> -> vector<8x256xf32>
    %123 = arith.addf %119, %122 : vector<8x256xf32>
    %124 = math.tanh %123 : vector<8x256xf32>
    %125 = arith.truncf %124 : vector<8x256xf32> to vector<8x256xbf16>
    %c0_74 = arith.constant 0 : index
    %c0_75 = arith.constant 0 : index
    %126 = vector.load %arg2[%c0_74, %c0_75] : memref<256x256xbf16, #tpu.memory_space<vmem>>, vector<256x256xbf16>
    %cst_76 = arith.constant dense<0.000000e+00> : vector<8x256xf32>
    %127 = tpu.matmul %125, %126, %cst_76 {dimension_numbers = #tpu.dot_dimension_numbers<[1], [0], [0], [1], [0, 0, 1, 1], [], []>} : vector<8x256xbf16>, vector<256x256xbf16>, vector<8x256xf32> -> vector<8x256xf32>
    %128 = arith.addf %115, %127 : vector<8x256xf32>
    %129 = math.tanh %128 : vector<8x256xf32>
    %c7_i32 = arith.constant 7 : i32
    %130 = arith.truncf %129 : vector<8x256xf32> to vector<8x256xbf16>
    %c0_77 = arith.constant 0 : index
    %c0_78 = arith.constant 0 : index
    %131 = vector.load %arg3[%c0_77, %c0_78] : memref<256x256xbf16, #tpu.memory_space<vmem>>, vector<256x256xbf16>
    %cst_79 = arith.constant dense<0.000000e+00> : vector<8x256xf32>
    %132 = tpu.matmul %130, %131, %cst_79 {dimension_numbers = #tpu.dot_dimension_numbers<[1], [0], [0], [1], [0, 0, 1, 1], [], []>} : vector<8x256xbf16>, vector<256x256xbf16>, vector<8x256xf32> -> vector<8x256xf32>
    %133 = arith.addf %132, %2 : vector<8x256xf32>
    %c8_i32_80 = arith.constant 8 : i32
    %134 = arith.muli %c7_i32, %c8_i32_80 : i32
    %135 = tpu.assume_multiple %134, 8 : i32
    %136 = arith.index_cast %135 : i32 to index
    %c0_81 = arith.constant 0 : index
    %137 = vector.load %arg0[%136, %c0_81] : memref<64x256xf32, #tpu.memory_space<vmem>>, vector<8x256xf32>
    %138 = arith.truncf %124 : vector<8x256xf32> to vector<8x256xbf16>
    %c0_82 = arith.constant 0 : index
    %c0_83 = arith.constant 0 : index
    %139 = vector.load %arg1[%c0_82, %c0_83] : memref<256x256xbf16, #tpu.memory_space<vmem>>, vector<256x256xbf16>
    %cst_84 = arith.constant dense<0.000000e+00> : vector<8x256xf32>
    %140 = tpu.matmul %138, %139, %cst_84 {dimension_numbers = #tpu.dot_dimension_numbers<[1], [0], [0], [1], [0, 0, 1, 1], [], []>} : vector<8x256xbf16>, vector<256x256xbf16>, vector<8x256xf32> -> vector<8x256xf32>
    %141 = arith.addf %137, %140 : vector<8x256xf32>
    %142 = math.tanh %141 : vector<8x256xf32>
    %143 = arith.truncf %142 : vector<8x256xf32> to vector<8x256xbf16>
    %c0_85 = arith.constant 0 : index
    %c0_86 = arith.constant 0 : index
    %144 = vector.load %arg2[%c0_85, %c0_86] : memref<256x256xbf16, #tpu.memory_space<vmem>>, vector<256x256xbf16>
    %cst_87 = arith.constant dense<0.000000e+00> : vector<8x256xf32>
    %145 = tpu.matmul %143, %144, %cst_87 {dimension_numbers = #tpu.dot_dimension_numbers<[1], [0], [0], [1], [0, 0, 1, 1], [], []>} : vector<8x256xbf16>, vector<256x256xbf16>, vector<8x256xf32> -> vector<8x256xf32>
    %146 = arith.addf %133, %145 : vector<8x256xf32>
    %147 = math.tanh %146 : vector<8x256xf32>
    %c8_i32_88 = arith.constant 8 : i32
    %148 = arith.truncf %147 : vector<8x256xf32> to vector<8x256xbf16>
    %c0_89 = arith.constant 0 : index
    %c0_90 = arith.constant 0 : index
    %149 = vector.load %arg5[%c0_89, %c0_90] : memref<256x256xbf16, #tpu.memory_space<vmem>>, vector<256x256xbf16>
    %cst_91 = arith.constant dense<0.000000e+00> : vector<8x256xf32>
    %150 = tpu.matmul %148, %149, %cst_91 {dimension_numbers = #tpu.dot_dimension_numbers<[1], [0], [0], [1], [0, 0, 1, 1], [], []>} : vector<8x256xbf16>, vector<256x256xbf16>, vector<8x256xf32> -> vector<8x256xf32>
    %c0_92 = arith.constant 0 : index
    %c0_93 = arith.constant 0 : index
    %151 = vector.load %arg6[%c0_92, %c0_93] : memref<1x256xf32, #tpu.memory_space<vmem>>, vector<1x256xf32>
    %152 = vector.broadcast %151 : vector<1x256xf32> to vector<8x256xf32>
    %153 = arith.addf %150, %152 : vector<8x256xf32>
    %cst_94 = arith.constant 0.000000e+00 : f32
    %154 = vector.broadcast %cst_94 : f32 to vector<8x256xf32>
    %155 = arith.maximumf %153, %154 : vector<8x256xf32>
    %156 = arith.truncf %155 : vector<8x256xf32> to vector<8x256xbf16>
    %c0_95 = arith.constant 0 : index
    %c0_96 = arith.constant 0 : index
    %157 = vector.load %arg7[%c0_95, %c0_96] : memref<256x2xbf16, #tpu.memory_space<vmem>>, vector<256x2xbf16>
    %cst_97 = arith.constant dense<0.000000e+00> : vector<8x2xf32>
    %158 = tpu.matmul %156, %157, %cst_97 {dimension_numbers = #tpu.dot_dimension_numbers<[1], [0], [0], [1], [0, 0, 1, 1], [], []>} : vector<8x256xbf16>, vector<256x2xbf16>, vector<8x2xf32> -> vector<8x2xf32>
    %c0_98 = arith.constant 0 : index
    %c0_99 = arith.constant 0 : index
    %159 = vector.load %arg8[%c0_98, %c0_99] : memref<1x2xf32, #tpu.memory_space<vmem>>, vector<1x2xf32>
    %160 = vector.broadcast %159 : vector<1x2xf32> to vector<8x2xf32>
    %161 = arith.addf %158, %160 : vector<8x2xf32>
    %162 = arith.negf %161 : vector<8x2xf32>
    %163 = math.exp %162 : vector<8x2xf32>
    %cst_100 = arith.constant 1.000000e+00 : f32
    %164 = vector.broadcast %cst_100 : f32 to vector<8x2xf32>
    %165 = arith.addf %164, %163 : vector<8x2xf32>
    %166 = arith.divf %164, %165 : vector<8x2xf32>
    %c0_101 = arith.constant 0 : index
    %c0_102 = arith.constant 0 : index
    %167 = vector.load %arg9[%c0_101, %c0_102] : memref<8x2xf32, #tpu.memory_space<vmem>>, vector<8x2xf32>
    tpu.vector_store %arg9[%c0_101, %c0_102], %166 {strides = array<i32>} : memref<8x2xf32, #tpu.memory_space<vmem>>, vector<8x2xf32>,
    return
  }
}

</mosaic_0001>

<bundles_post_ra>
// kernel: rnn_forward.1
= control target key start
LH: loop header
LB: loop body
LE: loop exit
PB: predicated region body
PF: predicated region fallthrough
CT: control target
= control target key end

     0   :  { %v4843_v1 = vmov 0   ;;  %vm2171_vm0 = vcmask 15360   ;;  %s4833_s1 = inlined_call_operand.vmem [shape: bf16[256,256], index: 1, kind: input, shape index: {}]   ;;  %s4834_s3 = inlined_call_operand.vmem [shape: bf16[256,256], index: 3, kind: input, shape index: {}]   ;;  %s4835_s2 = inlined_call_operand.vmem [shape: bf16[256,256], index: 2, kind: input, shape index: {}]   ;;  %s4836_s0 = inlined_call_operand.vmem [shape: f32[64,256], index: 0, kind: input, shape index: {}]   ;;  %s4837_s4 = inlined_call_operand.vmem [shape: f32[1,256], index: 4, kind: input, shape index: {}]   ;;  %s4838_s5 = inlined_call_operand.vmem [shape: bf16[256,256], index: 5, kind: input, shape index: {}]   ;;  %s4839_s7 = inlined_call_operand.vmem [shape: bf16[256,2], index: 7, kind: input, shape index: {}]   ;;  %s4840_s6 = inlined_call_operand.vmem [shape: f32[1,256], index: 6, kind: input, shape index: {}]   ;;  %s4841_s8 = inlined_call_operand.vmem [shape: f32[1,2], index: 8, kind: input, shape index: {}]   ;;  %s4842_s9 = inlined_call_operand.vmem [shape: f32[8,2], index: 9, kind: output, shape index: {}]  }
   0x1   :  { %v2816_v0 = vld [vmem:[%s4833_s1 + $0x74] ss:$8 sps:$4 sm:$0xff]   ;;  %507 = vmatprep.mubr.bf16.mxu1 %v4843_v1  ;;  %269 = vmatprep.mubr.bf16.mxu0 %v4843_v1  ;;  %v2823_v2 = vld [vmem:[%s4833_s1 + $0x70] ss:$8 sps:$4 sm:$0xff]   ;;  %v2829_v3 = vld [vmem:[%s4833_s1 + $0x64] ss:$8 sps:$4 sm:$0xff]  }
   0x2   :  { %5089 = vst [vmem:[#allocation2_spill] sm:$0xff] %v2816_v0  ;;  %475 = vmatprep.subr.bf16.mxu1 %v2816_v0  ;;  %v2835_v4 = vld [vmem:[%s4833_s1 + $0x60] ss:$8 sps:$4 sm:$0xff]   ;;  %v2841_v5 = vld [vmem:[%s4833_s1 + $0x54] ss:$8 sps:$4 sm:$0xff]  }
   0x3   :  { %476 = vmatpush1.bf16.msra.mxu1 %v2823_v2  ;;  %v2847_v6 = vld [vmem:[%s4833_s1 + $0x50] ss:$8 sps:$4 sm:$0xff]   ;;  %v2853_v7 = vld [vmem:[%s4833_s1 + $0x44] ss:$8 sps:$4 sm:$0xff]   ;;  %v2859_v8 = vld [vmem:[%s4833_s1 + $0x40] ss:$8 sps:$4 sm:$0xff]  }
   0x4   :  { %477 = vmatprep.subr.bf16.mxu1 %v2829_v3  ;;  %v2865_v9 = vld [vmem:[%s4833_s1 + $0x34] ss:$8 sps:$4 sm:$0xff]   ;;  %v2871_v10 = vld [vmem:[%s4833_s1 + $0x30] ss:$8 sps:$4 sm:$0xff]   ;;  %v2877_v11 = vld [vmem:[%s4833_s1 + $0x24] ss:$8 sps:$4 sm:$0xff]  }
   0x5   :  { %v2883_v12 = vld [vmem:[%s4833_s1 + $0x20] ss:$8 sps:$4 sm:$0xff]   ;;  %v2889_v13 = vld [vmem:[%s4833_s1 + $0x14] ss:$8 sps:$4 sm:$0xff]   ;;  %v2899_v15 = vld [vmem:[%s4834_s3 + $0x70] ss:$8 sps:$4 sm:$0xff]  }
   0x6   :  { %v2894_v14 = vld [vmem:[%s4834_s3 + $0x74] ss:$8 sps:$4 sm:$0xff]   ;;  %v2905_v16 = vld [vmem:[%s4833_s1 + $0x10] ss:$8 sps:$4 sm:$0xff]   ;;  %v2910_v17 = vld [vmem:[%s4834_s3 + $0x64] ss:$8 sps:$4 sm:$0xff]  }
   0x7   :  { %478 = vmatpush1.bf16.msra.mxu1 %v2835_v4  ;;  %v2916_v18 = vld [vmem:[%s4833_s1 + $0x4] ss:$8 sps:$4 sm:$0xff]   ;;  %237 = vmatprep.subr.bf16.mxu0 %v2894_v14  ;;  %v2923_v19 = vld [vmem:[%s4834_s3 + $0x60] ss:$8 sps:$4 sm:$0xff]   ;;  %v2929_v20 = vld [vmem:[%s4834_s3 + $0x54] ss:$8 sps:$4 sm:$0xff]  }
   0x8   :  { %479 = vmatprep.subr.bf16.mxu1 %v2841_v5  ;;  %238 = vmatpush1.bf16.msra.mxu0 %v2899_v15  ;;  %v2935_v21 = vld [vmem:[%s4833_s1] ss:$8 sps:$4 sm:$0xff]   ;;  %v2941_v22 = vld [vmem:[%s4833_s1 + $0xf4] ss:$8 sps:$4 sm:$0xff]   ;;  %v2947_v23 = vld [vmem:[%s4834_s3 + $0x50] ss:$8 sps:$4 sm:$0xff]  }
   0x9   :  { %239 = vmatprep.subr.bf16.mxu0 %v2910_v17  ;;  %5090 = vst [vmem:[#allocation3_spill] sm:$0xff] %v2947_v23  ;;  %v2953_v24 = vld [vmem:[%s4834_s3 + $0x44] ss:$8 sps:$4 sm:$0xff]   ;;  %v2959_v25 = vld [vmem:[%s4833_s1 + $0xf0] ss:$8 sps:$4 sm:$0xff]  }
   0xa   :  { %5091 = vst [vmem:[#allocation4_spill] sm:$0xff] %v2953_v24  ;;  %v2965_v26 = vld [vmem:[%s4833_s1 + $0xe4] ss:$8 sps:$4 sm:$0xff]   ;;  %v2971_v27 = vld [vmem:[%s4834_s3 + $0x40] ss:$8 sps:$4 sm:$0xff]  }
   0xb   :  { %480 = vmatpush1.bf16.msra.mxu1 %v2847_v6  ;;  %5092 = vst [vmem:[#allocation5_spill] sm:$0xff] %v2971_v27  ;;  %v2977_v28 = vld [vmem:[%s4834_s3 + $0x34] ss:$8 sps:$4 sm:$0xff]   ;;  %v2983_v29 = vld [vmem:[%s4833_s1 + $0xe0] ss:$8 sps:$4 sm:$0xff]  }
   0xc   :  { %481 = vmatprep.subr.bf16.mxu1 %v2853_v7  ;;  %240 = vmatpush1.bf16.msra.mxu0 %v2923_v19  ;;  %5093 = vst [vmem:[#allocation6_spill] sm:$0xff] %v2977_v28  ;;  %v2989_v30 = vld [vmem:[%s4833_s1 + $0xd4] ss:$8 sps:$4 sm:$0xff]   ;;  %v2995_v31 = vld [vmem:[%s4834_s3 + $0x30] ss:$8 sps:$4 sm:$0xff]  }
   0xd   :  { %241 = vmatprep.subr.bf16.mxu0 %v2929_v20  ;;  %5094 = vst [vmem:[#allocation7_spill] sm:$0xff] %v2995_v31  ;;  %v3001_v32 = vld [vmem:[%s4834_s3 + $0x24] ss:$8 sps:$4 sm:$0xff]   ;;  %v3007_v33 = vld [vmem:[%s4833_s1 + $0xd0] ss:$8 sps:$4 sm:$0xff]  }
   0xe   :  { %5095 = vst [vmem:[#allocation8_spill] sm:$0xff] %v3001_v32  ;;  %v3013_v34 = vld [vmem:[%s4833_s1 + $0xc4] ss:$8 sps:$4 sm:$0xff]   ;;  %v3019_v35 = vld [vmem:[%s4834_s3 + $0x20] ss:$8 sps:$4 sm:$0xff]  }
   0xf   :  { %482 = vmatpush1.bf16.msra.mxu1 %v2859_v8  ;;  %v3025_v36 = vld [vmem:[%s4834_s3 + $0x14] ss:$8 sps:$4 sm:$0xff]   ;;  %v3031_v37 = vld [vmem:[%s4833_s1 + $0xc0] ss:$8 sps:$4 sm:$0xff]   ;;  %v3043_v39 = vld [vmem:[%s4834_s3 + $0x10] ss:$8 sps:$4 sm:$0xff]  }
  0x10   :  { %483 = vmatprep.subr.bf16.mxu1 %v2865_v9  ;;  %242 = vmatpush1.bf16.msra.mxu0 %v2947_v23  ;;  %v3037_v38 = vld [vmem:[%s4833_s1 + $0xb4] ss:$8 sps:$4 sm:$0xff]   ;;  %v3049_v40 = vld [vmem:[%s4834_s3 + $0x4] ss:$8 sps:$4 sm:$0xff]   ;;  %v3055_v41 = vld [vmem:[%s4833_s1 + $0xb0] ss:$8 sps:$4 sm:$0xff]  }
  0x11   :  { %243 = vmatprep.subr.bf16.mxu0 %v2953_v24  ;;  %v3061_v42 = vld [vmem:[%s4833_s1 + $0xa4] ss:$8 sps:$4 sm:$0xff]   ;;  %v3067_v43 = vld [vmem:[%s4834_s3] ss:$8 sps:$4 sm:$0xff]   ;;  %v3073_v44 = vld [vmem:[%s4834_s3 + $0xf4] ss:$8 sps:$4 sm:$0xff]  }
  0x12   :  { %5096 = vst [vmem:[#allocation9_spill] sm:$0xff] %v3067_v43  ;;  %5097 = vst [vmem:[#allocation10_spill] sm:$0xff] %v3073_v44  ;;  %v3079_v45 = vld [vmem:[%s4833_s1 + $0xa0] ss:$8 sps:$4 sm:$0xff]   ;;  %v3085_v46 = vld [vmem:[%s4833_s1 + $0x94] ss:$8 sps:$4 sm:$0xff]  }
  0x13   :  { %484 = vmatpush1.bf16.msra.mxu1 %v2871_v10  ;;  %v3091_v47 = vld [vmem:[%s4834_s3 + $0xf0] ss:$8 sps:$4 sm:$0xff]   ;;  %v3097_v48 = vld [vmem:[%s4834_s3 + $0xe4] ss:$8 sps:$4 sm:$0xff]   ;;  %v3114_v51 = vld [vmem:[%s4833_s1 + $0x80] ss:$8 sps:$4 sm:$0xff]  }
  0x14   :  { %485 = vmatprep.subr.bf16.mxu1 %v2877_v11  ;;  %244 = vmatpush1.bf16.msra.mxu0 %v2971_v27  ;;  %5098 = vst [vmem:[#allocation11_spill] sm:$0xff] %v3091_v47  ;;  %5099 = vst [vmem:[#allocation12_spill] sm:$0xff] %v3097_v48  ;;  %v3103_v49 = vld [vmem:[%s4833_s1 + $0x90] ss:$8 sps:$4 sm:$0xff]   ;;  %v3109_v50 = vld [vmem:[%s4833_s1 + $0x84] ss:$8 sps:$4 sm:$0xff]  }
  0x15   :  { %245 = vmatprep.subr.bf16.mxu0 %v2977_v28  ;;  %v3120_v52 = vld [vmem:[%s4834_s3 + $0xe0] ss:$8 sps:$4 sm:$0xff]   ;;  %v3125_v53 = vld [vmem:[%s4834_s3 + $0xd4] ss:$8 sps:$4 sm:$0xff]   ;;  %v3134_v54 = vld [vmem:[%s4834_s3 + $0xd0] ss:$8 sps:$4 sm:$0xff]  }
  0x16   :  { %5100 = vst [vmem:[#allocation13_spill] sm:$0xff] %v3120_v52  ;;  %5101 = vst [vmem:[#allocation14_spill] sm:$0xff] %v3125_v53  ;;  %v3140_v55 = vld [vmem:[%s4834_s3 + $0xc4] ss:$8 sps:$4 sm:$0xff]   ;;  %v3148_v56 = vld [vmem:[%s4834_s3 + $0xc0] ss:$8 sps:$4 sm:$0xff]  }
  0x17   :  { %486 = vmatpush1.bf16.msra.mxu1 %v2883_v12  ;;  %5102 = vst [vmem:[#allocation15_spill] sm:$0xff] %v3134_v54  ;;  %5103 = vst [vmem:[#allocation16_spill] sm:$0xff] %v3140_v55  ;;  %v3155_v57 = vld [vmem:[%s4834_s3 + $0xb4] ss:$8 sps:$4 sm:$0xff]   ;;  %v3163_v58 = vld [vmem:[%s4834_s3 + $0xb0] ss:$8 sps:$4 sm:$0xff]  }
  0x18   :  { %487 = vmatprep.subr.bf16.mxu1 %v2889_v13  ;;  %246 = vmatpush1.bf16.msra.mxu0 %v2995_v31  ;;  %5104 = vst [vmem:[#allocation17_spill] sm:$0xff] %v3148_v56  ;;  %5105 = vst [vmem:[#allocation18_spill] sm:$0xff] %v3155_v57  ;;  %v3169_v59 = vld [vmem:[%s4834_s3 + $0xa4] ss:$8 sps:$4 sm:$0xff]   ;;  %v3177_v60 = vld [vmem:[%s4834_s3 + $0xa0] ss:$8 sps:$4 sm:$0xff]  }
  0x19   :  { %247 = vmatprep.subr.bf16.mxu0 %v3001_v32  ;;  %5106 = vst [vmem:[#allocation19_spill] sm:$0xff] %v3163_v58  ;;  %5107 = vst [vmem:[#allocation20_spill] sm:$0xff] %v3169_v59  ;;  %v3183_v61 = vld [vmem:[%s4834_s3 + $0x94] ss:$8 sps:$4 sm:$0xff]   ;;  %v3191_v62 = vld [vmem:[%s4834_s3 + $0x90] ss:$8 sps:$4 sm:$0xff]  }
  0x1a   :  { %5108 = vst [vmem:[#allocation21_spill] sm:$0xff] %v3177_v60  ;;  %5109 = vst [vmem:[#allocation22_spill] sm:$0xff] %v3183_v61  ;;  %v3197_v63 = vld [vmem:[%s4834_s3 + $0x84] ss:$8 sps:$4 sm:$0xff]  }
  0x1b   :  { %488 = vmatpush1.bf16.msra.mxu1 %v2905_v16  ;;  %5110 = vst [vmem:[#allocation23_spill] sm:$0xff] %v3191_v62  ;;  %5111 = vst [vmem:[#allocation24_spill] sm:$0xff] %v3197_v63 }
  0x1c   :  { %489 = vmatprep.subr.bf16.mxu1 %v2916_v18  ;;  %248 = vmatpush1.bf16.msra.mxu0 %v3019_v35 }
  0x1d   :  { %249 = vmatprep.subr.bf16.mxu0 %v3025_v36 }
  0x1f   :  { %490 = vmatpush1.bf16.msra.mxu1 %v2935_v21 }
  0x20   :  { %491 = vmatprep.subr.bf16.mxu1 %v2941_v22  ;;  %250 = vmatpush1.bf16.msra.mxu0 %v3043_v39 }
  0x21   :  { %251 = vmatprep.subr.bf16.mxu0 %v3049_v40 }
  0x23   :  { %492 = vmatpush2.bf16.msra.mxu1 %v2959_v25 }
  0x24   :  { %493 = vmatprep.subr.bf16.mxu1 %v2965_v26  ;;  %252 = vmatpush1.bf16.msra.mxu0 %v3067_v43 }
  0x25   :  { %253 = vmatprep.subr.bf16.mxu0 %v3073_v44 }
  0x27   :  { %494 = vmatpush2.bf16.msra.mxu1 %v2983_v29 }
  0x28   :  { %495 = vmatprep.subr.bf16.mxu1 %v2989_v30  ;;  %254 = vmatpush2.bf16.msra.mxu0 %v3091_v47 }
  0x29   :  { %255 = vmatprep.subr.bf16.mxu0 %v3097_v48 }
  0x2b   :  { %496 = vmatpush2.bf16.msra.mxu1 %v3007_v33 }
  0x2c   :  { %497 = vmatprep.subr.bf16.mxu1 %v3013_v34  ;;  %256 = vmatpush2.bf16.msra.mxu0 %v3120_v52 }
  0x2d   :  { %257 = vmatprep.subr.bf16.mxu0 %v3125_v53 }
  0x2f   :  { %498 = vmatpush2.bf16.msra.mxu1 %v3031_v37 }
  0x30   :  { %499 = vmatprep.subr.bf16.mxu1 %v3037_v38  ;;  %258 = vmatpush2.bf16.msra.mxu0 %v3134_v54 }
  0x31   :  { %259 = vmatprep.subr.bf16.mxu0 %v3140_v55 }
  0x33   :  { %500 = vmatpush2.bf16.msra.mxu1 %v3055_v41 }
  0x34   :  { %501 = vmatprep.subr.bf16.mxu1 %v3061_v42  ;;  %260 = vmatpush2.bf16.msra.mxu0 %v3148_v56 }
  0x35   :  { %261 = vmatprep.subr.bf16.mxu0 %v3155_v57 }
  0x37   :  { %502 = vmatpush2.bf16.msra.mxu1 %v3079_v45 }
  0x38   :  { %503 = vmatprep.subr.bf16.mxu1 %v3085_v46  ;;  %262 = vmatpush2.bf16.msra.mxu0 %v3163_v58 }
  0x39   :  { %263 = vmatprep.subr.bf16.mxu0 %v3169_v59 }
  0x3b   :  { %504 = vmatpush2.bf16.msra.mxu1 %v3103_v49 }
  0x3c   :  { %505 = vmatprep.subr.bf16.mxu1 %v3109_v50  ;;  %264 = vmatpush2.bf16.msra.mxu0 %v3177_v60 }
  0x3d   :  { %265 = vmatprep.subr.bf16.mxu0 %v3183_v61 }
  0x3f   :  { %506 = vmatpush2.bf16.msra.mxu1 %v3114_v51 }
  0x40   :  { %761 = vmatprep.subr.bf16.mxu1 %v2894_v14  ;;  %266 = vmatpush2.bf16.msra.mxu0 %v3191_v62 }
  0x41   :  { %267 = vmatprep.subr.bf16.mxu0 %v3197_v63 }
  0x42   :  { %508 = vmatmul.mubr.bf16.vlgmr.msra.gmra.mxu1 %v4843_v1  ;;  %v3205_v1 = vld [vmem:[%s4834_s3 + $0x80] ss:$8 sps:$4 sm:$0xff]  }
  0x43   :  { %762 = vmatpush1.bf16.msra.mxu1 %v2899_v15  ;;  %5112 = vst [vmem:[#allocation25_spill] sm:$0xff] %v3205_v1 }
  0x44   :  { %763 = vmatprep.subr.bf16.mxu1 %v2910_v17  ;;  %268 = vmatpush2.bf16.msra.mxu0 %v3205_v1 }
  0x47   :  { %764 = vmatpush1.bf16.msra.mxu1 %v2923_v19 }
  0x48   :  { %765 = vmatprep.subr.bf16.mxu1 %v2929_v20 }
  0x4b   :  { %766 = vmatpush1.bf16.msra.mxu1 %v2947_v23  ;;  %v5116_v23 = vmov 0  }
  0x4c   :  { %767 = vmatprep.subr.bf16.mxu1 %v2953_v24  ;;  %v3211_v24 = vld [vmem:[%s4835_s2 + $0x74] ss:$8 sps:$4 sm:$0xff]   ;;  %270 = vmatmul.mubr.bf16.vlgmr.msra.gmra.mxu0 %v5116_v23  ;;  %v3248_v23 = vld [vmem:[%s4835_s2 + $0x50] ss:$8 sps:$4 sm:$0xff]  }
  0x4d   :  { %5113 = vst [vmem:[#allocation26_spill] sm:$0xff] %v3211_v24  ;;  %714 = vmatprep.subr.bf16.mxu0 %v3211_v24  ;;  %5119 = vst [vmem:[#allocation31_spill] sm:$0xff] %v3248_v23 }
  0x4f   :  { %768 = vmatpush1.bf16.msra.mxu1 %v2971_v27  ;;  %v3225_v27 = vld [vmem:[%s4835_s2 + $0x64] ss:$8 sps:$4 sm:$0xff]  }
  0x50   :  { %769 = vmatprep.subr.bf16.mxu1 %v2977_v28  ;;  %v3219_v28 = vld [vmem:[%s4835_s2 + $0x70] ss:$8 sps:$4 sm:$0xff]   ;;  %5115 = vst [vmem:[#allocation28_spill] sm:$0xff] %v3225_v27 }
  0x51   :  { %5114 = vst [vmem:[#allocation27_spill] sm:$0xff] %v3219_v28  ;;  %715 = vmatpush1.bf16.msra.mxu0 %v3219_v28  ;;  %v282_v28 = vld [vmem:[%s4836_s0 + $0x8] sm:$0xff] }
  0x52   :  { %716 = vmatprep.subr.bf16.mxu0 %v3225_v27  ;;  %v3254_v27 = vld [vmem:[%s4835_s2 + $0x44] ss:$8 sps:$4 sm:$0xff]  }
  0x53   :  { %770 = vmatpush1.bf16.msra.mxu1 %v2995_v31  ;;  %v3240_v31 = vld [vmem:[%s4835_s2 + $0x54] ss:$8 sps:$4 sm:$0xff]   ;;  %5120 = vst [vmem:[#allocation32_spill] sm:$0xff] %v3254_v27 }
  0x54   :  { %771 = vmatprep.subr.bf16.mxu1 %v3001_v32  ;;  %v3234_v32 = vld [vmem:[%s4835_s2 + $0x60] ss:$8 sps:$4 sm:$0xff]   ;;  %5118 = vst [vmem:[#allocation30_spill] sm:$0xff] %v3240_v31 }
  0x55   :  { %5117 = vst [vmem:[#allocation29_spill] sm:$0xff] %v3234_v32  ;;  %717 = vmatpush1.bf16.msra.mxu0 %v3234_v32  ;;  %v3262_v32 = vld [vmem:[%s4835_s2 + $0x40] ss:$8 sps:$4 sm:$0xff]  }
  0x56   :  { %718 = vmatprep.subr.bf16.mxu0 %v3240_v31  ;;  %5121 = vst [vmem:[#allocation33_spill] sm:$0xff] %v3262_v32  ;;  %v3268_v31 = vld [vmem:[%s4835_s2 + $0x34] ss:$8 sps:$4 sm:$0xff]  }
  0x57   :  { %772 = vmatpush1.bf16.msra.mxu1 %v3019_v35  ;;  %5122 = vst [vmem:[#allocation34_spill] sm:$0xff] %v3268_v31 }
  0x58   :  { %773 = vmatprep.subr.bf16.mxu1 %v3025_v36 }
  0x59   :  { %719 = vmatpush1.bf16.msra.mxu0 %v3248_v23  ;;  %v3276_v23 = vld [vmem:[%s4835_s2 + $0x30] ss:$8 sps:$4 sm:$0xff]  }
  0x5a   :  { %720 = vmatprep.subr.bf16.mxu0 %v3254_v27  ;;  %5123 = vst [vmem:[#allocation35_spill] sm:$0xff] %v3276_v23  ;;  %v3282_v27 = vld [vmem:[%s4835_s2 + $0x24] ss:$8 sps:$4 sm:$0xff]  }
  0x5b   :  { %774 = vmatpush1.bf16.msra.mxu1 %v3043_v39  ;;  %5124 = vst [vmem:[#allocation36_spill] sm:$0xff] %v3282_v27 }
  0x5c   :  { %775 = vmatprep.subr.bf16.mxu1 %v3049_v40 }
  0x5d   :  { %721 = vmatpush1.bf16.msra.mxu0 %v3262_v32  ;;  %v3290_v32 = vld [vmem:[%s4835_s2 + $0x20] ss:$8 sps:$4 sm:$0xff]  }
  0x5e   :  { %722 = vmatprep.subr.bf16.mxu0 %v3268_v31  ;;  %5125 = vst [vmem:[#allocation37_spill] sm:$0xff] %v3290_v32  ;;  %v3296_v31 = vld [vmem:[%s4835_s2 + $0x14] ss:$8 sps:$4 sm:$0xff]  }
  0x5f   :  { %776 = vmatpush1.bf16.msra.mxu1 %v3067_v43  ;;  %5126 = vst [vmem:[#allocation38_spill] sm:$0xff] %v3296_v31 }
  0x60   :  { %777 = vmatprep.subr.bf16.mxu1 %v3073_v44 }
  0x61   :  { %723 = vmatpush1.bf16.msra.mxu0 %v3276_v23  ;;  %v3304_v23 = vld [vmem:[%s4835_s2 + $0x10] ss:$8 sps:$4 sm:$0xff]  }
  0x62   :  { %724 = vmatprep.subr.bf16.mxu0 %v3282_v27  ;;  %5127 = vst [vmem:[#allocation39_spill] sm:$0xff] %v3304_v23  ;;  %v3310_v27 = vld [vmem:[%s4835_s2 + $0x4] ss:$8 sps:$4 sm:$0xff]  }
  0x63   :  { %778 = vmatpush2.bf16.msra.mxu1 %v3091_v47  ;;  %5128 = vst [vmem:[#allocation40_spill] sm:$0xff] %v3310_v27 }
  0x64   :  { %779 = vmatprep.subr.bf16.mxu1 %v3097_v48 }
  0x65   :  { %725 = vmatpush1.bf16.msra.mxu0 %v3290_v32  ;;  %v3318_v32 = vld [vmem:[%s4835_s2] ss:$8 sps:$4 sm:$0xff]  }
  0x66   :  { %726 = vmatprep.subr.bf16.mxu0 %v3296_v31  ;;  %5129 = vst [vmem:[#allocation41_spill] sm:$0xff] %v3318_v32  ;;  %v3324_v31 = vld [vmem:[%s4835_s2 + $0xf4] ss:$8 sps:$4 sm:$0xff]  }
  0x67   :  { %780 = vmatpush2.bf16.msra.mxu1 %v3120_v52  ;;  %5130 = vst [vmem:[#allocation42_spill] sm:$0xff] %v3324_v31 }
  0x68   :  { %781 = vmatprep.subr.bf16.mxu1 %v3125_v53 }
  0x69   :  { %727 = vmatpush1.bf16.msra.mxu0 %v3304_v23  ;;  %v3332_v23 = vld [vmem:[%s4835_s2 + $0xf0] ss:$8 sps:$4 sm:$0xff]  }
  0x6a   :  { %728 = vmatprep.subr.bf16.mxu0 %v3310_v27  ;;  %5131 = vst [vmem:[#allocation43_spill] sm:$0xff] %v3332_v23  ;;  %v3338_v27 = vld [vmem:[%s4835_s2 + $0xe4] ss:$8 sps:$4 sm:$0xff]  }
  0x6b   :  { %782 = vmatpush2.bf16.msra.mxu1 %v3134_v54  ;;  %5132 = vst [vmem:[#allocation44_spill] sm:$0xff] %v3338_v27 }
  0x6c   :  { %783 = vmatprep.subr.bf16.mxu1 %v3140_v55 }
  0x6d   :  { %729 = vmatpush1.bf16.msra.mxu0 %v3318_v32  ;;  %v3346_v32 = vld [vmem:[%s4835_s2 + $0xe0] ss:$8 sps:$4 sm:$0xff]  }
  0x6e   :  { %730 = vmatprep.subr.bf16.mxu0 %v3324_v31  ;;  %5133 = vst [vmem:[#allocation45_spill] sm:$0xff] %v3346_v32  ;;  %v3352_v31 = vld [vmem:[%s4835_s2 + $0xd4] ss:$8 sps:$4 sm:$0xff]  }
  0x6f   :  { %784 = vmatpush2.bf16.msra.mxu1 %v3148_v56  ;;  %5134 = vst [vmem:[#allocation46_spill] sm:$0xff] %v3352_v31 }
  0x70   :  { %785 = vmatprep.subr.bf16.mxu1 %v3155_v57 }
  0x71   :  { %731 = vmatpush2.bf16.msra.mxu0 %v3332_v23  ;;  %v3360_v23 = vld [vmem:[%s4835_s2 + $0xd0] ss:$8 sps:$4 sm:$0xff]  }
  0x72   :  { %732 = vmatprep.subr.bf16.mxu0 %v3338_v27  ;;  %5135 = vst [vmem:[#allocation47_spill] sm:$0xff] %v3360_v23  ;;  %v3369_v27 = vld [vmem:[%s4835_s2 + $0xc4] ss:$8 sps:$4 sm:$0xff]  }
  0x73   :  { %786 = vmatpush2.bf16.msra.mxu1 %v3163_v58  ;;  %5136 = vst [vmem:[#allocation48_spill] sm:$0xff] %v3369_v27 }
  0x74   :  { %787 = vmatprep.subr.bf16.mxu1 %v3169_v59 }
  0x75   :  { %733 = vmatpush2.bf16.msra.mxu0 %v3346_v32  ;;  %v3374_v32 = vld [vmem:[%s4835_s2 + $0xc0] ss:$8 sps:$4 sm:$0xff]  }
  0x76   :  { %734 = vmatprep.subr.bf16.mxu0 %v3352_v31  ;;  %5137 = vst [vmem:[#allocation49_spill] sm:$0xff] %v3374_v32  ;;  %v3381_v31 = vld [vmem:[%s4835_s2 + $0xb4] ss:$8 sps:$4 sm:$0xff]  }
  0x77   :  { %788 = vmatpush2.bf16.msra.mxu1 %v3177_v60  ;;  %5138 = vst [vmem:[#allocation50_spill] sm:$0xff] %v3381_v31 }
  0x78   :  { %789 = vmatprep.subr.bf16.mxu1 %v3183_v61 }
  0x79   :  { %735 = vmatpush2.bf16.msra.mxu0 %v3360_v23  ;;  %v3386_v23 = vld [vmem:[%s4835_s2 + $0xb0] ss:$8 sps:$4 sm:$0xff]  }
  0x7a   :  { %736 = vmatprep.subr.bf16.mxu0 %v3369_v27  ;;  %5139 = vst [vmem:[#allocation51_spill] sm:$0xff] %v3386_v23  ;;  %v3393_v27 = vld [vmem:[%s4835_s2 + $0xa4] ss:$8 sps:$4 sm:$0xff]  }
  0x7b   :  { %790 = vmatpush2.bf16.msra.mxu1 %v3191_v62  ;;  %5140 = vst [vmem:[#allocation52_spill] sm:$0xff] %v3393_v27 }
  0x7c   :  { %791 = vmatprep.subr.bf16.mxu1 %v3197_v63 }
  0x7d   :  { %737 = vmatpush2.bf16.msra.mxu0 %v3374_v32  ;;  %v3398_v32 = vld [vmem:[%s4835_s2 + $0xa0] ss:$8 sps:$4 sm:$0xff]  }
  0x7e   :  { %738 = vmatprep.subr.bf16.mxu0 %v3381_v31  ;;  %5141 = vst [vmem:[#allocation53_spill] sm:$0xff] %v3398_v32  ;;  %v3405_v31 = vld [vmem:[%s4835_s2 + $0x94] ss:$8 sps:$4 sm:$0xff]  }
  0x7f   :  { %792 = vmatpush2.bf16.msra.mxu1 %v3205_v1  ;;  %5142 = vst [vmem:[#allocation54_spill] sm:$0xff] %v3405_v31 }
  0x80   :  { %854 = vmatprep.subr.bf16.mxu1 %v3211_v24 }
  0x81   :  { %739 = vmatpush2.bf16.msra.mxu0 %v3386_v23  ;;  %v3410_v23 = vld [vmem:[%s4835_s2 + $0x90] ss:$8 sps:$4 sm:$0xff]  }
  0x82   :  { %740 = vmatprep.subr.bf16.mxu0 %v3393_v27  ;;  %5143 = vst [vmem:[#allocation55_spill] sm:$0xff] %v3410_v23  ;;  %v3417_v27 = vld [vmem:[%s4835_s2 + $0x84] ss:$8 sps:$4 sm:$0xff]  }
  0x83   :  { %5144 = vst [vmem:[#allocation56_spill] sm:$0xff] %v3417_v27 }
  0x85   :  { %741 = vmatpush2.bf16.msra.mxu0 %v3398_v32  ;;  %v3422_v32 = vld [vmem:[%s4835_s2 + $0x80] ss:$8 sps:$4 sm:$0xff]  }
  0x86   :  { %742 = vmatprep.subr.bf16.mxu0 %v3405_v31  ;;  %5145 = vst [vmem:[#allocation57_spill] sm:$0xff] %v3422_v32 }
  0x89   :  { %743 = vmatpush2.bf16.msra.mxu0 %v3410_v23  ;;  %v281_v23 = vld [vmem:[%s4836_s0] sm:$0xff] }
  0x8a   :  { %744 = vmatprep.subr.bf16.mxu0 %v3417_v27 }
  0x8d   :  { %745 = vmatpush2.bf16.msra.mxu0 %v3422_v32 }
  0x8e   :  { %807 = vmatprep.subr.bf16.mxu0 %v2816_v0 }
 0x102   :  { %v509_v31 = vpop.f32.mrf.mxu1 }
 0x103   :  { %v516_v24 = vadd.f32 %v509_v31, %v281_v23  ;;  %v5154_v23 = vld [vmem:[#allocation22_spill] sm:$0xff] }
 0x104   :  { %v511_v1 = vpop.f32.mrf.mxu1 }
 0x105   :  { %v517_v63 = vadd.f32 %v511_v1, %v282_v28  ;;  %2575 = vtanh.f32 %v516_v24  ;;  %v5147_v28 = vld [vmem:[#allocation4_spill] sm:$0xff] }
 0x106   :  { %v513_v62 = vpop.f32.mrf.mxu1 }
 0x107   :  { %2577 = vtanh.f32 %v517_v63  ;;  %v5151_v62 = vld [vmem:[#allocation8_spill] sm:$0xff]  ;;  %v5153_v63 = vld [vmem:[#allocation21_spill] sm:$0xff] }
 0x108   :  { %v514_v27 = vpop.f32.mrf.mxu1 }
 0x109   :  { %v5146_v27 = vld [vmem:[#allocation3_spill] sm:$0xff] }
 0x10c   :  { %v3433_v59 = vpop.f32.mrf.mxu0 }
 0x10e   :  { %v3437_v31 = vpop.f32.mrf.mxu0 }
 0x110   :  { %v275_v1 = vpop.f32.mrf.mxu0 }
 0x111   :  { %v5155_v1 = vld [vmem:[#allocation23_spill] sm:$0xff] }
 0x112   :  { %v2576_v61 = vpop.eup %2575  ;;  %v276_v24 = vpop.f32.mrf.mxu0 }
 0x113   :  { %v520_v0 = vpack.c.bf16 %v2576_v61, %v2576_v61  ;;  %v5150_v61 = vld [vmem:[#allocation7_spill] sm:$0xff]  ;;  %v5156_v24 = vld [vmem:[#allocation24_spill] sm:$0xff] }
 0x114   :  { %v2578_v32 = vpop.eup %2577 }
 0x115   :  { %v521_v60 = vpack.c.bf16 %v2578_v32, %v2578_v32  ;;  %v5148_v32 = vld [vmem:[#allocation5_spill] sm:$0xff] }
 0x117   :  { %746 = vmatprep.mubr.bf16.mxu0 %v521_v60 }
 0x118   :  { %747 = vmatmul.mubr.bf16.vlgmr.msra.gmra.mxu0 %v520_v0 }
 0x119   :  { %808 = vmatpush1.bf16.msra.mxu0 %v2823_v2  ;;  %839 = vmatprep.mubr.bf16.mxu0 %v521_v60  ;;  %v5149_v60 = vld [vmem:[#allocation6_spill] sm:$0xff] }
 0x11a   :  { %809 = vmatprep.subr.bf16.mxu0 %v2829_v3 }
 0x11d   :  { %810 = vmatpush1.bf16.msra.mxu0 %v2835_v4 }
 0x11e   :  { %811 = vmatprep.subr.bf16.mxu0 %v2841_v5 }
 0x121   :  { %812 = vmatpush1.bf16.msra.mxu0 %v2847_v6 }
 0x122   :  { %813 = vmatprep.subr.bf16.mxu0 %v2853_v7 }
 0x125   :  { %814 = vmatpush1.bf16.msra.mxu0 %v2859_v8 }
 0x126   :  { %815 = vmatprep.subr.bf16.mxu0 %v2865_v9 }
 0x129   :  { %816 = vmatpush1.bf16.msra.mxu0 %v2871_v10 }
 0x12a   :  { %817 = vmatprep.subr.bf16.mxu0 %v2877_v11 }
 0x12d   :  { %818 = vmatpush1.bf16.msra.mxu0 %v2883_v12 }
 0x12e   :  { %819 = vmatprep.subr.bf16.mxu0 %v2889_v13 }
 0x131   :  { %820 = vmatpush1.bf16.msra.mxu0 %v2905_v16 }
 0x132   :  { %821 = vmatprep.subr.bf16.mxu0 %v2916_v18 }
 0x135   :  { %822 = vmatpush1.bf16.msra.mxu0 %v2935_v21 }
 0x136   :  { %823 = vmatprep.subr.bf16.mxu0 %v2941_v22 }
 0x139   :  { %824 = vmatpush2.bf16.msra.mxu0 %v2959_v25 }
 0x13a   :  { %825 = vmatprep.subr.bf16.mxu0 %v2965_v26 }
 0x13d   :  { %826 = vmatpush2.bf16.msra.mxu0 %v2983_v29 }
 0x13e   :  { %827 = vmatprep.subr.bf16.mxu0 %v2989_v30 }
 0x141   :  { %828 = vmatpush2.bf16.msra.mxu0 %v3007_v33 }
 0x142   :  { %829 = vmatprep.subr.bf16.mxu0 %v3013_v34 }
 0x145   :  { %830 = vmatpush2.bf16.msra.mxu0 %v3031_v37 }
 0x146   :  { %831 = vmatprep.subr.bf16.mxu0 %v3037_v38 }
 0x149   :  { %832 = vmatpush2.bf16.msra.mxu0 %v3055_v41 }
 0x14a   :  { %833 = vmatprep.subr.bf16.mxu0 %v3061_v42 }
 0x14d   :  { %834 = vmatpush2.bf16.msra.mxu0 %v3079_v45 }
 0x14e   :  { %835 = vmatprep.subr.bf16.mxu0 %v3085_v46 }
 0x151   :  { %836 = vmatpush2.bf16.msra.mxu0 %v3103_v49 }
 0x152   :  { %837 = vmatprep.subr.bf16.mxu0 %v3109_v50 }
 0x155   :  { %838 = vmatpush2.bf16.msra.mxu0 %v3114_v51 }
 0x156   :  { %901 = vmatprep.subr.bf16.mxu0 %v2894_v14 }
 0x158   :  { %840 = vmatmul.mubr.bf16.vlgmr.msra.gmra.mxu0 %v520_v0  ;;  %v5152_v0 = vld [vmem:[#allocation20_spill] sm:$0xff] }
 0x159   :  { %902 = vmatpush1.bf16.msra.mxu0 %v2899_v15 }
 0x15a   :  { %903 = vmatprep.subr.bf16.mxu0 %v2910_v17 }
 0x15d   :  { %904 = vmatpush1.bf16.msra.mxu0 %v2923_v19 }
 0x15e   :  { %905 = vmatprep.subr.bf16.mxu0 %v2929_v20 }
 0x161   :  { %906 = vmatpush1.bf16.msra.mxu0 %v5146_v27 }
 0x162   :  { %907 = vmatprep.subr.bf16.mxu0 %v5147_v28 }
 0x165   :  { %908 = vmatpush1.bf16.msra.mxu0 %v5148_v32 }
 0x166   :  { %909 = vmatprep.subr.bf16.mxu0 %v5149_v60 }
 0x169   :  { %910 = vmatpush1.bf16.msra.mxu0 %v5150_v61 }
 0x16a   :  { %911 = vmatprep.subr.bf16.mxu0 %v5151_v62 }
 0x16d   :  { %912 = vmatpush1.bf16.msra.mxu0 %v3019_v35 }
 0x16e   :  { %913 = vmatprep.subr.bf16.mxu0 %v3025_v36 }
 0x171   :  { %914 = vmatpush1.bf16.msra.mxu0 %v3043_v39 }
 0x172   :  { %915 = vmatprep.subr.bf16.mxu0 %v3049_v40 }
 0x175   :  { %916 = vmatpush1.bf16.msra.mxu0 %v3067_v43 }
 0x176   :  { %917 = vmatprep.subr.bf16.mxu0 %v3073_v44 }
 0x179   :  { %918 = vmatpush2.bf16.msra.mxu0 %v3091_v47 }
 0x17a   :  { %919 = vmatprep.subr.bf16.mxu0 %v3097_v48 }
 0x17d   :  { %920 = vmatpush2.bf16.msra.mxu0 %v3120_v52 }
 0x17e   :  { %921 = vmatprep.subr.bf16.mxu0 %v3125_v53  ;;  %v5157_v53 = vld [vmem:[#allocation25_spill] sm:$0xff] }
 0x181   :  { %922 = vmatpush2.bf16.msra.mxu0 %v3134_v54  ;;  %v5158_v54 = vld [vmem:[#allocation26_spill] sm:$0xff] }
 0x182   :  { %923 = vmatprep.subr.bf16.mxu0 %v3140_v55  ;;  %v35_v55 = vlaneseq }
 0x185   :  { %924 = vmatpush2.bf16.msra.mxu0 %v3148_v56  ;;  %v3501_v56 = vshrl.u32 %v35_v55, 7 }
 0x186   :  { %925 = vmatprep.subr.bf16.mxu0 %v3155_v57 }
 0x187   :  { %5159 = vst [vmem:[#allocation3_spill] sm:$0xff] %v3501_v56  ;;  %v4951_v57 = vsub.s32 0, %v3501_v56 }
 0x189   :  { %926 = vmatpush2.bf16.msra.mxu0 %v3163_v58 }
 0x18a   :  { %927 = vmatprep.subr.bf16.mxu0 %v5152_v0  ;;  %v33_v0 = vld [vmem:[%s4837_s4] sm:$0x3] }
 0x18d   :  { %928 = vmatpush2.bf16.msra.mxu0 %v5153_v63  ;;  %v4958_v63 = vsub.s32 1, %v3501_v56 }
 0x18e   :  { %929 = vmatprep.subr.bf16.mxu0 %v5154_v23 }
 0x191   :  { %930 = vmatpush2.bf16.msra.mxu0 %v5155_v1  ;;  %v3510_v1 = vrot.slane %v33_v0, %v4951_v57 }
 0x192   :  { %931 = vmatprep.subr.bf16.mxu0 %v5156_v24 }
 0x193   :  { %v272_v55 = vadd.f32 %v3433_v59, %v3510_v1  ;;  %v5161_v59 = vld [vmem:[#allocation28_spill] sm:$0xff] }
 0x195   :  { %932 = vmatpush2.bf16.msra.mxu0 %v5157_v53  ;;  %v3514_v53 = vrot.slane %v33_v0, %v4958_v63  ;;  %v5160_v0 = vld [vmem:[#allocation27_spill] sm:$0xff]  ;;  %v5162_v63 = vld [vmem:[#allocation29_spill] sm:$0xff] }
 0x196   :  { %994 = vmatprep.subr.bf16.mxu0 %v5158_v54 }
 0x197   :  { %v274_v24 = vadd.f32 %v3437_v31, %v3514_v53  ;;  %v5163_v31 = vld [vmem:[#allocation30_spill] sm:$0xff] }
 0x1d8   :  { %v748_v54 = vpop.f32.mrf.mxu0 }
 0x1d9   :  { %v755_v23 = vadd.f32 %v748_v54, %v272_v55  ;;  %v5164_v54 = vld [vmem:[#allocation31_spill] sm:$0xff]  ;;  %v5175_v55 = vld [vmem:[#allocation42_spill] sm:$0xff] }
 0x1da   :  { %v750_v58 = vpop.f32.mrf.mxu0 }
 0x1db   :  { %v756_v52 = vadd.f32 %v750_v58, %v274_v24  ;;  %2579 = vtanh.f32 %v755_v23  ;;  %v5165_v58 = vld [vmem:[#allocation32_spill] sm:$0xff]  ;;  %v5174_v24 = vld [vmem:[#allocation41_spill] sm:$0xff] }
 0x1dc   :  { %v752_v48 = vpop.f32.mrf.mxu0  ;;  %v5173_v23 = vld [vmem:[#allocation40_spill] sm:$0xff] }
 0x1dd   :  { %2581 = vtanh.f32 %v756_v52  ;;  %v5166_v48 = vld [vmem:[#allocation33_spill] sm:$0xff] }
 0x1de   :  { %v753_v47 = vpop.f32.mrf.mxu0  ;;  %v5170_v52 = vld [vmem:[#allocation37_spill] sm:$0xff] }
 0x1df   :  { %v5167_v47 = vld [vmem:[#allocation34_spill] sm:$0xff] }
 0x1e8   :  { %v2580_v57 = vpop.eup %2579 }
 0x1e9   :  { %v759_v56 = vpack.c.bf16 %v2580_v57, %v2580_v57  ;;  %v5172_v57 = vld [vmem:[#allocation39_spill] sm:$0xff] }
 0x1ea   :  { %v2582_v44 = vpop.eup %2581 }
 0x1eb   :  { %v760_v43 = vpack.c.bf16 %v2582_v44, %v2582_v44  ;;  %v5168_v44 = vld [vmem:[#allocation35_spill] sm:$0xff] }
 0x1ed   :  { %793 = vmatprep.mubr.bf16.mxu1 %v760_v43  ;;  %v5169_v43 = vld [vmem:[#allocation36_spill] sm:$0xff] }
 0x1ee   :  { %794 = vmatmul.mubr.bf16.vlgmr.msra.gmra.mxu1 %v759_v56  ;;  %v5171_v56 = vld [vmem:[#allocation38_spill] sm:$0xff] }
 0x1ef   :  { %855 = vmatpush1.bf16.msra.mxu1 %v5160_v0 }
 0x1f0   :  { %856 = vmatprep.subr.bf16.mxu1 %v5161_v59  ;;  %v5187_v59 = vld [vmem:[#allocation54_spill] sm:$0xff] }
 0x1f3   :  { %857 = vmatpush1.bf16.msra.mxu1 %v5162_v63  ;;  %v5186_v63 = vld [vmem:[#allocation53_spill] sm:$0xff] }
 0x1f4   :  { %858 = vmatprep.subr.bf16.mxu1 %v5163_v31  ;;  %v5184_v31 = vld [vmem:[#allocation51_spill] sm:$0xff] }
 0x1f7   :  { %859 = vmatpush1.bf16.msra.mxu1 %v5164_v54 }
 0x1f8   :  { %860 = vmatprep.subr.bf16.mxu1 %v5165_v58  ;;  %v5176_v58 = vld [vmem:[#allocation43_spill] sm:$0xff] }
 0x1fb   :  { %861 = vmatpush1.bf16.msra.mxu1 %v5166_v48  ;;  %v5177_v48 = vld [vmem:[#allocation44_spill] sm:$0xff] }
 0x1fc   :  { %862 = vmatprep.subr.bf16.mxu1 %v5167_v47  ;;  %v5178_v47 = vld [vmem:[#allocation45_spill] sm:$0xff] }
 0x1ff   :  { %863 = vmatpush1.bf16.msra.mxu1 %v5168_v44  ;;  %v5179_v44 = vld [vmem:[#allocation46_spill] sm:$0xff] }
 0x200   :  { %864 = vmatprep.subr.bf16.mxu1 %v5169_v43  ;;  %v5182_v43 = vld [vmem:[#allocation49_spill] sm:$0xff] }
 0x203   :  { %865 = vmatpush1.bf16.msra.mxu1 %v5170_v52  ;;  %v5180_v52 = vld [vmem:[#allocation47_spill] sm:$0xff] }
 0x204   :  { %866 = vmatprep.subr.bf16.mxu1 %v5171_v56  ;;  %v2280_v56 = vld [vmem:[%s4836_s0 + $0x10] sm:$0xff] }
 0x207   :  { %867 = vmatpush1.bf16.msra.mxu1 %v5172_v57 }
 0x208   :  { %868 = vmatprep.subr.bf16.mxu1 %v5173_v23 }
 0x20b   :  { %869 = vmatpush1.bf16.msra.mxu1 %v5174_v24  ;;  %v2281_v24 = vld [vmem:[%s4836_s0 + $0x18] sm:$0xff] }
 0x20c   :  { %870 = vmatprep.subr.bf16.mxu1 %v5175_v55  ;;  %v5181_v55 = vld [vmem:[#allocation48_spill] sm:$0xff] }
 0x20f   :  { %871 = vmatpush2.bf16.msra.mxu1 %v5176_v58 }
 0x210   :  { %872 = vmatprep.subr.bf16.mxu1 %v5177_v48 }
 0x213   :  { %873 = vmatpush2.bf16.msra.mxu1 %v5178_v47  ;;  %v5183_v47 = vld [vmem:[#allocation50_spill] sm:$0xff] }
 0x214   :  { %874 = vmatprep.subr.bf16.mxu1 %v5179_v44 }
 0x217   :  { %875 = vmatpush2.bf16.msra.mxu1 %v5180_v52  ;;  %v5185_v52 = vld [vmem:[#allocation52_spill] sm:$0xff] }
 0x218   :  { %v841_v57 = vpop.f32.mrf.mxu0  ;;  %876 = vmatprep.subr.bf16.mxu1 %v5181_v55  ;;  %v5188_v55 = vld [vmem:[#allocation55_spill] sm:$0xff] }
 0x219   :  { %v848_v58 = vadd.f32 %v2280_v56, %v841_v57  ;;  %v5189_v56 = vld [vmem:[#allocation56_spill] sm:$0xff] }
 0x21a   :  { %v843_v23 = vpop.f32.mrf.mxu0 }
 0x21b   :  { %v849_v48 = vadd.f32 %v2281_v24, %v843_v23  ;;  %877 = vmatpush2.bf16.msra.mxu1 %v5182_v43  ;;  %2583 = vtanh.f32 %v848_v58  ;;  %v5190_v58 = vld [vmem:[#allocation57_spill] sm:$0xff] }
 0x21c   :  { %v845_v44 = vpop.f32.mrf.mxu0  ;;  %878 = vmatprep.subr.bf16.mxu1 %v5183_v47 }
 0x21d   :  { %2585 = vtanh.f32 %v849_v48  ;;  %v5191_v48 = vld [vmem:[#allocation2_spill] sm:$0xff] }
 0x21e   :  { %v846_v54 = vpop.f32.mrf.mxu0 }
 0x21f   :  { %879 = vmatpush2.bf16.msra.mxu1 %v5184_v31  ;;  %v5213_v54 = vld [vmem:[#allocation31_spill] sm:$0xff] }
 0x220   :  { %880 = vmatprep.subr.bf16.mxu1 %v5185_v52 }
 0x223   :  { %881 = vmatpush2.bf16.msra.mxu1 %v5186_v63 }
 0x224   :  { %882 = vmatprep.subr.bf16.mxu1 %v5187_v59 }
 0x227   :  { %883 = vmatpush2.bf16.msra.mxu1 %v5188_v55 }
 0x228   :  { %884 = vmatprep.subr.bf16.mxu1 %v5189_v56  ;;  %v2584_v57 = vpop.eup %2583 }
 0x229   :  { %v852_v24 = vpack.c.bf16 %v2584_v57, %v2584_v57  ;;  %v5214_v57 = vld [vmem:[#allocation32_spill] sm:$0xff] }
 0x22a   :  { %v2586_v23 = vpop.eup %2585 }
 0x22b   :  { %885 = vmatpush2.bf16.msra.mxu1 %v5190_v58  ;;  %v853_v44 = vpack.c.bf16 %v2586_v23, %v2586_v23  ;;  %v5215_v23 = vld [vmem:[#allocation33_spill] sm:$0xff] }
 0x22c   :  { %947 = vmatprep.subr.bf16.mxu1 %v5191_v48  ;;  %v5218_v48 = vld [vmem:[#allocation36_spill] sm:$0xff] }
 0x22d   :  { %886 = vmatprep.mubr.bf16.mxu1 %v853_v44 }
 0x22e   :  { %887 = vmatmul.mubr.bf16.vlgmr.msra.gmra.mxu1 %v852_v24 }
 0x22f   :  { %948 = vmatpush1.bf16.msra.mxu1 %v2823_v2  ;;  %979 = vmatprep.mubr.bf16.mxu1 %v853_v44  ;;  %v5192_v2 = vld [vmem:[#allocation9_spill] sm:$0xff]  ;;  %v5216_v44 = vld [vmem:[#allocation34_spill] sm:$0xff] }
 0x230   :  { %949 = vmatprep.subr.bf16.mxu1 %v2829_v3  ;;  %v5193_v3 = vld [vmem:[#allocation10_spill] sm:$0xff] }
 0x233   :  { %950 = vmatpush1.bf16.msra.mxu1 %v2835_v4  ;;  %v5194_v4 = vld [vmem:[#allocation11_spill] sm:$0xff] }
 0x234   :  { %951 = vmatprep.subr.bf16.mxu1 %v2841_v5  ;;  %v5195_v5 = vld [vmem:[#allocation12_spill] sm:$0xff] }
 0x237   :  { %952 = vmatpush1.bf16.msra.mxu1 %v2847_v6  ;;  %v5196_v6 = vld [vmem:[#allocation13_spill] sm:$0xff] }
 0x238   :  { %953 = vmatprep.subr.bf16.mxu1 %v2853_v7  ;;  %v5197_v7 = vld [vmem:[#allocation14_spill] sm:$0xff] }
 0x23b   :  { %954 = vmatpush1.bf16.msra.mxu1 %v2859_v8  ;;  %v5198_v8 = vld [vmem:[#allocation15_spill] sm:$0xff] }
 0x23c   :  { %955 = vmatprep.subr.bf16.mxu1 %v2865_v9  ;;  %v5199_v9 = vld [vmem:[#allocation16_spill] sm:$0xff] }
 0x23f   :  { %956 = vmatpush1.bf16.msra.mxu1 %v2871_v10  ;;  %v5200_v10 = vld [vmem:[#allocation17_spill] sm:$0xff] }
 0x240   :  { %957 = vmatprep.subr.bf16.mxu1 %v2877_v11  ;;  %v5201_v11 = vld [vmem:[#allocation18_spill] sm:$0xff] }
 0x243   :  { %958 = vmatpush1.bf16.msra.mxu1 %v2883_v12  ;;  %v5202_v12 = vld [vmem:[#allocation19_spill] sm:$0xff] }
 0x244   :  { %959 = vmatprep.subr.bf16.mxu1 %v2889_v13  ;;  %v5203_v13 = vld [vmem:[#allocation20_spill] sm:$0xff] }
 0x247   :  { %960 = vmatpush1.bf16.msra.mxu1 %v2905_v16  ;;  %v5206_v16 = vld [vmem:[#allocation23_spill] sm:$0xff] }
 0x248   :  { %961 = vmatprep.subr.bf16.mxu1 %v2916_v18  ;;  %v5208_v18 = vld [vmem:[#allocation25_spill] sm:$0xff] }
 0x24b   :  { %962 = vmatpush1.bf16.msra.mxu1 %v2935_v21 }
 0x24c   :  { %963 = vmatprep.subr.bf16.mxu1 %v2941_v22 }
 0x24f   :  { %964 = vmatpush2.bf16.msra.mxu1 %v2959_v25 }
 0x250   :  { %965 = vmatprep.subr.bf16.mxu1 %v2965_v26 }
 0x253   :  { %966 = vmatpush2.bf16.msra.mxu1 %v2983_v29 }
 0x254   :  { %967 = vmatprep.subr.bf16.mxu1 %v2989_v30 }
 0x257   :  { %968 = vmatpush2.bf16.msra.mxu1 %v3007_v33 }
 0x258   :  { %969 = vmatprep.subr.bf16.mxu1 %v3013_v34 }
 0x25b   :  { %970 = vmatpush2.bf16.msra.mxu1 %v3031_v37 }
 0x25c   :  { %971 = vmatprep.subr.bf16.mxu1 %v3037_v38 }
 0x25f   :  { %972 = vmatpush2.bf16.msra.mxu1 %v3055_v41 }
 0x260   :  { %973 = vmatprep.subr.bf16.mxu1 %v3061_v42 }
 0x263   :  { %974 = vmatpush2.bf16.msra.mxu1 %v3079_v45 }
 0x264   :  { %975 = vmatprep.subr.bf16.mxu1 %v3085_v46 }
 0x267   :  { %976 = vmatpush2.bf16.msra.mxu1 %v3103_v49 }
 0x268   :  { %977 = vmatprep.subr.bf16.mxu1 %v3109_v50 }
 0x26b   :  { %978 = vmatpush2.bf16.msra.mxu1 %v3114_v51 }
 0x26c   :  { %1041 = vmatprep.subr.bf16.mxu1 %v2894_v14  ;;  %v5204_v14 = vld [vmem:[#allocation21_spill] sm:$0xff] }
 0x26e   :  { %980 = vmatmul.mubr.bf16.vlgmr.msra.gmra.mxu1 %v852_v24  ;;  %v5217_v24 = vld [vmem:[#allocation35_spill] sm:$0xff] }
 0x26f   :  { %1042 = vmatpush1.bf16.msra.mxu1 %v2899_v15  ;;  %v5205_v15 = vld [vmem:[#allocation22_spill] sm:$0xff] }
 0x270   :  { %1043 = vmatprep.subr.bf16.mxu1 %v2910_v17  ;;  %v5207_v17 = vld [vmem:[#allocation24_spill] sm:$0xff] }
 0x273   :  { %1044 = vmatpush1.bf16.msra.mxu1 %v2923_v19  ;;  %v5209_v19 = vld [vmem:[#allocation26_spill] sm:$0xff] }
 0x274   :  { %1045 = vmatprep.subr.bf16.mxu1 %v2929_v20 }
 0x277   :  { %1046 = vmatpush1.bf16.msra.mxu1 %v5146_v27 }
 0x278   :  { %1047 = vmatprep.subr.bf16.mxu1 %v5147_v28 }
 0x27b   :  { %1048 = vmatpush1.bf16.msra.mxu1 %v5148_v32 }
 0x27c   :  { %1049 = vmatprep.subr.bf16.mxu1 %v5149_v60  ;;  %v5210_v60 = vld [vmem:[#allocation28_spill] sm:$0xff] }
 0x27f   :  { %1050 = vmatpush1.bf16.msra.mxu1 %v5150_v61  ;;  %v5211_v61 = vld [vmem:[#allocation29_spill] sm:$0xff] }
 0x280   :  { %1051 = vmatprep.subr.bf16.mxu1 %v5151_v62  ;;  %v5212_v62 = vld [vmem:[#allocation30_spill] sm:$0xff] }
 0x283   :  { %1052 = vmatpush1.bf16.msra.mxu1 %v3019_v35 }
 0x284   :  { %1053 = vmatprep.subr.bf16.mxu1 %v3025_v36 }
 0x287   :  { %1054 = vmatpush1.bf16.msra.mxu1 %v3043_v39 }
 0x288   :  { %1055 = vmatprep.subr.bf16.mxu1 %v3049_v40 }
 0x28b   :  { %1056 = vmatpush1.bf16.msra.mxu1 %v5192_v2 }
 0x28c   :  { %1057 = vmatprep.subr.bf16.mxu1 %v5193_v3 }
 0x28f   :  { %1058 = vmatpush2.bf16.msra.mxu1 %v5194_v4 }
 0x290   :  { %1059 = vmatprep.subr.bf16.mxu1 %v5195_v5 }
 0x293   :  { %1060 = vmatpush2.bf16.msra.mxu1 %v5196_v6 }
 0x294   :  { %1061 = vmatprep.subr.bf16.mxu1 %v5197_v7 }
 0x297   :  { %1062 = vmatpush2.bf16.msra.mxu1 %v5198_v8 }
 0x298   :  { %1063 = vmatprep.subr.bf16.mxu1 %v5199_v9 }
 0x29b   :  { %1064 = vmatpush2.bf16.msra.mxu1 %v5200_v10 }
 0x29c   :  { %1065 = vmatprep.subr.bf16.mxu1 %v5201_v11 }
 0x29f   :  { %1066 = vmatpush2.bf16.msra.mxu1 %v5202_v12 }
 0x2a0   :  { %1067 = vmatprep.subr.bf16.mxu1 %v5203_v13 }
 0x2a3   :  { %1068 = vmatpush2.bf16.msra.mxu1 %v5204_v14 }
 0x2a4   :  { %1069 = vmatprep.subr.bf16.mxu1 %v5205_v15 }
 0x2a7   :  { %1070 = vmatpush2.bf16.msra.mxu1 %v5206_v16 }
 0x2a8   :  { %1071 = vmatprep.subr.bf16.mxu1 %v5207_v17 }
 0x2ab   :  { %1072 = vmatpush2.bf16.msra.mxu1 %v5208_v18 }
 0x2ac   :  { %1134 = vmatprep.subr.bf16.mxu1 %v5209_v19 }
 0x2ae   :  { %v795_v20 = vpop.f32.mrf.mxu1 }
 0x2af   :  { %v796_v26 = vadd.f32 %v795_v20, %v3510_v1  ;;  %v5219_v20 = vld [vmem:[#allocation37_spill] sm:$0xff] }
 0x2b0   :  { %v797_v21 = vpop.f32.mrf.mxu1 }
 0x2b1   :  { %v798_v30 = vadd.f32 %v797_v21, %v3514_v53  ;;  %v5220_v21 = vld [vmem:[#allocation38_spill] sm:$0xff] }
 0x2b2   :  { %v799_v22 = vpop.f32.mrf.mxu1 }
 0x2b3   :  { %v5221_v22 = vld [vmem:[#allocation39_spill] sm:$0xff] }
 0x2b4   :  { %v800_v25 = vpop.f32.mrf.mxu1 }
 0x2b5   :  { %v5222_v25 = vld [vmem:[#allocation40_spill] sm:$0xff] }
 0x2ee   :  { %v888_v29 = vpop.f32.mrf.mxu1 }
 0x2ef   :  { %v895_v33 = vadd.f32 %v888_v29, %v796_v26  ;;  %v5223_v26 = vld [vmem:[#allocation41_spill] sm:$0xff]  ;;  %v5224_v29 = vld [vmem:[#allocation42_spill] sm:$0xff] }
 0x2f0   :  { %v890_v34 = vpop.f32.mrf.mxu1 }
 0x2f1   :  { %v896_v35 = vadd.f32 %v890_v34, %v798_v30  ;;  %2587 = vtanh.f32 %v895_v33  ;;  %v5225_v30 = vld [vmem:[#allocation43_spill] sm:$0xff]  ;;  %v5226_v33 = vld [vmem:[#allocation44_spill] sm:$0xff]  ;;  %v5227_v34 = vld [vmem:[#allocation45_spill] sm:$0xff] }
 0x2f2   :  { %v892_v36 = vpop.f32.mrf.mxu1 }
 0x2f3   :  { %2589 = vtanh.f32 %v896_v35  ;;  %v5228_v35 = vld [vmem:[#allocation46_spill] sm:$0xff] }
 0x2f4   :  { %v893_v39 = vpop.f32.mrf.mxu1  ;;  %v2282_v36 = vld [vmem:[%s4836_s0 + $0x20] sm:$0xff] }
 0x2f5   :  { %v5229_v39 = vld [vmem:[#allocation47_spill] sm:$0xff] }
 0x2fe   :  { %v2588_v40 = vpop.eup %2587 }
 0x2ff   :  { %v899_v32 = vpack.c.bf16 %v2588_v40, %v2588_v40 }
 0x300   :  { %v2590_v27 = vpop.eup %2589 }
 0x301   :  { %v900_v28 = vpack.c.bf16 %v2590_v27, %v2590_v27  ;;  %v5230_v27 = vld [vmem:[#allocation48_spill] sm:$0xff] }
 0x303   :  { %933 = vmatprep.mubr.bf16.mxu0 %v900_v28  ;;  %v2283_v28 = vld [vmem:[%s4836_s0 + $0x28] sm:$0xff] }
 0x304   :  { %934 = vmatmul.mubr.bf16.vlgmr.msra.gmra.mxu0 %v899_v32 }
 0x305   :  { %995 = vmatpush1.bf16.msra.mxu0 %v5160_v0 }
 0x306   :  { %996 = vmatprep.subr.bf16.mxu0 %v5210_v60 }
 0x309   :  { %997 = vmatpush1.bf16.msra.mxu0 %v5211_v61 }
 0x30a   :  { %998 = vmatprep.subr.bf16.mxu0 %v5212_v62 }
 0x30d   :  { %999 = vmatpush1.bf16.msra.mxu0 %v5213_v54 }
 0x30e   :  { %1000 = vmatprep.subr.bf16.mxu0 %v5214_v57 }
 0x311   :  { %1001 = vmatpush1.bf16.msra.mxu0 %v5215_v23 }
 0x312   :  { %1002 = vmatprep.subr.bf16.mxu0 %v5216_v44 }
 0x315   :  { %1003 = vmatpush1.bf16.msra.mxu0 %v5217_v24 }
 0x316   :  { %1004 = vmatprep.subr.bf16.mxu0 %v5218_v48 }
 0x319   :  { %1005 = vmatpush1.bf16.msra.mxu0 %v5219_v20 }
 0x31a   :  { %1006 = vmatprep.subr.bf16.mxu0 %v5220_v21 }
 0x31d   :  { %1007 = vmatpush1.bf16.msra.mxu0 %v5221_v22 }
 0x31e   :  { %1008 = vmatprep.subr.bf16.mxu0 %v5222_v25 }
 0x321   :  { %1009 = vmatpush1.bf16.msra.mxu0 %v5223_v26 }
 0x322   :  { %1010 = vmatprep.subr.bf16.mxu0 %v5224_v29 }
 0x325   :  { %1011 = vmatpush2.bf16.msra.mxu0 %v5225_v30 }
 0x326   :  { %1012 = vmatprep.subr.bf16.mxu0 %v5226_v33 }
 0x329   :  { %1013 = vmatpush2.bf16.msra.mxu0 %v5227_v34 }
 0x32a   :  { %1014 = vmatprep.subr.bf16.mxu0 %v5228_v35 }
 0x32d   :  { %1015 = vmatpush2.bf16.msra.mxu0 %v5229_v39 }
 0x32e   :  { %v981_v40 = vpop.f32.mrf.mxu1  ;;  %1016 = vmatprep.subr.bf16.mxu0 %v5230_v27 }
 0x32f   :  { %v988_v32 = vadd.f32 %v2282_v36, %v981_v40 }
 0x330   :  { %v983_v30 = vpop.f32.mrf.mxu1 }
 0x331   :  { %v989_v33 = vadd.f32 %v2283_v28, %v983_v30  ;;  %1017 = vmatpush2.bf16.msra.mxu0 %v5182_v43  ;;  %2591 = vtanh.f32 %v988_v32  ;;  %v3676_v28 = vld [vmem:[%s4833_s1 + $0x64] ss:$8 sps:$4 sm:$0xff]   ;;  %v3682_v32 = vld [vmem:[%s4833_s1 + $0x60] ss:$8 sps:$4 sm:$0xff]  }
 0x332   :  { %v985_v35 = vpop.f32.mrf.mxu1  ;;  %1018 = vmatprep.subr.bf16.mxu0 %v5183_v47  ;;  %5231 = vst [vmem:[#allocation4_spill] sm:$0xff] %v3682_v32 }
 0x333   :  { %2593 = vtanh.f32 %v989_v33  ;;  %v3664_v33 = vld [vmem:[%s4833_s1 + $0x74] ss:$8 sps:$4 sm:$0xff]  }
 0x334   :  { %v986_v34 = vpop.f32.mrf.mxu1 }
 0x335   :  { %1019 = vmatpush2.bf16.msra.mxu0 %v5184_v31  ;;  %v3670_v34 = vld [vmem:[%s4833_s1 + $0x70] ss:$8 sps:$4 sm:$0xff]  }
 0x336   :  { %1020 = vmatprep.subr.bf16.mxu0 %v5185_v52 }
 0x339   :  { %1021 = vmatpush2.bf16.msra.mxu0 %v5186_v63 }
 0x33a   :  { %1022 = vmatprep.subr.bf16.mxu0 %v5187_v59 }
 0x33d   :  { %1023 = vmatpush2.bf16.msra.mxu0 %v5188_v55 }
 0x33e   :  { %1024 = vmatprep.subr.bf16.mxu0 %v5189_v56  ;;  %v2592_v30 = vpop.eup %2591 }
 0x33f   :  { %v992_v40 = vpack.c.bf16 %v2592_v30, %v2592_v30  ;;  %v3688_v30 = vld [vmem:[%s4833_s1 + $0x54] ss:$8 sps:$4 sm:$0xff]  }
 0x340   :  { %v2594_v36 = vpop.eup %2593  ;;  %5232 = vst [vmem:[#allocation5_spill] sm:$0xff] %v3688_v30 }
 0x341   :  { %1025 = vmatpush2.bf16.msra.mxu0 %v5190_v58  ;;  %v993_v35 = vpack.c.bf16 %v2594_v36, %v2594_v36  ;;  %v3694_v36 = vld [vmem:[%s4833_s1 + $0x50] ss:$8 sps:$4 sm:$0xff]  }
 0x342   :  { %1087 = vmatprep.subr.bf16.mxu0 %v3664_v33  ;;  %5233 = vst [vmem:[#allocation6_spill] sm:$0xff] %v3694_v36 }
 0x343   :  { %1026 = vmatprep.mubr.bf16.mxu0 %v993_v35 }
 0x344   :  { %1027 = vmatmul.mubr.bf16.vlgmr.msra.gmra.mxu0 %v992_v40 }
 0x345   :  { %1088 = vmatpush1.bf16.msra.mxu0 %v3670_v34  ;;  %1119 = vmatprep.mubr.bf16.mxu0 %v993_v35  ;;  %v3700_v35 = vld [vmem:[%s4833_s1 + $0x44] ss:$8 sps:$4 sm:$0xff]  }
 0x346   :  { %1089 = vmatprep.subr.bf16.mxu0 %v3676_v28  ;;  %5234 = vst [vmem:[#allocation7_spill] sm:$0xff] %v3700_v35 }
 0x349   :  { %1090 = vmatpush1.bf16.msra.mxu0 %v3682_v32  ;;  %v3706_v32 = vld [vmem:[%s4833_s1 + $0x40] ss:$8 sps:$4 sm:$0xff]  }
 0x34a   :  { %1091 = vmatprep.subr.bf16.mxu0 %v3688_v30  ;;  %5235 = vst [vmem:[#allocation8_spill] sm:$0xff] %v3706_v32  ;;  %v3712_v30 = vld [vmem:[%s4833_s1 + $0x34] ss:$8 sps:$4 sm:$0xff]  }
 0x34b   :  { %5236 = vst [vmem:[#allocation27_spill] sm:$0xff] %v3712_v30 }
 0x34d   :  { %1092 = vmatpush1.bf16.msra.mxu0 %v3694_v36  ;;  %v3718_v36 = vld [vmem:[%s4833_s1 + $0x30] ss:$8 sps:$4 sm:$0xff]  }
 0x34e   :  { %1093 = vmatprep.subr.bf16.mxu0 %v3700_v35  ;;  %5237 = vst [vmem:[#allocation49_spill] sm:$0xff] %v3718_v36  ;;  %v3724_v35 = vld [vmem:[%s4833_s1 + $0x24] ss:$8 sps:$4 sm:$0xff]  }
 0x34f   :  { %5238 = vst [vmem:[#allocation50_spill] sm:$0xff] %v3724_v35 }
 0x351   :  { %1094 = vmatpush1.bf16.msra.mxu0 %v3706_v32  ;;  %v3730_v32 = vld [vmem:[%s4833_s1 + $0x20] ss:$8 sps:$4 sm:$0xff]  }
 0x352   :  { %1095 = vmatprep.subr.bf16.mxu0 %v3712_v30  ;;  %5239 = vst [vmem:[#allocation51_spill] sm:$0xff] %v3730_v32  ;;  %v3736_v30 = vld [vmem:[%s4833_s1 + $0x14] ss:$8 sps:$4 sm:$0xff]  }
 0x353   :  { %5240 = vst [vmem:[#allocation52_spill] sm:$0xff] %v3736_v30 }
 0x355   :  { %1096 = vmatpush1.bf16.msra.mxu0 %v3718_v36  ;;  %v3742_v36 = vld [vmem:[%s4833_s1 + $0x10] ss:$8 sps:$4 sm:$0xff]  }
 0x356   :  { %1097 = vmatprep.subr.bf16.mxu0 %v3724_v35  ;;  %5241 = vst [vmem:[#allocation53_spill] sm:$0xff] %v3742_v36  ;;  %v3748_v35 = vld [vmem:[%s4833_s1 + $0x4] ss:$8 sps:$4 sm:$0xff]  }
 0x357   :  { %5242 = vst [vmem:[#allocation54_spill] sm:$0xff] %v3748_v35 }
 0x359   :  { %1098 = vmatpush1.bf16.msra.mxu0 %v3730_v32  ;;  %v3754_v32 = vld [vmem:[%s4833_s1] ss:$8 sps:$4 sm:$0xff]  }
 0x35a   :  { %1099 = vmatprep.subr.bf16.mxu0 %v3736_v30  ;;  %5243 = vst [vmem:[#allocation55_spill] sm:$0xff] %v3754_v32  ;;  %v3760_v30 = vld [vmem:[%s4833_s1 + $0xf4] ss:$8 sps:$4 sm:$0xff]  }
 0x35b   :  { %5244 = vst [vmem:[#allocation56_spill] sm:$0xff] %v3760_v30 }
 0x35d   :  { %1100 = vmatpush1.bf16.msra.mxu0 %v3742_v36  ;;  %v3766_v36 = vld [vmem:[%s4833_s1 + $0xf0] ss:$8 sps:$4 sm:$0xff]  }
 0x35e   :  { %1101 = vmatprep.subr.bf16.mxu0 %v3748_v35  ;;  %5245 = vst [vmem:[#allocation57_spill] sm:$0xff] %v3766_v36  ;;  %v3772_v35 = vld [vmem:[%s4833_s1 + $0xe4] ss:$8 sps:$4 sm:$0xff]  }
 0x35f   :  { %5246 = vst [vmem:[#allocation2_spill] sm:$0xff] %v3772_v35 }
 0x361   :  { %1102 = vmatpush1.bf16.msra.mxu0 %v3754_v32  ;;  %v3778_v32 = vld [vmem:[%s4833_s1 + $0xe0] ss:$8 sps:$4 sm:$0xff]  }
 0x362   :  { %1103 = vmatprep.subr.bf16.mxu0 %v3760_v30  ;;  %v3784_v30 = vld [vmem:[%s4833_s1 + $0xd4] ss:$8 sps:$4 sm:$0xff]  }
 0x365   :  { %1104 = vmatpush2.bf16.msra.mxu0 %v3766_v36  ;;  %v3790_v36 = vld [vmem:[%s4833_s1 + $0xd0] ss:$8 sps:$4 sm:$0xff]  }
 0x366   :  { %1105 = vmatprep.subr.bf16.mxu0 %v3772_v35  ;;  %v3796_v35 = vld [vmem:[%s4833_s1 + $0xc4] ss:$8 sps:$4 sm:$0xff]  }
 0x369   :  { %1106 = vmatpush2.bf16.msra.mxu0 %v3778_v32 }
 0x36a   :  { %1107 = vmatprep.subr.bf16.mxu0 %v3784_v30 }
 0x36d   :  { %1108 = vmatpush2.bf16.msra.mxu0 %v3790_v36 }
 0x36e   :  { %1109 = vmatprep.subr.bf16.mxu0 %v3796_v35 }
 0x371   :  { %1110 = vmatpush2.bf16.msra.mxu0 %v3031_v37  ;;  %v3811_v37 = vld [vmem:[%s4834_s3 + $0x74] ss:$8 sps:$4 sm:$0xff]  }
 0x372   :  { %1111 = vmatprep.subr.bf16.mxu0 %v3037_v38  ;;  %v3817_v38 = vld [vmem:[%s4834_s3 + $0x70] ss:$8 sps:$4 sm:$0xff]  }
 0x375   :  { %1112 = vmatpush2.bf16.msra.mxu0 %v3055_v41  ;;  %v3823_v41 = vld [vmem:[%s4834_s3 + $0x64] ss:$8 sps:$4 sm:$0xff]  }
 0x376   :  { %1113 = vmatprep.subr.bf16.mxu0 %v3061_v42  ;;  %5247 = vst [vmem:[#allocation9_spill] sm:$0xff] %v3823_v41  ;;  %v3829_v42 = vld [vmem:[%s4834_s3 + $0x60] ss:$8 sps:$4 sm:$0xff]  }
 0x377   :  { %5248 = vst [vmem:[#allocation10_spill] sm:$0xff] %v3829_v42 }
 0x379   :  { %1114 = vmatpush2.bf16.msra.mxu0 %v3079_v45  ;;  %v3835_v45 = vld [vmem:[%s4834_s3 + $0x54] ss:$8 sps:$4 sm:$0xff]  }
 0x37a   :  { %1115 = vmatprep.subr.bf16.mxu0 %v3085_v46  ;;  %5249 = vst [vmem:[#allocation11_spill] sm:$0xff] %v3835_v45  ;;  %v3841_v46 = vld [vmem:[%s4834_s3 + $0x50] ss:$8 sps:$4 sm:$0xff]  }
 0x37b   :  { %5250 = vst [vmem:[#allocation12_spill] sm:$0xff] %v3841_v46 }
 0x37d   :  { %1116 = vmatpush2.bf16.msra.mxu0 %v3103_v49  ;;  %v3847_v49 = vld [vmem:[%s4834_s3 + $0x44] ss:$8 sps:$4 sm:$0xff]  }
 0x37e   :  { %1117 = vmatprep.subr.bf16.mxu0 %v3109_v50  ;;  %5251 = vst [vmem:[#allocation13_spill] sm:$0xff] %v3847_v49  ;;  %v3853_v50 = vld [vmem:[%s4834_s3 + $0x40] ss:$8 sps:$4 sm:$0xff]  }
 0x37f   :  { %5252 = vst [vmem:[#allocation14_spill] sm:$0xff] %v3853_v50 }
 0x381   :  { %1118 = vmatpush2.bf16.msra.mxu0 %v3114_v51  ;;  %v3859_v51 = vld [vmem:[%s4834_s3 + $0x34] ss:$8 sps:$4 sm:$0xff]  }
 0x382   :  { %1181 = vmatprep.subr.bf16.mxu0 %v3811_v37  ;;  %5253 = vst [vmem:[#allocation15_spill] sm:$0xff] %v3859_v51 }
 0x384   :  { %1120 = vmatmul.mubr.bf16.vlgmr.msra.gmra.mxu0 %v992_v40  ;;  %v3865_v40 = vld [vmem:[%s4834_s3 + $0x30] ss:$8 sps:$4 sm:$0xff]  }
 0x385   :  { %1182 = vmatpush1.bf16.msra.mxu0 %v3817_v38  ;;  %5254 = vst [vmem:[#allocation16_spill] sm:$0xff] %v3865_v40 }
 0x386   :  { %1183 = vmatprep.subr.bf16.mxu0 %v3823_v41 }
 0x389   :  { %1184 = vmatpush1.bf16.msra.mxu0 %v3829_v42 }
 0x38a   :  { %1185 = vmatprep.subr.bf16.mxu0 %v3835_v45 }
 0x38d   :  { %1186 = vmatpush1.bf16.msra.mxu0 %v3841_v46 }
 0x38e   :  { %1187 = vmatprep.subr.bf16.mxu0 %v3847_v49  ;;  %v3871_v49 = vld [vmem:[%s4834_s3 + $0x24] ss:$8 sps:$4 sm:$0xff]  }
 0x38f   :  { %5255 = vst [vmem:[#allocation17_spill] sm:$0xff] %v3871_v49 }
 0x391   :  { %1188 = vmatpush1.bf16.msra.mxu0 %v3853_v50  ;;  %v3877_v50 = vld [vmem:[%s4834_s3 + $0x20] ss:$8 sps:$4 sm:$0xff]  }
 0x392   :  { %1189 = vmatprep.subr.bf16.mxu0 %v3859_v51  ;;  %5256 = vst [vmem:[#allocation18_spill] sm:$0xff] %v3877_v50  ;;  %v3883_v51 = vld [vmem:[%s4834_s3 + $0x14] ss:$8 sps:$4 sm:$0xff]  }
 0x393   :  { %5257 = vst [vmem:[#allocation19_spill] sm:$0xff] %v3883_v51 }
 0x395   :  { %1190 = vmatpush1.bf16.msra.mxu0 %v3865_v40  ;;  %v3889_v40 = vld [vmem:[%s4834_s3 + $0x10] ss:$8 sps:$4 sm:$0xff]  }
 0x396   :  { %1191 = vmatprep.subr.bf16.mxu0 %v3871_v49  ;;  %5258 = vst [vmem:[#allocation20_spill] sm:$0xff] %v3889_v40  ;;  %v3895_v49 = vld [vmem:[%s4834_s3 + $0x4] ss:$8 sps:$4 sm:$0xff]  }
 0x397   :  { %5259 = vst [vmem:[#allocation21_spill] sm:$0xff] %v3895_v49 }
 0x399   :  { %1192 = vmatpush1.bf16.msra.mxu0 %v3877_v50 }
 0x39a   :  { %1193 = vmatprep.subr.bf16.mxu0 %v3883_v51 }
 0x39d   :  { %1194 = vmatpush1.bf16.msra.mxu0 %v3889_v40 }
 0x39e   :  { %1195 = vmatprep.subr.bf16.mxu0 %v3895_v49 }
 0x3a1   :  { %1196 = vmatpush1.bf16.msra.mxu0 %v5192_v2 }
 0x3a2   :  { %1197 = vmatprep.subr.bf16.mxu0 %v5193_v3 }
 0x3a5   :  { %1198 = vmatpush2.bf16.msra.mxu0 %v5194_v4 }
 0x3a6   :  { %1199 = vmatprep.subr.bf16.mxu0 %v5195_v5 }
 0x3a9   :  { %1200 = vmatpush2.bf16.msra.mxu0 %v5196_v6 }
 0x3aa   :  { %1201 = vmatprep.subr.bf16.mxu0 %v5197_v7 }
 0x3ad   :  { %1202 = vmatpush2.bf16.msra.mxu0 %v5198_v8 }
 0x3ae   :  { %1203 = vmatprep.subr.bf16.mxu0 %v5199_v9 }
 0x3b1   :  { %1204 = vmatpush2.bf16.msra.mxu0 %v5200_v10 }
 0x3b2   :  { %1205 = vmatprep.subr.bf16.mxu0 %v5201_v11 }
 0x3b5   :  { %1206 = vmatpush2.bf16.msra.mxu0 %v5202_v12 }
 0x3b6   :  { %1207 = vmatprep.subr.bf16.mxu0 %v5203_v13 }
 0x3b9   :  { %1208 = vmatpush2.bf16.msra.mxu0 %v5204_v14 }
 0x3ba   :  { %1209 = vmatprep.subr.bf16.mxu0 %v5205_v15 }
 0x3bd   :  { %1210 = vmatpush2.bf16.msra.mxu0 %v5206_v16 }
 0x3be   :  { %1211 = vmatprep.subr.bf16.mxu0 %v5207_v17 }
 0x3c1   :  { %1212 = vmatpush2.bf16.msra.mxu0 %v5208_v18  ;;  %v5261_v18 = vld [vmem:[#allocation44_spill] sm:$0xff] }
 0x3c2   :  { %1274 = vmatprep.subr.bf16.mxu0 %v5209_v19  ;;  %v5262_v19 = vld [vmem:[#allocation45_spill] sm:$0xff] }
 0x3c4   :  { %v935_v2 = vpop.f32.mrf.mxu0 }
 0x3c5   :  { %v936_v6 = vadd.f32 %v935_v2, %v3510_v1  ;;  %v5277_v2 = vld [vmem:[#allocation56_spill] sm:$0xff] }
 0x3c6   :  { %v937_v3 = vpop.f32.mrf.mxu0 }
 0x3c7   :  { %v938_v8 = vadd.f32 %v937_v3, %v3514_v53  ;;  %v5278_v3 = vld [vmem:[#allocation57_spill] sm:$0xff] }
 0x3c8   :  { %v939_v4 = vpop.f32.mrf.mxu0 }
 0x3c9   :  { %v5279_v4 = vld [vmem:[#allocation2_spill] sm:$0xff] }
 0x3ca   :  { %v940_v5 = vpop.f32.mrf.mxu0 }
 0x3cb   :  { %v3981_v5 = vld [vmem:[%s4833_s1 + $0xc0] ss:$8 sps:$4 sm:$0xff]  }
 0x404   :  { %v1028_v7 = vpop.f32.mrf.mxu0 }
 0x405   :  { %v1035_v9 = vadd.f32 %v1028_v7, %v936_v6  ;;  %v3987_v6 = vld [vmem:[%s4833_s1 + $0xb4] ss:$8 sps:$4 sm:$0xff]   ;;  %v3993_v7 = vld [vmem:[%s4833_s1 + $0xb0] ss:$8 sps:$4 sm:$0xff]  }
 0x406   :  { %v1030_v10 = vpop.f32.mrf.mxu0 }
 0x407   :  { %v1036_v11 = vadd.f32 %v1030_v10, %v938_v8  ;;  %2595 = vtanh.f32 %v1035_v9  ;;  %v3999_v8 = vld [vmem:[%s4833_s1 + $0xa4] ss:$8 sps:$4 sm:$0xff]   ;;  %v4005_v9 = vld [vmem:[%s4833_s1 + $0xa0] ss:$8 sps:$4 sm:$0xff]   ;;  %v4011_v10 = vld [vmem:[%s4833_s1 + $0x94] ss:$8 sps:$4 sm:$0xff]  }
 0x408   :  { %v1032_v12 = vpop.f32.mrf.mxu0 }
 0x409   :  { %2597 = vtanh.f32 %v1036_v11  ;;  %v4017_v11 = vld [vmem:[%s4833_s1 + $0x90] ss:$8 sps:$4 sm:$0xff]   ;;  %v4023_v12 = vld [vmem:[%s4833_s1 + $0x84] ss:$8 sps:$4 sm:$0xff]  }
 0x40a   :  { %v1033_v13 = vpop.f32.mrf.mxu0 }
 0x40b   :  { %v4029_v13 = vld [vmem:[%s4833_s1 + $0x80] ss:$8 sps:$4 sm:$0xff]  }
 0x414   :  { %v2596_v14 = vpop.eup %2595 }
 0x415   :  { %v1039_v17 = vpack.c.bf16 %v2596_v14, %v2596_v14  ;;  %v5280_v14 = vld [vmem:[#allocation13_spill] sm:$0xff] }
 0x416   :  { %v2598_v15 = vpop.eup %2597 }
 0x417   :  { %v1040_v16 = vpack.c.bf16 %v2598_v15, %v2598_v15  ;;  %v5281_v15 = vld [vmem:[#allocation14_spill] sm:$0xff] }
 0x419   :  { %1073 = vmatprep.mubr.bf16.mxu1 %v1040_v16  ;;  %v5282_v16 = vld [vmem:[#allocation15_spill] sm:$0xff] }
 0x41a   :  { %1074 = vmatmul.mubr.bf16.vlgmr.msra.gmra.mxu1 %v1039_v17  ;;  %v5283_v17 = vld [vmem:[#allocation16_spill] sm:$0xff] }
 0x41b   :  { %1135 = vmatpush1.bf16.msra.mxu1 %v5160_v0  ;;  %v5260_v0 = vld [vmem:[#allocation43_spill] sm:$0xff] }
 0x41c   :  { %1136 = vmatprep.subr.bf16.mxu1 %v5210_v60  ;;  %v5263_v60 = vld [vmem:[#allocation46_spill] sm:$0xff] }
 0x41f   :  { %1137 = vmatpush1.bf16.msra.mxu1 %v5211_v61  ;;  %v2284_v61 = vld [vmem:[%s4836_s0 + $0x30] sm:$0xff] }
 0x420   :  { %1138 = vmatprep.subr.bf16.mxu1 %v5212_v62 }
 0x423   :  { %1139 = vmatpush1.bf16.msra.mxu1 %v5213_v54  ;;  %v2285_v54 = vld [vmem:[%s4836_s0 + $0x38] sm:$0xff] }
 0x424   :  { %1140 = vmatprep.subr.bf16.mxu1 %v5214_v57 }
 0x427   :  { %1141 = vmatpush1.bf16.msra.mxu1 %v5215_v23 }
 0x428   :  { %1142 = vmatprep.subr.bf16.mxu1 %v5216_v44 }
 0x42b   :  { %1143 = vmatpush1.bf16.msra.mxu1 %v5217_v24 }
 0x42c   :  { %1144 = vmatprep.subr.bf16.mxu1 %v5218_v48 }
 0x42f   :  { %1145 = vmatpush1.bf16.msra.mxu1 %v5219_v20 }
 0x430   :  { %1146 = vmatprep.subr.bf16.mxu1 %v5220_v21 }
 0x433   :  { %1147 = vmatpush1.bf16.msra.mxu1 %v5221_v22  ;;  %v5271_v22 = vld [vmem:[#allocation50_spill] sm:$0xff] }
 0x434   :  { %1148 = vmatprep.subr.bf16.mxu1 %v5222_v25  ;;  %v5272_v25 = vld [vmem:[#allocation51_spill] sm:$0xff] }
 0x437   :  { %1149 = vmatpush1.bf16.msra.mxu1 %v5223_v26  ;;  %v5273_v26 = vld [vmem:[#allocation52_spill] sm:$0xff] }
 0x438   :  { %1150 = vmatprep.subr.bf16.mxu1 %v5224_v29  ;;  %v5274_v29 = vld [vmem:[#allocation53_spill] sm:$0xff] }
 0x43b   :  { %1151 = vmatpush2.bf16.msra.mxu1 %v5260_v0  ;;  %v5284_v0 = vld [vmem:[#allocation17_spill] sm:$0xff] }
 0x43c   :  { %1152 = vmatprep.subr.bf16.mxu1 %v5261_v18  ;;  %v4050_v18 = vld [vmem:[%s4834_s3] ss:$8 sps:$4 sm:$0xff]  }
 0x43d   :  { %5285 = vst [vmem:[#allocation22_spill] sm:$0xff] %v4050_v18 }
 0x43f   :  { %1153 = vmatpush2.bf16.msra.mxu1 %v5262_v19  ;;  %v4056_v19 = vld [vmem:[%s4834_s3 + $0xf4] ss:$8 sps:$4 sm:$0xff]  }
 0x440   :  { %1154 = vmatprep.subr.bf16.mxu1 %v5263_v60  ;;  %5286 = vst [vmem:[#allocation23_spill] sm:$0xff] %v4056_v19  ;;  %v4062_v60 = vld [vmem:[%s4834_s3 + $0xf0] ss:$8 sps:$4 sm:$0xff]  }
 0x441   :  { %5287 = vst [vmem:[#allocation24_spill] sm:$0xff] %v4062_v60 }
 0x443   :  { %1155 = vmatpush2.bf16.msra.mxu1 %v5229_v39  ;;  %v5275_v39 = vld [vmem:[#allocation54_spill] sm:$0xff] }
 0x444   :  { %v1121_v62 = vpop.f32.mrf.mxu0  ;;  %1156 = vmatprep.subr.bf16.mxu1 %v5230_v27  ;;  %v5276_v27 = vld [vmem:[#allocation55_spill] sm:$0xff] }
 0x445   :  { %v1128_v57 = vadd.f32 %v2284_v61, %v1121_v62  ;;  %v4068_v61 = vld [vmem:[%s4834_s3 + $0xe4] ss:$8 sps:$4 sm:$0xff]   ;;  %v4074_v62 = vld [vmem:[%s4834_s3 + $0xe0] ss:$8 sps:$4 sm:$0xff]  }
 0x446   :  { %v1123_v23 = vpop.f32.mrf.mxu0  ;;  %5288 = vst [vmem:[#allocation25_spill] sm:$0xff] %v4068_v61  ;;  %5289 = vst [vmem:[#allocation26_spill] sm:$0xff] %v4074_v62 }
 0x447   :  { %v1129_v44 = vadd.f32 %v2285_v54, %v1123_v23  ;;  %1157 = vmatpush2.bf16.msra.mxu1 %v5182_v43  ;;  %2599 = vtanh.f32 %v1128_v57  ;;  %v4080_v54 = vld [vmem:[%s4834_s3 + $0xd4] ss:$8 sps:$4 sm:$0xff]   ;;  %v4086_v57 = vld [vmem:[%s4834_s3 + $0xd0] ss:$8 sps:$4 sm:$0xff]   ;;  %v4092_v23 = vld [vmem:[%s4834_s3 + $0xc4] ss:$8 sps:$4 sm:$0xff]  }
 0x448   :  { %v1125_v24 = vpop.f32.mrf.mxu0  ;;  %1158 = vmatprep.subr.bf16.mxu1 %v5183_v47  ;;  %5290 = vst [vmem:[#allocation28_spill] sm:$0xff] %v4080_v54  ;;  %5291 = vst [vmem:[#allocation29_spill] sm:$0xff] %v4086_v57 }
 0x449   :  { %2601 = vtanh.f32 %v1129_v44  ;;  %5292 = vst [vmem:[#allocation30_spill] sm:$0xff] %v4092_v23  ;;  %v4098_v44 = vld [vmem:[%s4834_s3 + $0xc0] ss:$8 sps:$4 sm:$0xff]   ;;  %v4104_v24 = vld [vmem:[%s4834_s3 + $0xb4] ss:$8 sps:$4 sm:$0xff]  }
 0x44a   :  { %v1126_v48 = vpop.f32.mrf.mxu0  ;;  %5293 = vst [vmem:[#allocation31_spill] sm:$0xff] %v4098_v44  ;;  %5294 = vst [vmem:[#allocation32_spill] sm:$0xff] %v4104_v24 }
 0x44b   :  { %1159 = vmatpush2.bf16.msra.mxu1 %v5184_v31  ;;  %v5266_v31 = vld [vmem:[#allocation6_spill] sm:$0xff]  ;;  %v4110_v48 = vld [vmem:[%s4834_s3 + $0xb0] ss:$8 sps:$4 sm:$0xff]  }
 0x44c   :  { %1160 = vmatprep.subr.bf16.mxu1 %v5185_v52  ;;  %v5267_v52 = vld [vmem:[#allocation7_spill] sm:$0xff]  ;;  %5295 = vst [vmem:[#allocation33_spill] sm:$0xff] %v4110_v48 }
 0x44f   :  { %1161 = vmatpush2.bf16.msra.mxu1 %v5186_v63  ;;  %v5264_v63 = vld [vmem:[#allocation4_spill] sm:$0xff] }
 0x450   :  { %1162 = vmatprep.subr.bf16.mxu1 %v5187_v59  ;;  %v5265_v59 = vld [vmem:[#allocation5_spill] sm:$0xff] }
 0x453   :  { %1163 = vmatpush2.bf16.msra.mxu1 %v5188_v55  ;;  %v5268_v55 = vld [vmem:[#allocation8_spill] sm:$0xff] }
 0x454   :  { %1164 = vmatprep.subr.bf16.mxu1 %v5189_v56  ;;  %v2600_v20 = vpop.eup %2599  ;;  %v5269_v56 = vld [vmem:[#allocation27_spill] sm:$0xff] }
 0x455   :  { %v1132_v47 = vpack.c.bf16 %v2600_v20, %v2600_v20  ;;  %v4116_v20 = vld [vmem:[%s4834_s3 + $0xa4] ss:$8 sps:$4 sm:$0xff]  }
 0x456   :  { %v2602_v43 = vpop.eup %2601  ;;  %5296 = vst [vmem:[#allocation34_spill] sm:$0xff] %v4116_v20 }
 0x457   :  { %1165 = vmatpush2.bf16.msra.mxu1 %v5190_v58  ;;  %v1133_v21 = vpack.c.bf16 %v2602_v43, %v2602_v43  ;;  %v5270_v58 = vld [vmem:[#allocation49_spill] sm:$0xff]  ;;  %v4122_v43 = vld [vmem:[%s4834_s3 + $0xa0] ss:$8 sps:$4 sm:$0xff]  }
 0x458   :  { %1227 = vmatprep.subr.bf16.mxu1 %v3664_v33  ;;  %5297 = vst [vmem:[#allocation35_spill] sm:$0xff] %v4122_v43 }
 0x459   :  { %1166 = vmatprep.mubr.bf16.mxu1 %v1133_v21 }
 0x45a   :  { %1167 = vmatmul.mubr.bf16.vlgmr.msra.gmra.mxu1 %v1132_v47 }
 0x45b   :  { %1228 = vmatpush1.bf16.msra.mxu1 %v3670_v34  ;;  %1259 = vmatprep.mubr.bf16.mxu1 %v1133_v21  ;;  %v4128_v21 = vld [vmem:[%s4834_s3 + $0x94] ss:$8 sps:$4 sm:$0xff]  }
 0x45c   :  { %1229 = vmatprep.subr.bf16.mxu1 %v3676_v28  ;;  %5298 = vst [vmem:[#allocation36_spill] sm:$0xff] %v4128_v21 }
 0x45f   :  { %1230 = vmatpush1.bf16.msra.mxu1 %v5264_v63 }
 0x460   :  { %1231 = vmatprep.subr.bf16.mxu1 %v5265_v59 }
 0x463   :  { %1232 = vmatpush1.bf16.msra.mxu1 %v5266_v31 }
 0x464   :  { %1233 = vmatprep.subr.bf16.mxu1 %v5267_v52 }
 0x467   :  { %1234 = vmatpush1.bf16.msra.mxu1 %v5268_v55 }
 0x468   :  { %1235 = vmatprep.subr.bf16.mxu1 %v5269_v56 }
 0x46b   :  { %1236 = vmatpush1.bf16.msra.mxu1 %v5270_v58 }
 0x46c   :  { %1237 = vmatprep.subr.bf16.mxu1 %v5271_v22 }
 0x46f   :  { %1238 = vmatpush1.bf16.msra.mxu1 %v5272_v25 }
 0x470   :  { %1239 = vmatprep.subr.bf16.mxu1 %v5273_v26 }
 0x473   :  { %1240 = vmatpush1.bf16.msra.mxu1 %v5274_v29 }
 0x474   :  { %1241 = vmatprep.subr.bf16.mxu1 %v5275_v39 }
 0x477   :  { %1242 = vmatpush1.bf16.msra.mxu1 %v5276_v27 }
 0x478   :  { %1243 = vmatprep.subr.bf16.mxu1 %v5277_v2 }
 0x47b   :  { %1244 = vmatpush2.bf16.msra.mxu1 %v5278_v3 }
 0x47c   :  { %1245 = vmatprep.subr.bf16.mxu1 %v5279_v4 }
 0x47f   :  { %1246 = vmatpush2.bf16.msra.mxu1 %v3778_v32 }
 0x480   :  { %1247 = vmatprep.subr.bf16.mxu1 %v3784_v30 }
 0x483   :  { %1248 = vmatpush2.bf16.msra.mxu1 %v3790_v36 }
 0x484   :  { %1249 = vmatprep.subr.bf16.mxu1 %v3796_v35 }
 0x487   :  { %1250 = vmatpush2.bf16.msra.mxu1 %v3981_v5 }
 0x488   :  { %1251 = vmatprep.subr.bf16.mxu1 %v3987_v6 }
 0x48b   :  { %1252 = vmatpush2.bf16.msra.mxu1 %v3993_v7 }
 0x48c   :  { %1253 = vmatprep.subr.bf16.mxu1 %v3999_v8 }
 0x48f   :  { %1254 = vmatpush2.bf16.msra.mxu1 %v4005_v9 }
 0x490   :  { %1255 = vmatprep.subr.bf16.mxu1 %v4011_v10 }
 0x493   :  { %1256 = vmatpush2.bf16.msra.mxu1 %v4017_v11 }
 0x494   :  { %1257 = vmatprep.subr.bf16.mxu1 %v4023_v12 }
 0x497   :  { %1258 = vmatpush2.bf16.msra.mxu1 %v4029_v13 }
 0x498   :  { %1321 = vmatprep.subr.bf16.mxu1 %v3811_v37 }
 0x49a   :  { %1260 = vmatmul.mubr.bf16.vlgmr.msra.gmra.mxu1 %v1132_v47  ;;  %v4134_v47 = vld [vmem:[%s4834_s3 + $0x90] ss:$8 sps:$4 sm:$0xff]  }
 0x49b   :  { %1322 = vmatpush1.bf16.msra.mxu1 %v3817_v38  ;;  %5299 = vst [vmem:[#allocation37_spill] sm:$0xff] %v4134_v47 }
 0x49c   :  { %1323 = vmatprep.subr.bf16.mxu1 %v3823_v41 }
 0x49f   :  { %1324 = vmatpush1.bf16.msra.mxu1 %v3829_v42 }
 0x4a0   :  { %1325 = vmatprep.subr.bf16.mxu1 %v3835_v45 }
 0x4a3   :  { %1326 = vmatpush1.bf16.msra.mxu1 %v3841_v46 }
 0x4a4   :  { %1327 = vmatprep.subr.bf16.mxu1 %v5280_v14 }
 0x4a7   :  { %1328 = vmatpush1.bf16.msra.mxu1 %v5281_v15 }
 0x4a8   :  { %1329 = vmatprep.subr.bf16.mxu1 %v5282_v16 }
 0x4ab   :  { %1330 = vmatpush1.bf16.msra.mxu1 %v5283_v17 }
 0x4ac   :  { %1331 = vmatprep.subr.bf16.mxu1 %v5284_v0 }
 0x4af   :  { %1332 = vmatpush1.bf16.msra.mxu1 %v3877_v50 }
 0x4b0   :  { %1333 = vmatprep.subr.bf16.mxu1 %v3883_v51 }
 0x4b3   :  { %1334 = vmatpush1.bf16.msra.mxu1 %v3889_v40 }
 0x4b4   :  { %1335 = vmatprep.subr.bf16.mxu1 %v3895_v49 }
 0x4b7   :  { %1336 = vmatpush1.bf16.msra.mxu1 %v4050_v18 }
 0x4b8   :  { %1337 = vmatprep.subr.bf16.mxu1 %v4056_v19 }
 0x4bb   :  { %1338 = vmatpush2.bf16.msra.mxu1 %v4062_v60 }
 0x4bc   :  { %1339 = vmatprep.subr.bf16.mxu1 %v4068_v61 }
 0x4bf   :  { %1340 = vmatpush2.bf16.msra.mxu1 %v4074_v62 }
 0x4c0   :  { %1341 = vmatprep.subr.bf16.mxu1 %v4080_v54 }
 0x4c3   :  { %1342 = vmatpush2.bf16.msra.mxu1 %v4086_v57 }
 0x4c4   :  { %1343 = vmatprep.subr.bf16.mxu1 %v4092_v23 }
 0x4c7   :  { %1344 = vmatpush2.bf16.msra.mxu1 %v4098_v44 }
 0x4c8   :  { %1345 = vmatprep.subr.bf16.mxu1 %v4104_v24 }
 0x4cb   :  { %1346 = vmatpush2.bf16.msra.mxu1 %v4110_v48 }
 0x4cc   :  { %1347 = vmatprep.subr.bf16.mxu1 %v4116_v20  ;;  %v4140_v20 = vld [vmem:[%s4834_s3 + $0x84] ss:$8 sps:$4 sm:$0xff]  }
 0x4cd   :  { %5300 = vst [vmem:[#allocation38_spill] sm:$0xff] %v4140_v20 }
 0x4cf   :  { %1348 = vmatpush2.bf16.msra.mxu1 %v4122_v43  ;;  %v4146_v43 = vld [vmem:[%s4834_s3 + $0x80] ss:$8 sps:$4 sm:$0xff]  }
 0x4d0   :  { %1349 = vmatprep.subr.bf16.mxu1 %v4128_v21  ;;  %5301 = vst [vmem:[#allocation39_spill] sm:$0xff] %v4146_v43  ;;  %v4152_v21 = vld [vmem:[%s4835_s2 + $0x74] ss:$8 sps:$4 sm:$0xff]  }
 0x4d1   :  { %5302 = vst [vmem:[#allocation40_spill] sm:$0xff] %v4152_v21 }
 0x4d3   :  { %1350 = vmatpush2.bf16.msra.mxu1 %v4134_v47 }
 0x4d4   :  { %1351 = vmatprep.subr.bf16.mxu1 %v4140_v20 }
 0x4d7   :  { %1352 = vmatpush2.bf16.msra.mxu1 %v4146_v43 }
 0x4d8   :  { %1414 = vmatprep.subr.bf16.mxu1 %v4152_v21 }
 0x4da   :  { %v1075_v47 = vpop.f32.mrf.mxu1 }
 0x4db   :  { %v1076_v20 = vadd.f32 %v1075_v47, %v3510_v1  ;;  %v4250_v47 = vld [vmem:[%s4835_s2 + $0xf4] ss:$8 sps:$4 sm:$0xff]  }
 0x4dc   :  { %v1077_v48 = vpop.f32.mrf.mxu1  ;;  %5311 = vst [vmem:[#allocation4_spill] sm:$0xff] %v4250_v47 }
 0x4dd   :  { %v1078_v57 = vadd.f32 %v1077_v48, %v3514_v53  ;;  %v4226_v48 = vld [vmem:[%s4835_s2 + $0x14] ss:$8 sps:$4 sm:$0xff]  }
 0x4de   :  { %v1079_v24 = vpop.f32.mrf.mxu1  ;;  %5307 = vst [vmem:[#allocation43_spill] sm:$0xff] %v4226_v48 }
 0x4df   :  { %v4220_v24 = vld [vmem:[%s4835_s2 + $0x20] ss:$8 sps:$4 sm:$0xff]  }
 0x4e0   :  { %v1080_v44 = vpop.f32.mrf.mxu1  ;;  %5306 = vst [vmem:[#allocation48_spill] sm:$0xff] %v4220_v24 }
 0x4e1   :  { %v4160_v44 = vld [vmem:[%s4835_s2 + $0x70] ss:$8 sps:$4 sm:$0xff]  }
 0x51a   :  { %v1168_v23 = vpop.f32.mrf.mxu1 }
 0x51b   :  { %v1175_v54 = vadd.f32 %v1168_v23, %v1076_v20  ;;  %v4214_v23 = vld [vmem:[%s4835_s2 + $0x24] ss:$8 sps:$4 sm:$0xff]   ;;  %v4232_v20 = vld [vmem:[%s4835_s2 + $0x10] ss:$8 sps:$4 sm:$0xff]  }
 0x51c   :  { %v1170_v62 = vpop.f32.mrf.mxu1  ;;  %5305 = vst [vmem:[#allocation47_spill] sm:$0xff] %v4214_v23  ;;  %5308 = vst [vmem:[#allocation44_spill] sm:$0xff] %v4232_v20 }
 0x51d   :  { %v1176_v61 = vadd.f32 %v1170_v62, %v1078_v57  ;;  %2603 = vtanh.f32 %v1175_v54  ;;  %v4166_v62 = vld [vmem:[%s4835_s2 + $0x64] ss:$8 sps:$4 sm:$0xff]   ;;  %v4202_v54 = vld [vmem:[%s4835_s2 + $0x34] ss:$8 sps:$4 sm:$0xff]   ;;  %v4208_v57 = vld [vmem:[%s4835_s2 + $0x30] ss:$8 sps:$4 sm:$0xff]  }
 0x51e   :  { %v1172_v43 = vpop.f32.mrf.mxu1  ;;  %5303 = vst [vmem:[#allocation41_spill] sm:$0xff] %v4202_v54  ;;  %5304 = vst [vmem:[#allocation42_spill] sm:$0xff] %v4208_v57 }
 0x51f   :  { %2605 = vtanh.f32 %v1176_v61  ;;  %v4196_v61 = vld [vmem:[%s4835_s2 + $0x40] ss:$8 sps:$4 sm:$0xff]   ;;  %v4238_v43 = vld [vmem:[%s4835_s2 + $0x4] ss:$8 sps:$4 sm:$0xff]  }
 0x520   :  { %v1173_v60 = vpop.f32.mrf.mxu1  ;;  %5309 = vst [vmem:[#allocation45_spill] sm:$0xff] %v4238_v43 }
 0x521   :  { %v4190_v60 = vld [vmem:[%s4835_s2 + $0x44] ss:$8 sps:$4 sm:$0xff]  }
 0x52a   :  { %v2604_v19 = vpop.eup %2603 }
 0x52b   :  { %v1179_v21 = vpack.c.bf16 %v2604_v19, %v2604_v19  ;;  %v4184_v19 = vld [vmem:[%s4835_s2 + $0x50] ss:$8 sps:$4 sm:$0xff]  }
 0x52c   :  { %v2606_v18 = vpop.eup %2605 }
 0x52d   :  { %v1180_v49 = vpack.c.bf16 %v2606_v18, %v2606_v18  ;;  %v4172_v18 = vld [vmem:[%s4835_s2 + $0x60] ss:$8 sps:$4 sm:$0xff]  }
 0x52f   :  { %1213 = vmatprep.mubr.bf16.mxu0 %v1180_v49  ;;  %v4178_v49 = vld [vmem:[%s4835_s2 + $0x54] ss:$8 sps:$4 sm:$0xff]  }
 0x530   :  { %1214 = vmatmul.mubr.bf16.vlgmr.msra.gmra.mxu0 %v1179_v21  ;;  %v4244_v21 = vld [vmem:[%s4835_s2] ss:$8 sps:$4 sm:$0xff]  }
 0x531   :  { %1275 = vmatpush1.bf16.msra.mxu0 %v4160_v44  ;;  %5310 = vst [vmem:[#allocation46_spill] sm:$0xff] %v4244_v21 }
 0x532   :  { %1276 = vmatprep.subr.bf16.mxu0 %v4166_v62 }
 0x535   :  { %1277 = vmatpush1.bf16.msra.mxu0 %v4172_v18 }
 0x536   :  { %1278 = vmatprep.subr.bf16.mxu0 %v4178_v49 }
 0x539   :  { %1279 = vmatpush1.bf16.msra.mxu0 %v4184_v19 }
 0x53a   :  { %1280 = vmatprep.subr.bf16.mxu0 %v4190_v60 }
 0x53d   :  { %1281 = vmatpush1.bf16.msra.mxu0 %v4196_v61 }
 0x53e   :  { %1282 = vmatprep.subr.bf16.mxu0 %v4202_v54  ;;  %v4298_v54 = vld [vmem:[%s4835_s2 + $0xc0] ss:$8 sps:$4 sm:$0xff]  }
 0x541   :  { %1283 = vmatpush1.bf16.msra.mxu0 %v4208_v57 }
 0x542   :  { %1284 = vmatprep.subr.bf16.mxu0 %v4214_v23 }
 0x545   :  { %1285 = vmatpush1.bf16.msra.mxu0 %v4220_v24 }
 0x546   :  { %1286 = vmatprep.subr.bf16.mxu0 %v4226_v48 }
 0x549   :  { %1287 = vmatpush1.bf16.msra.mxu0 %v4232_v20  ;;  %v4256_v20 = vld [vmem:[%s4835_s2 + $0xf0] ss:$8 sps:$4 sm:$0xff]  }
 0x54a   :  { %1288 = vmatprep.subr.bf16.mxu0 %v4238_v43  ;;  %5312 = vst [vmem:[#allocation5_spill] sm:$0xff] %v4256_v20  ;;  %v4262_v43 = vld [vmem:[%s4835_s2 + $0xe4] ss:$8 sps:$4 sm:$0xff]  }
 0x54b   :  { %5313 = vst [vmem:[#allocation6_spill] sm:$0xff] %v4262_v43 }
 0x54d   :  { %1289 = vmatpush1.bf16.msra.mxu0 %v4244_v21  ;;  %v4268_v21 = vld [vmem:[%s4835_s2 + $0xe0] ss:$8 sps:$4 sm:$0xff]  }
 0x54e   :  { %1290 = vmatprep.subr.bf16.mxu0 %v4250_v47  ;;  %5314 = vst [vmem:[#allocation7_spill] sm:$0xff] %v4268_v21  ;;  %v4274_v47 = vld [vmem:[%s4835_s2 + $0xd4] ss:$8 sps:$4 sm:$0xff]  }
 0x54f   :  { %5315 = vst [vmem:[#allocation8_spill] sm:$0xff] %v4274_v47 }
 0x551   :  { %1291 = vmatpush2.bf16.msra.mxu0 %v4256_v20  ;;  %v2286_v20 = vld [vmem:[%s4836_s0 + $0x40] sm:$0xff] }
 0x552   :  { %1292 = vmatprep.subr.bf16.mxu0 %v4262_v43  ;;  %v4283_v43 = vld [vmem:[%s4835_s2 + $0xd0] ss:$8 sps:$4 sm:$0xff]  }
 0x553   :  { %5316 = vst [vmem:[#allocation27_spill] sm:$0xff] %v4283_v43 }
 0x555   :  { %1293 = vmatpush2.bf16.msra.mxu0 %v4268_v21  ;;  %v4289_v21 = vld [vmem:[%s4835_s2 + $0xc4] ss:$8 sps:$4 sm:$0xff]  }
 0x556   :  { %1294 = vmatprep.subr.bf16.mxu0 %v4274_v47  ;;  %5317 = vst [vmem:[#allocation49_spill] sm:$0xff] %v4289_v21  ;;  %v2287_v47 = vld [vmem:[%s4836_s0 + $0x48] sm:$0xff] }
 0x559   :  { %1295 = vmatpush2.bf16.msra.mxu0 %v4283_v43 }
 0x55a   :  { %v1261_v48 = vpop.f32.mrf.mxu1  ;;  %1296 = vmatprep.subr.bf16.mxu0 %v4289_v21  ;;  %v4304_v21 = vld [vmem:[%s4835_s2 + $0xb4] ss:$8 sps:$4 sm:$0xff]  }
 0x55b   :  { %v1268_v24 = vadd.f32 %v2286_v20, %v1261_v48  ;;  %v4322_v20 = vld [vmem:[%s4835_s2 + $0xa0] ss:$8 sps:$4 sm:$0xff]  }
 0x55c   :  { %v1263_v23 = vpop.f32.mrf.mxu1  ;;  %5320 = vst [vmem:[#allocation52_spill] sm:$0xff] %v4322_v20 }
 0x55d   :  { %v1269_v57 = vadd.f32 %v2287_v47, %v1263_v23  ;;  %1297 = vmatpush2.bf16.msra.mxu0 %v4298_v54  ;;  %2607 = vtanh.f32 %v1268_v24  ;;  %v4310_v23 = vld [vmem:[%s4835_s2 + $0xb0] ss:$8 sps:$4 sm:$0xff]   ;;  %v4316_v24 = vld [vmem:[%s4835_s2 + $0xa4] ss:$8 sps:$4 sm:$0xff]  }
 0x55e   :  { %v1265_v43 = vpop.f32.mrf.mxu1  ;;  %1298 = vmatprep.subr.bf16.mxu0 %v4304_v21  ;;  %5318 = vst [vmem:[#allocation50_spill] sm:$0xff] %v4310_v23  ;;  %5319 = vst [vmem:[#allocation51_spill] sm:$0xff] %v4316_v24  ;;  %v4340_v47 = vld [vmem:[%s4835_s2 + $0x84] ss:$8 sps:$4 sm:$0xff]  }
 0x55f   :  { %2609 = vtanh.f32 %v1269_v57  ;;  %v4328_v57 = vld [vmem:[%s4835_s2 + $0x94] ss:$8 sps:$4 sm:$0xff]   ;;  %v4334_v43 = vld [vmem:[%s4835_s2 + $0x90] ss:$8 sps:$4 sm:$0xff]  }
 0x560   :  { %v1266_v48 = vpop.f32.mrf.mxu1  ;;  %5321 = vst [vmem:[#allocation53_spill] sm:$0xff] %v4328_v57 }
 0x561   :  { %1299 = vmatpush2.bf16.msra.mxu0 %v4310_v23 }
 0x562   :  { %1300 = vmatprep.subr.bf16.mxu0 %v4316_v24 }
 0x565   :  { %1301 = vmatpush2.bf16.msra.mxu0 %v4322_v20 }
 0x566   :  { %1302 = vmatprep.subr.bf16.mxu0 %v4328_v57  ;;  %v4346_v57 = vld [vmem:[%s4835_s2 + $0x80] ss:$8 sps:$4 sm:$0xff]  }
 0x569   :  { %1303 = vmatpush2.bf16.msra.mxu0 %v4334_v43 }
 0x56a   :  { %1304 = vmatprep.subr.bf16.mxu0 %v4340_v47  ;;  %v2608_v48 = vpop.eup %2607 }
 0x56b   :  { %v1272_v23 = vpack.c.bf16 %v2608_v48, %v2608_v48  ;;  %v5325_v48 = vld [vmem:[#allocation24_spill] sm:$0xff] }
 0x56c   :  { %v2610_v20 = vpop.eup %2609 }
 0x56d   :  { %1305 = vmatpush2.bf16.msra.mxu0 %v4346_v57  ;;  %v1273_v24 = vpack.c.bf16 %v2610_v20, %v2610_v20  ;;  %v5324_v20 = vld [vmem:[#allocation23_spill] sm:$0xff] }
 0x56e   :  { %1367 = vmatprep.subr.bf16.mxu0 %v3664_v33 }
 0x56f   :  { %1306 = vmatprep.mubr.bf16.mxu0 %v1273_v24 }
 0x570   :  { %1307 = vmatmul.mubr.bf16.vlgmr.msra.gmra.mxu0 %v1272_v23 }
 0x571   :  { %1368 = vmatpush1.bf16.msra.mxu0 %v3670_v34  ;;  %1399 = vmatprep.mubr.bf16.mxu0 %v1273_v24  ;;  %v5323_v24 = vld [vmem:[#allocation22_spill] sm:$0xff] }
 0x572   :  { %1369 = vmatprep.subr.bf16.mxu0 %v3676_v28 }
 0x575   :  { %1370 = vmatpush1.bf16.msra.mxu0 %v5264_v63 }
 0x576   :  { %1371 = vmatprep.subr.bf16.mxu0 %v5265_v59 }
 0x579   :  { %1372 = vmatpush1.bf16.msra.mxu0 %v5266_v31 }
 0x57a   :  { %1373 = vmatprep.subr.bf16.mxu0 %v5267_v52 }
 0x57d   :  { %1374 = vmatpush1.bf16.msra.mxu0 %v5268_v55 }
 0x57e   :  { %1375 = vmatprep.subr.bf16.mxu0 %v5269_v56 }
 0x581   :  { %1376 = vmatpush1.bf16.msra.mxu0 %v5270_v58 }
 0x582   :  { %1377 = vmatprep.subr.bf16.mxu0 %v5271_v22 }
 0x585   :  { %1378 = vmatpush1.bf16.msra.mxu0 %v5272_v25 }
 0x586   :  { %1379 = vmatprep.subr.bf16.mxu0 %v5273_v26 }
 0x589   :  { %1380 = vmatpush1.bf16.msra.mxu0 %v5274_v29 }
 0x58a   :  { %1381 = vmatprep.subr.bf16.mxu0 %v5275_v39 }
 0x58d   :  { %1382 = vmatpush1.bf16.msra.mxu0 %v5276_v27 }
 0x58e   :  { %1383 = vmatprep.subr.bf16.mxu0 %v5277_v2 }
 0x591   :  { %1384 = vmatpush2.bf16.msra.mxu0 %v5278_v3 }
 0x592   :  { %1385 = vmatprep.subr.bf16.mxu0 %v5279_v4 }
 0x595   :  { %1386 = vmatpush2.bf16.msra.mxu0 %v3778_v32 }
 0x596   :  { %1387 = vmatprep.subr.bf16.mxu0 %v3784_v30 }
 0x599   :  { %1388 = vmatpush2.bf16.msra.mxu0 %v3790_v36 }
 0x59a   :  { %1389 = vmatprep.subr.bf16.mxu0 %v3796_v35 }
 0x59d   :  { %1390 = vmatpush2.bf16.msra.mxu0 %v3981_v5 }
 0x59e   :  { %1391 = vmatprep.subr.bf16.mxu0 %v3987_v6 }
 0x5a1   :  { %1392 = vmatpush2.bf16.msra.mxu0 %v3993_v7 }
 0x5a2   :  { %1393 = vmatprep.subr.bf16.mxu0 %v3999_v8 }
 0x5a5   :  { %1394 = vmatpush2.bf16.msra.mxu0 %v4005_v9 }
 0x5a6   :  { %1395 = vmatprep.subr.bf16.mxu0 %v4011_v10 }
 0x5a9   :  { %1396 = vmatpush2.bf16.msra.mxu0 %v4017_v11 }
 0x5aa   :  { %1397 = vmatprep.subr.bf16.mxu0 %v4023_v12 }
 0x5ad   :  { %1398 = vmatpush2.bf16.msra.mxu0 %v4029_v13 }
 0x5ae   :  { %1461 = vmatprep.subr.bf16.mxu0 %v3811_v37 }
 0x5b0   :  { %1400 = vmatmul.mubr.bf16.vlgmr.msra.gmra.mxu0 %v1272_v23  ;;  %v5322_v23 = vld [vmem:[#allocation21_spill] sm:$0xff] }
 0x5b1   :  { %1462 = vmatpush1.bf16.msra.mxu0 %v3817_v38 }
 0x5b2   :  { %1463 = vmatprep.subr.bf16.mxu0 %v3823_v41 }
 0x5b5   :  { %1464 = vmatpush1.bf16.msra.mxu0 %v3829_v42 }
 0x5b6   :  { %1465 = vmatprep.subr.bf16.mxu0 %v3835_v45 }
 0x5b9   :  { %1466 = vmatpush1.bf16.msra.mxu0 %v3841_v46 }
 0x5ba   :  { %1467 = vmatprep.subr.bf16.mxu0 %v5280_v14 }
 0x5bd   :  { %1468 = vmatpush1.bf16.msra.mxu0 %v5281_v15  ;;  %v5326_v15 = vld [vmem:[#allocation25_spill] sm:$0xff] }
 0x5be   :  { %1469 = vmatprep.subr.bf16.mxu0 %v5282_v16  ;;  %v5327_v16 = vld [vmem:[#allocation26_spill] sm:$0xff] }
 0x5c1   :  { %1470 = vmatpush1.bf16.msra.mxu0 %v5283_v17  ;;  %v5328_v17 = vld [vmem:[#allocation28_spill] sm:$0xff] }
 0x5c2   :  { %1471 = vmatprep.subr.bf16.mxu0 %v5284_v0  ;;  %v5329_v0 = vld [vmem:[#allocation29_spill] sm:$0xff] }
 0x5c5   :  { %1472 = vmatpush1.bf16.msra.mxu0 %v3877_v50  ;;  %v5330_v50 = vld [vmem:[#allocation30_spill] sm:$0xff] }
 0x5c6   :  { %1473 = vmatprep.subr.bf16.mxu0 %v3883_v51  ;;  %v5331_v51 = vld [vmem:[#allocation31_spill] sm:$0xff] }
 0x5c9   :  { %1474 = vmatpush1.bf16.msra.mxu0 %v3889_v40  ;;  %v5332_v40 = vld [vmem:[#allocation32_spill] sm:$0xff] }
 0x5ca   :  { %1475 = vmatprep.subr.bf16.mxu0 %v5322_v23  ;;  %v5333_v23 = vld [vmem:[#allocation33_spill] sm:$0xff] }
 0x5cd   :  { %1476 = vmatpush1.bf16.msra.mxu0 %v5323_v24  ;;  %v5334_v24 = vld [vmem:[#allocation34_spill] sm:$0xff] }
 0x5ce   :  { %1477 = vmatprep.subr.bf16.mxu0 %v5324_v20  ;;  %v5335_v20 = vld [vmem:[#allocation35_spill] sm:$0xff] }
 0x5d1   :  { %1478 = vmatpush2.bf16.msra.mxu0 %v5325_v48  ;;  %v5336_v48 = vld [vmem:[#allocation36_spill] sm:$0xff] }
 0x5d2   :  { %1479 = vmatprep.subr.bf16.mxu0 %v5326_v15  ;;  %v5337_v15 = vld [vmem:[#allocation37_spill] sm:$0xff] }
 0x5d5   :  { %1480 = vmatpush2.bf16.msra.mxu0 %v5327_v16  ;;  %v5338_v16 = vld [vmem:[#allocation38_spill] sm:$0xff] }
 0x5d6   :  { %1481 = vmatprep.subr.bf16.mxu0 %v5328_v17  ;;  %v5339_v17 = vld [vmem:[#allocation39_spill] sm:$0xff] }
 0x5d9   :  { %1482 = vmatpush2.bf16.msra.mxu0 %v5329_v0  ;;  %v5340_v0 = vld [vmem:[#allocation40_spill] sm:$0xff] }
 0x5da   :  { %1483 = vmatprep.subr.bf16.mxu0 %v5330_v50 }
 0x5dd   :  { %1484 = vmatpush2.bf16.msra.mxu0 %v5331_v51 }
 0x5de   :  { %1485 = vmatprep.subr.bf16.mxu0 %v5332_v40 }
 0x5e1   :  { %1486 = vmatpush2.bf16.msra.mxu0 %v5333_v23 }
 0x5e2   :  { %1487 = vmatprep.subr.bf16.mxu0 %v5334_v24 }
 0x5e5   :  { %1488 = vmatpush2.bf16.msra.mxu0 %v5335_v20 }
 0x5e6   :  { %1489 = vmatprep.subr.bf16.mxu0 %v5336_v48 }
 0x5e9   :  { %1490 = vmatpush2.bf16.msra.mxu0 %v5337_v15 }
 0x5ea   :  { %1491 = vmatprep.subr.bf16.mxu0 %v5338_v16 }
 0x5ed   :  { %1492 = vmatpush2.bf16.msra.mxu0 %v5339_v17 }
 0x5ee   :  { %1554 = vmatprep.subr.bf16.mxu0 %v5340_v0 }
 0x5f0   :  { %v1215_v50 = vpop.f32.mrf.mxu0 }
 0x5f1   :  { %v1216_v23 = vadd.f32 %v1215_v50, %v3510_v1  ;;  %v5345_v50 = vld [vmem:[#allocation43_spill] sm:$0xff] }
 0x5f2   :  { %v1217_v51 = vpop.f32.mrf.mxu0 }
 0x5f3   :  { %v1218_v24 = vadd.f32 %v1217_v51, %v3514_v53  ;;  %v5346_v51 = vld [vmem:[#allocation44_spill] sm:$0xff] }
 0x5f4   :  { %v1219_v14 = vpop.f32.mrf.mxu0 }
 0x5f5   :  { %v5348_v14 = vld [vmem:[#allocation46_spill] sm:$0xff] }
 0x5f6   :  { %v1220_v40 = vpop.f32.mrf.mxu0 }
 0x5f7   :  { %v5347_v40 = vld [vmem:[#allocation45_spill] sm:$0xff] }
 0x630   :  { %v1308_v46 = vpop.f32.mrf.mxu0 }
 0x631   :  { %v1315_v20 = vadd.f32 %v1308_v46, %v1216_v23  ;;  %v5342_v46 = vld [vmem:[#allocation42_spill] sm:$0xff]  ;;  %v5353_v23 = vld [vmem:[#allocation8_spill] sm:$0xff] }
 0x632   :  { %v1310_v45 = vpop.f32.mrf.mxu0 }
 0x633   :  { %v1316_v48 = vadd.f32 %v1310_v45, %v1218_v24  ;;  %2611 = vtanh.f32 %v1315_v20  ;;  %v5341_v45 = vld [vmem:[#allocation41_spill] sm:$0xff]  ;;  %v2288_v24 = vld [vmem:[%s4836_s0 + $0x50] sm:$0xff]  ;;  %v5354_v20 = vld [vmem:[#allocation27_spill] sm:$0xff] }
 0x634   :  { %v1312_v15 = vpop.f32.mrf.mxu0 }
 0x635   :  { %2613 = vtanh.f32 %v1316_v48  ;;  %v5349_v15 = vld [vmem:[#allocation4_spill] sm:$0xff] }
 0x636   :  { %v1313_v16 = vpop.f32.mrf.mxu0 }
 0x637   :  { %v5350_v16 = vld [vmem:[#allocation5_spill] sm:$0xff] }
 0x640   :  { %v2612_v42 = vpop.eup %2611 }
 0x641   :  { %v1319_v0 = vpack.c.bf16 %v2612_v42, %v2612_v42  ;;  %v5344_v42 = vld [vmem:[#allocation48_spill] sm:$0xff] }
 0x642   :  { %v2614_v17 = vpop.eup %2613 }
 0x643   :  { %v1320_v41 = vpack.c.bf16 %v2614_v17, %v2614_v17  ;;  %v5351_v17 = vld [vmem:[#allocation6_spill] sm:$0xff] }
 0x645   :  { %1353 = vmatprep.mubr.bf16.mxu1 %v1320_v41  ;;  %v5343_v41 = vld [vmem:[#allocation47_spill] sm:$0xff] }
 0x646   :  { %1354 = vmatmul.mubr.bf16.vlgmr.msra.gmra.mxu1 %v1319_v0  ;;  %v5352_v0 = vld [vmem:[#allocation7_spill] sm:$0xff] }
 0x647   :  { %1415 = vmatpush1.bf16.msra.mxu1 %v4160_v44 }
 0x648   :  { %1416 = vmatprep.subr.bf16.mxu1 %v4166_v62 }
 0x64b   :  { %1417 = vmatpush1.bf16.msra.mxu1 %v4172_v18 }
 0x64c   :  { %1418 = vmatprep.subr.bf16.mxu1 %v4178_v49 }
 0x64f   :  { %1419 = vmatpush1.bf16.msra.mxu1 %v4184_v19 }
 0x650   :  { %1420 = vmatprep.subr.bf16.mxu1 %v4190_v60 }
 0x653   :  { %1421 = vmatpush1.bf16.msra.mxu1 %v4196_v61 }
 0x654   :  { %1422 = vmatprep.subr.bf16.mxu1 %v5341_v45 }
 0x657   :  { %1423 = vmatpush1.bf16.msra.mxu1 %v5342_v46 }
 0x658   :  { %1424 = vmatprep.subr.bf16.mxu1 %v5343_v41 }
 0x65b   :  { %1425 = vmatpush1.bf16.msra.mxu1 %v5344_v42  ;;  %v5359_v42 = vld [vmem:[#allocation53_spill] sm:$0xff] }
 0x65c   :  { %1426 = vmatprep.subr.bf16.mxu1 %v5345_v50  ;;  %v5358_v50 = vld [vmem:[#allocation52_spill] sm:$0xff] }
 0x65f   :  { %1427 = vmatpush1.bf16.msra.mxu1 %v5346_v51  ;;  %v5356_v51 = vld [vmem:[#allocation50_spill] sm:$0xff] }
 0x660   :  { %1428 = vmatprep.subr.bf16.mxu1 %v5347_v40 }
 0x663   :  { %1429 = vmatpush1.bf16.msra.mxu1 %v5348_v14  ;;  %v2289_v14 = vld [vmem:[%s4836_s0 + $0x58] sm:$0xff] }
 0x664   :  { %1430 = vmatprep.subr.bf16.mxu1 %v5349_v15  ;;  %v5355_v15 = vld [vmem:[#allocation49_spill] sm:$0xff] }
 0x667   :  { %1431 = vmatpush2.bf16.msra.mxu1 %v5350_v16 }
 0x668   :  { %1432 = vmatprep.subr.bf16.mxu1 %v5351_v17 }
 0x66b   :  { %1433 = vmatpush2.bf16.msra.mxu1 %v5352_v0 }
 0x66c   :  { %1434 = vmatprep.subr.bf16.mxu1 %v5353_v23 }
 0x66f   :  { %1435 = vmatpush2.bf16.msra.mxu1 %v5354_v20  ;;  %v5357_v20 = vld [vmem:[#allocation51_spill] sm:$0xff] }
 0x670   :  { %v1401_v48 = vpop.f32.mrf.mxu0  ;;  %1436 = vmatprep.subr.bf16.mxu1 %v5355_v15 }
 0x671   :  { %v1408_v16 = vadd.f32 %v2288_v24, %v1401_v48  ;;  %v5387_v24 = vld [vmem:[#allocation37_spill] sm:$0xff]  ;;  %v5388_v48 = vld [vmem:[#allocation38_spill] sm:$0xff] }
 0x672   :  { %v1403_v40 = vpop.f32.mrf.mxu0 }
 0x673   :  { %v1409_v17 = vadd.f32 %v2289_v14, %v1403_v40  ;;  %1437 = vmatpush2.bf16.msra.mxu1 %v4298_v54  ;;  %2615 = vtanh.f32 %v1408_v16 }
 0x674   :  { %v1405_v23 = vpop.f32.mrf.mxu0  ;;  %1438 = vmatprep.subr.bf16.mxu1 %v4304_v21 }
 0x675   :  { %2617 = vtanh.f32 %v1409_v17  ;;  %v5385_v17 = vld [vmem:[#allocation35_spill] sm:$0xff] }
 0x676   :  { %v1406_v0 = vpop.f32.mrf.mxu0 }
 0x677   :  { %1439 = vmatpush2.bf16.msra.mxu1 %v5356_v51  ;;  %v5386_v0 = vld [vmem:[#allocation36_spill] sm:$0xff] }
 0x678   :  { %1440 = vmatprep.subr.bf16.mxu1 %v5357_v20 }
 0x67b   :  { %1441 = vmatpush2.bf16.msra.mxu1 %v5358_v50 }
 0x67c   :  { %1442 = vmatprep.subr.bf16.mxu1 %v5359_v42 }
 0x67f   :  { %1443 = vmatpush2.bf16.msra.mxu1 %v4334_v43 }
 0x680   :  { %1444 = vmatprep.subr.bf16.mxu1 %v4340_v47  ;;  %v2616_v40 = vpop.eup %2615 }
 0x681   :  { %v1412_v23 = vpack.c.bf16 %v2616_v40, %v2616_v40  ;;  %v5389_v40 = vld [vmem:[#allocation39_spill] sm:$0xff] }
 0x682   :  { %v2618_v14 = vpop.eup %2617 }
 0x683   :  { %1445 = vmatpush2.bf16.msra.mxu1 %v4346_v57  ;;  %v1413_v16 = vpack.c.bf16 %v2618_v14, %v2618_v14  ;;  %v5390_v14 = vld [vmem:[#allocation40_spill] sm:$0xff] }
 0x684   :  { %1507 = vmatprep.subr.bf16.mxu1 %v3664_v33  ;;  %v5360_v33 = vld [vmem:[#allocation9_spill] sm:$0xff] }
 0x685   :  { %1446 = vmatprep.mubr.bf16.mxu1 %v1413_v16 }
 0x686   :  { %1447 = vmatmul.mubr.bf16.vlgmr.msra.gmra.mxu1 %v1412_v23 }
 0x687   :  { %1508 = vmatpush1.bf16.msra.mxu1 %v3670_v34  ;;  %1539 = vmatprep.mubr.bf16.mxu1 %v1413_v16  ;;  %v5361_v34 = vld [vmem:[#allocation10_spill] sm:$0xff] }
 0x688   :  { %1509 = vmatprep.subr.bf16.mxu1 %v3676_v28  ;;  %v5362_v28 = vld [vmem:[#allocation11_spill] sm:$0xff] }
 0x68b   :  { %1510 = vmatpush1.bf16.msra.mxu1 %v5264_v63  ;;  %v5367_v63 = vld [vmem:[#allocation16_spill] sm:$0xff] }
 0x68c   :  { %1511 = vmatprep.subr.bf16.mxu1 %v5265_v59  ;;  %v5369_v59 = vld [vmem:[#allocation18_spill] sm:$0xff] }
 0x68f   :  { %1512 = vmatpush1.bf16.msra.mxu1 %v5266_v31  ;;  %v5371_v31 = vld [vmem:[#allocation20_spill] sm:$0xff] }
 0x690   :  { %1513 = vmatprep.subr.bf16.mxu1 %v5267_v52  ;;  %v5372_v52 = vld [vmem:[#allocation21_spill] sm:$0xff] }
 0x693   :  { %1514 = vmatpush1.bf16.msra.mxu1 %v5268_v55  ;;  %v5373_v55 = vld [vmem:[#allocation22_spill] sm:$0xff] }
 0x694   :  { %1515 = vmatprep.subr.bf16.mxu1 %v5269_v56  ;;  %v5374_v56 = vld [vmem:[#allocation23_spill] sm:$0xff] }
 0x697   :  { %1516 = vmatpush1.bf16.msra.mxu1 %v5270_v58  ;;  %v5375_v58 = vld [vmem:[#allocation24_spill] sm:$0xff] }
 0x698   :  { %1517 = vmatprep.subr.bf16.mxu1 %v5271_v22  ;;  %v5376_v22 = vld [vmem:[#allocation25_spill] sm:$0xff] }
 0x69b   :  { %1518 = vmatpush1.bf16.msra.mxu1 %v5272_v25  ;;  %v5377_v25 = vld [vmem:[#allocation26_spill] sm:$0xff] }
 0x69c   :  { %1519 = vmatprep.subr.bf16.mxu1 %v5273_v26  ;;  %v5378_v26 = vld [vmem:[#allocation28_spill] sm:$0xff] }
 0x69f   :  { %1520 = vmatpush1.bf16.msra.mxu1 %v5274_v29  ;;  %v5379_v29 = vld [vmem:[#allocation29_spill] sm:$0xff] }
 0x6a0   :  { %1521 = vmatprep.subr.bf16.mxu1 %v5275_v39  ;;  %v5380_v39 = vld [vmem:[#allocation30_spill] sm:$0xff] }
 0x6a3   :  { %1522 = vmatpush1.bf16.msra.mxu1 %v5276_v27  ;;  %v5381_v27 = vld [vmem:[#allocation31_spill] sm:$0xff] }
 0x6a4   :  { %1523 = vmatprep.subr.bf16.mxu1 %v5277_v2  ;;  %v5382_v2 = vld [vmem:[#allocation32_spill] sm:$0xff] }
 0x6a7   :  { %1524 = vmatpush2.bf16.msra.mxu1 %v5278_v3  ;;  %v5383_v3 = vld [vmem:[#allocation33_spill] sm:$0xff] }
 0x6a8   :  { %1525 = vmatprep.subr.bf16.mxu1 %v5279_v4  ;;  %v5384_v4 = vld [vmem:[#allocation34_spill] sm:$0xff] }
 0x6ab   :  { %1526 = vmatpush2.bf16.msra.mxu1 %v3778_v32  ;;  %v5363_v32 = vld [vmem:[#allocation12_spill] sm:$0xff] }
 0x6ac   :  { %1527 = vmatprep.subr.bf16.mxu1 %v3784_v30  ;;  %v5364_v30 = vld [vmem:[#allocation13_spill] sm:$0xff] }
 0x6af   :  { %1528 = vmatpush2.bf16.msra.mxu1 %v3790_v36  ;;  %v5365_v36 = vld [vmem:[#allocation14_spill] sm:$0xff] }
 0x6b0   :  { %1529 = vmatprep.subr.bf16.mxu1 %v3796_v35  ;;  %v5366_v35 = vld [vmem:[#allocation15_spill] sm:$0xff] }
 0x6b3   :  { %1530 = vmatpush2.bf16.msra.mxu1 %v3981_v5 }
 0x6b4   :  { %1531 = vmatprep.subr.bf16.mxu1 %v3987_v6 }
 0x6b7   :  { %1532 = vmatpush2.bf16.msra.mxu1 %v3993_v7 }
 0x6b8   :  { %1533 = vmatprep.subr.bf16.mxu1 %v3999_v8 }
 0x6bb   :  { %1534 = vmatpush2.bf16.msra.mxu1 %v4005_v9 }
 0x6bc   :  { %1535 = vmatprep.subr.bf16.mxu1 %v4011_v10 }
 0x6bf   :  { %1536 = vmatpush2.bf16.msra.mxu1 %v4017_v11 }
 0x6c0   :  { %1537 = vmatprep.subr.bf16.mxu1 %v4023_v12 }
 0x6c3   :  { %1538 = vmatpush2.bf16.msra.mxu1 %v4029_v13 }
 0x6c4   :  { %1601 = vmatprep.subr.bf16.mxu1 %v3811_v37  ;;  %v5368_v37 = vld [vmem:[#allocation17_spill] sm:$0xff] }
 0x6c6   :  { %1540 = vmatmul.mubr.bf16.vlgmr.msra.gmra.mxu1 %v1412_v23 }
 0x6c7   :  { %1602 = vmatpush1.bf16.msra.mxu1 %v3817_v38  ;;  %v5370_v38 = vld [vmem:[#allocation19_spill] sm:$0xff] }
 0x6c8   :  { %1603 = vmatprep.subr.bf16.mxu1 %v5360_v33 }
 0x6cb   :  { %1604 = vmatpush1.bf16.msra.mxu1 %v5361_v34 }
 0x6cc   :  { %1605 = vmatprep.subr.bf16.mxu1 %v5362_v28 }
 0x6cf   :  { %1606 = vmatpush1.bf16.msra.mxu1 %v5363_v32 }
 0x6d0   :  { %1607 = vmatprep.subr.bf16.mxu1 %v5364_v30 }
 0x6d3   :  { %1608 = vmatpush1.bf16.msra.mxu1 %v5365_v36 }
 0x6d4   :  { %1609 = vmatprep.subr.bf16.mxu1 %v5366_v35 }
 0x6d7   :  { %1610 = vmatpush1.bf16.msra.mxu1 %v5367_v63 }
 0x6d8   :  { %1611 = vmatprep.subr.bf16.mxu1 %v5368_v37 }
 0x6db   :  { %1612 = vmatpush1.bf16.msra.mxu1 %v5369_v59 }
 0x6dc   :  { %1613 = vmatprep.subr.bf16.mxu1 %v5370_v38 }
 0x6df   :  { %1614 = vmatpush1.bf16.msra.mxu1 %v5371_v31 }
 0x6e0   :  { %1615 = vmatprep.subr.bf16.mxu1 %v5372_v52 }
 0x6e3   :  { %1616 = vmatpush1.bf16.msra.mxu1 %v5373_v55 }
 0x6e4   :  { %1617 = vmatprep.subr.bf16.mxu1 %v5374_v56  ;;  %v5391_v56 = vld [vmem:[#allocation48_spill] sm:$0xff] }
 0x6e7   :  { %1618 = vmatpush2.bf16.msra.mxu1 %v5375_v58  ;;  %v5392_v58 = vld [vmem:[#allocation43_spill] sm:$0xff] }
 0x6e8   :  { %1619 = vmatprep.subr.bf16.mxu1 %v5376_v22  ;;  %v5393_v22 = vld [vmem:[#allocation44_spill] sm:$0xff] }
 0x6eb   :  { %1620 = vmatpush2.bf16.msra.mxu1 %v5377_v25  ;;  %v5394_v25 = vld [vmem:[#allocation45_spill] sm:$0xff] }
 0x6ec   :  { %1621 = vmatprep.subr.bf16.mxu1 %v5378_v26  ;;  %v5395_v26 = vld [vmem:[#allocation46_spill] sm:$0xff] }
 0x6ef   :  { %1622 = vmatpush2.bf16.msra.mxu1 %v5379_v29  ;;  %v5396_v29 = vld [vmem:[#allocation4_spill] sm:$0xff] }
 0x6f0   :  { %1623 = vmatprep.subr.bf16.mxu1 %v5380_v39  ;;  %v5397_v39 = vld [vmem:[#allocation5_spill] sm:$0xff] }
 0x6f3   :  { %1624 = vmatpush2.bf16.msra.mxu1 %v5381_v27  ;;  %v5398_v27 = vld [vmem:[#allocation6_spill] sm:$0xff] }
 0x6f4   :  { %1625 = vmatprep.subr.bf16.mxu1 %v5382_v2  ;;  %v5399_v2 = vld [vmem:[#allocation7_spill] sm:$0xff] }
 0x6f7   :  { %1626 = vmatpush2.bf16.msra.mxu1 %v5383_v3  ;;  %v5400_v3 = vld [vmem:[#allocation8_spill] sm:$0xff] }
 0x6f8   :  { %1627 = vmatprep.subr.bf16.mxu1 %v5384_v4  ;;  %v2290_v4 = vld [vmem:[%s4836_s0 + $0x60] sm:$0xff] }
 0x6fb   :  { %1628 = vmatpush2.bf16.msra.mxu1 %v5385_v17  ;;  %v5401_v17 = vld [vmem:[#allocation27_spill] sm:$0xff] }
 0x6fc   :  { %1629 = vmatprep.subr.bf16.mxu1 %v5386_v0 }
 0x6ff   :  { %1630 = vmatpush2.bf16.msra.mxu1 %v5387_v24  ;;  %v2291_v24 = vld [vmem:[%s4836_s0 + $0x68] sm:$0xff] }
 0x700   :  { %1631 = vmatprep.subr.bf16.mxu1 %v5388_v48 }
 0x703   :  { %1632 = vmatpush2.bf16.msra.mxu1 %v5389_v40 }
 0x704   :  { %1694 = vmatprep.subr.bf16.mxu1 %v5390_v14 }
 0x706   :  { %v1355_v16 = vpop.f32.mrf.mxu1 }
 0x707   :  { %v1356_v28 = vadd.f32 %v1355_v16, %v3510_v1 }
 0x708   :  { %v1357_v23 = vpop.f32.mrf.mxu1 }
 0x709   :  { %v1358_v30 = vadd.f32 %v1357_v23, %v3514_v53 }
 0x70a   :  { %v1359_v33 = vpop.f32.mrf.mxu1 }
 0x70c   :  { %v1360_v34 = vpop.f32.mrf.mxu1 }
 0x746   :  { %v1448_v32 = vpop.f32.mrf.mxu1 }
 0x747   :  { %v1455_v36 = vadd.f32 %v1448_v32, %v1356_v28 }
 0x748   :  { %v1450_v35 = vpop.f32.mrf.mxu1 }
 0x749   :  { %v1456_v63 = vadd.f32 %v1450_v35, %v1358_v30  ;;  %2619 = vtanh.f32 %v1455_v36  ;;  %v2739_v30 = vld [vmem:[%s4833_s1 + $0x74] ss:$8 sps:$4 sm:$0xff]   ;;  %v2740_v36 = vld [vmem:[%s4833_s1 + $0x70] ss:$8 sps:$4 sm:$0xff]   ;;  %v2741_v35 = vld [vmem:[%s4833_s1 + $0x64] ss:$8 sps:$4 sm:$0xff]  }
 0x74a   :  { %v1452_v37 = vpop.f32.mrf.mxu1 }
 0x74b   :  { %2621 = vtanh.f32 %v1456_v63  ;;  %v2742_v63 = vld [vmem:[%s4833_s1 + $0x60] ss:$8 sps:$4 sm:$0xff]   ;;  %v2743_v37 = vld [vmem:[%s4833_s1 + $0x54] ss:$8 sps:$4 sm:$0xff]  }
 0x74c   :  { %v1453_v59 = vpop.f32.mrf.mxu1 }
 0x74d   :  { %v2744_v59 = vld [vmem:[%s4833_s1 + $0x50] ss:$8 sps:$4 sm:$0xff]  }
 0x756   :  { %v2620_v38 = vpop.eup %2619 }
 0x757   :  { %v1459_v55 = vpack.c.bf16 %v2620_v38, %v2620_v38  ;;  %v2745_v38 = vld [vmem:[%s4833_s1 + $0x44] ss:$8 sps:$4 sm:$0xff]  }
 0x758   :  { %v2622_v31 = vpop.eup %2621 }
 0x759   :  { %v1460_v52 = vpack.c.bf16 %v2622_v31, %v2622_v31  ;;  %v2746_v31 = vld [vmem:[%s4833_s1 + $0x40] ss:$8 sps:$4 sm:$0xff]  }
 0x75b   :  { %1493 = vmatprep.mubr.bf16.mxu0 %v1460_v52  ;;  %v2747_v52 = vld [vmem:[%s4833_s1 + $0x34] ss:$8 sps:$4 sm:$0xff]  }
 0x75c   :  { %1494 = vmatmul.mubr.bf16.vlgmr.msra.gmra.mxu0 %v1459_v55  ;;  %v2748_v55 = vld [vmem:[%s4833_s1 + $0x30] ss:$8 sps:$4 sm:$0xff]  }
 0x75d   :  { %1555 = vmatpush1.bf16.msra.mxu0 %v4160_v44 }
 0x75e   :  { %1556 = vmatprep.subr.bf16.mxu0 %v4166_v62 }
 0x761   :  { %1557 = vmatpush1.bf16.msra.mxu0 %v4172_v18 }
 0x762   :  { %1558 = vmatprep.subr.bf16.mxu0 %v4178_v49 }
 0x765   :  { %1559 = vmatpush1.bf16.msra.mxu0 %v4184_v19 }
 0x766   :  { %1560 = vmatprep.subr.bf16.mxu0 %v4190_v60 }
 0x769   :  { %1561 = vmatpush1.bf16.msra.mxu0 %v4196_v61 }
 0x76a   :  { %1562 = vmatprep.subr.bf16.mxu0 %v5341_v45 }
 0x76d   :  { %1563 = vmatpush1.bf16.msra.mxu0 %v5342_v46 }
 0x76e   :  { %1564 = vmatprep.subr.bf16.mxu0 %v5343_v41 }
 0x771   :  { %1565 = vmatpush1.bf16.msra.mxu0 %v5391_v56 }
 0x772   :  { %1566 = vmatprep.subr.bf16.mxu0 %v5392_v58 }
 0x775   :  { %1567 = vmatpush1.bf16.msra.mxu0 %v5393_v22 }
 0x776   :  { %1568 = vmatprep.subr.bf16.mxu0 %v5394_v25 }
 0x779   :  { %1569 = vmatpush1.bf16.msra.mxu0 %v5395_v26 }
 0x77a   :  { %1570 = vmatprep.subr.bf16.mxu0 %v5396_v29 }
 0x77d   :  { %1571 = vmatpush2.bf16.msra.mxu0 %v5397_v39 }
 0x77e   :  { %1572 = vmatprep.subr.bf16.mxu0 %v5398_v27 }
 0x781   :  { %1573 = vmatpush2.bf16.msra.mxu0 %v5399_v2 }
 0x782   :  { %1574 = vmatprep.subr.bf16.mxu0 %v5400_v3 }
 0x785   :  { %1575 = vmatpush2.bf16.msra.mxu0 %v5401_v17 }
 0x786   :  { %v1541_v0 = vpop.f32.mrf.mxu1  ;;  %1576 = vmatprep.subr.bf16.mxu0 %v5355_v15 }
 0x787   :  { %v1548_v48 = vadd.f32 %v2290_v4, %v1541_v0  ;;  %v2749_v4 = vld [vmem:[%s4833_s1 + $0x24] ss:$8 sps:$4 sm:$0xff]   ;;  %v2750_v0 = vld [vmem:[%s4833_s1 + $0x20] ss:$8 sps:$4 sm:$0xff]  }
 0x788   :  { %v1543_v40 = vpop.f32.mrf.mxu1 }
 0x789   :  { %v1549_v14 = vadd.f32 %v2291_v24, %v1543_v40  ;;  %1577 = vmatpush2.bf16.msra.mxu0 %v4298_v54  ;;  %2623 = vtanh.f32 %v1548_v48  ;;  %v2751_v24 = vld [vmem:[%s4833_s1 + $0x14] ss:$8 sps:$4 sm:$0xff]   ;;  %v2752_v48 = vld [vmem:[%s4833_s1 + $0x10] ss:$8 sps:$4 sm:$0xff]   ;;  %v2753_v40 = vld [vmem:[%s4833_s1 + $0x4] ss:$8 sps:$4 sm:$0xff]  }
 0x78a   :  { %v1545_v16 = vpop.f32.mrf.mxu1  ;;  %1578 = vmatprep.subr.bf16.mxu0 %v4304_v21 }
 0x78b   :  { %2625 = vtanh.f32 %v1549_v14  ;;  %v2754_v14 = vld [vmem:[%s4833_s1] ss:$8 sps:$4 sm:$0xff]   ;;  %v2755_v16 = vld [vmem:[%s4833_s1 + $0xf4] ss:$8 sps:$4 sm:$0xff]  }
 0x78c   :  { %v1546_v23 = vpop.f32.mrf.mxu1 }
 0x78d   :  { %1579 = vmatpush2.bf16.msra.mxu0 %v5356_v51  ;;  %v2756_v23 = vld [vmem:[%s4833_s1 + $0xf0] ss:$8 sps:$4 sm:$0xff]  }
 0x78e   :  { %1580 = vmatprep.subr.bf16.mxu0 %v5357_v20 }
 0x791   :  { %1581 = vmatpush2.bf16.msra.mxu0 %v5358_v50 }
 0x792   :  { %1582 = vmatprep.subr.bf16.mxu0 %v5359_v42 }
 0x795   :  { %1583 = vmatpush2.bf16.msra.mxu0 %v4334_v43 }
 0x796   :  { %1584 = vmatprep.subr.bf16.mxu0 %v4340_v47  ;;  %v2624_v33 = vpop.eup %2623 }
 0x797   :  { %v1552_v32 = vpack.c.bf16 %v2624_v33, %v2624_v33  ;;  %v2757_v33 = vld [vmem:[%s4833_s1 + $0xe4] ss:$8 sps:$4 sm:$0xff]  }
 0x798   :  { %v2626_v34 = vpop.eup %2625 }
 0x799   :  { %1585 = vmatpush2.bf16.msra.mxu0 %v4346_v57  ;;  %v1553_v28 = vpack.c.bf16 %v2626_v34, %v2626_v34  ;;  %v2758_v34 = vld [vmem:[%s4833_s1 + $0xe0] ss:$8 sps:$4 sm:$0xff]  }
 0x79a   :  { %1647 = vmatprep.subr.bf16.mxu0 %v2739_v30  ;;  %v2760_v30 = vld [vmem:[%s4833_s1 + $0xd0] ss:$8 sps:$4 sm:$0xff]  }
 0x79b   :  { %1586 = vmatprep.mubr.bf16.mxu0 %v1553_v28 }
 0x79c   :  { %1587 = vmatmul.mubr.bf16.vlgmr.msra.gmra.mxu0 %v1552_v32 }
 0x79d   :  { %1648 = vmatpush1.bf16.msra.mxu0 %v2740_v36  ;;  %1679 = vmatprep.mubr.bf16.mxu0 %v1553_v28  ;;  %v2759_v28 = vld [vmem:[%s4833_s1 + $0xd4] ss:$8 sps:$4 sm:$0xff]   ;;  %v2761_v36 = vld [vmem:[%s4833_s1 + $0xc4] ss:$8 sps:$4 sm:$0xff]  }
 0x79e   :  { %1649 = vmatprep.subr.bf16.mxu0 %v2741_v35 }
 0x7a1   :  { %1650 = vmatpush1.bf16.msra.mxu0 %v2742_v63 }
 0x7a2   :  { %1651 = vmatprep.subr.bf16.mxu0 %v2743_v37 }
 0x7a5   :  { %1652 = vmatpush1.bf16.msra.mxu0 %v2744_v59 }
 0x7a6   :  { %1653 = vmatprep.subr.bf16.mxu0 %v2745_v38 }
 0x7a9   :  { %1654 = vmatpush1.bf16.msra.mxu0 %v2746_v31 }
 0x7aa   :  { %1655 = vmatprep.subr.bf16.mxu0 %v2747_v52  ;;  %v2538_v52 = vld [vmem:[%s4838_s5 + $0xe0] ss:$8 sps:$4 sm:$0xff]  }
 0x7ad   :  { %1656 = vmatpush1.bf16.msra.mxu0 %v2748_v55  ;;  %v2543_v55 = vld [vmem:[%s4838_s5 + $0xd4] ss:$8 sps:$4 sm:$0xff]  }
 0x7ae   :  { %1657 = vmatprep.subr.bf16.mxu0 %v2749_v4  ;;  %v2541_v4 = vld [vmem:[%s4838_s5 + $0xd0] ss:$8 sps:$4 sm:$0xff]  }
 0x7b1   :  { %1658 = vmatpush1.bf16.msra.mxu0 %v2750_v0  ;;  %v2546_v0 = vld [vmem:[%s4838_s5 + $0xc4] ss:$8 sps:$4 sm:$0xff]  }
 0x7b2   :  { %1659 = vmatprep.subr.bf16.mxu0 %v2751_v24  ;;  %v2544_v24 = vld [vmem:[%s4838_s5 + $0xc0] ss:$8 sps:$4 sm:$0xff]  }
 0x7b5   :  { %1660 = vmatpush1.bf16.msra.mxu0 %v2752_v48  ;;  %v2549_v48 = vld [vmem:[%s4838_s5 + $0xb4] ss:$8 sps:$4 sm:$0xff]  }
 0x7b6   :  { %1661 = vmatprep.subr.bf16.mxu0 %v2753_v40  ;;  %v2547_v40 = vld [vmem:[%s4838_s5 + $0xb0] ss:$8 sps:$4 sm:$0xff]  }
 0x7b9   :  { %1662 = vmatpush1.bf16.msra.mxu0 %v2754_v14  ;;  %v2552_v14 = vld [vmem:[%s4838_s5 + $0xa4] ss:$8 sps:$4 sm:$0xff]  }
 0x7ba   :  { %1663 = vmatprep.subr.bf16.mxu0 %v2755_v16  ;;  %v2550_v16 = vld [vmem:[%s4838_s5 + $0xa0] ss:$8 sps:$4 sm:$0xff]  }
 0x7bd   :  { %1664 = vmatpush2.bf16.msra.mxu0 %v2756_v23  ;;  %v2555_v23 = vld [vmem:[%s4838_s5 + $0x94] ss:$8 sps:$4 sm:$0xff]  }
 0x7be   :  { %1665 = vmatprep.subr.bf16.mxu0 %v2757_v33  ;;  %v2553_v33 = vld [vmem:[%s4838_s5 + $0x90] ss:$8 sps:$4 sm:$0xff]  }
 0x7c1   :  { %1666 = vmatpush2.bf16.msra.mxu0 %v2758_v34  ;;  %v2558_v34 = vld [vmem:[%s4838_s5 + $0x84] ss:$8 sps:$4 sm:$0xff]  }
 0x7c2   :  { %1667 = vmatprep.subr.bf16.mxu0 %v2759_v28  ;;  %v2556_v28 = vld [vmem:[%s4838_s5 + $0x80] ss:$8 sps:$4 sm:$0xff]  }
 0x7c5   :  { %1668 = vmatpush2.bf16.msra.mxu0 %v2760_v30  ;;  %v2559_v30 = vld [vmem:[%s4839_s7 + $0x78] sm:$0xff]  }
 0x7c6   :  { %1669 = vmatprep.subr.bf16.mxu0 %v2761_v36  ;;  %v2560_v36 = vld [vmem:[%s4839_s7 + $0x38] sm:$0xff]  }
 0x7c9   :  { %1670 = vmatpush2.bf16.msra.mxu0 %v3981_v5 }
 0x7ca   :  { %1671 = vmatprep.subr.bf16.mxu0 %v3987_v6 }
 0x7cd   :  { %1672 = vmatpush2.bf16.msra.mxu0 %v3993_v7 }
 0x7ce   :  { %1673 = vmatprep.subr.bf16.mxu0 %v3999_v8 }
 0x7d1   :  { %1674 = vmatpush2.bf16.msra.mxu0 %v4005_v9 }
 0x7d2   :  { %1675 = vmatprep.subr.bf16.mxu0 %v4011_v10 }
 0x7d5   :  { %1676 = vmatpush2.bf16.msra.mxu0 %v4017_v11 }
 0x7d6   :  { %1677 = vmatprep.subr.bf16.mxu0 %v4023_v12 }
 0x7d9   :  { %1678 = vmatpush2.bf16.msra.mxu0 %v4029_v13 }
 0x7dc   :  { %1680 = vmatmul.mubr.bf16.vlgmr.msra.gmra.mxu0 %v1552_v32 }
 0x81c   :  { %v1495_v35 = vpop.f32.mrf.mxu0 }
 0x81d   :  { %v1496_v6 = vadd.f32 %v1495_v35, %v3510_v1  ;;  %v2561_v35 = vld [vmem:[%s4839_s7 + $0x70] sm:$0xff]  }
 0x81e   :  { %v1497_v63 = vpop.f32.mrf.mxu0 }
 0x81f   :  { %v1498_v8 = vadd.f32 %v1497_v63, %v3514_v53  ;;  %v2562_v63 = vld [vmem:[%s4839_s7 + $0x30] sm:$0xff]  }
 0x820   :  { %v1499_v5 = vpop.f32.mrf.mxu0 }
 0x821   :  { %v2563_v5 = vld [vmem:[%s4839_s7 + $0x68] sm:$0xff]  }
 0x822   :  { %v1500_v37 = vpop.f32.mrf.mxu0 }
 0x823   :  { %v2564_v37 = vld [vmem:[%s4839_s7 + $0x28] sm:$0xff]  }
 0x85c   :  { %v1588_v7 = vpop.f32.mrf.mxu0 }
 0x85d   :  { %v1595_v59 = vadd.f32 %v1588_v7, %v1496_v6  ;;  %v2565_v6 = vld [vmem:[%s4839_s7 + $0x60] sm:$0xff]  }
 0x85e   :  { %v1590_v9 = vpop.f32.mrf.mxu0  ;;  %v2566_v7 = vld [vmem:[%s4839_s7 + $0x20] sm:$0xff]  }
 0x85f   :  { %v1596_v38 = vadd.f32 %v1590_v9, %v1498_v8  ;;  %2627 = vtanh.f32 %v1595_v59  ;;  %v2567_v8 = vld [vmem:[%s4839_s7 + $0x58] sm:$0xff]   ;;  %v2569_v9 = vld [vmem:[%s4839_s7 + $0x50] sm:$0xff]  }
 0x860   :  { %v1592_v10 = vpop.f32.mrf.mxu0  ;;  %v2568_v59 = vld [vmem:[%s4839_s7 + $0x18] sm:$0xff]  }
 0x861   :  { %2629 = vtanh.f32 %v1596_v38  ;;  %v2570_v38 = vld [vmem:[%s4839_s7 + $0x10] sm:$0xff]  }
 0x862   :  { %v1593_v11 = vpop.f32.mrf.mxu0 }
 0x86c   :  { %v2628_v12 = vpop.eup %2627 }
 0x86d   :  { %v1599_v32 = vpack.c.bf16 %v2628_v12, %v2628_v12 }
 0x86e   :  { %v2630_v31 = vpop.eup %2629 }
 0x86f   :  { %v1600_v13 = vpack.c.bf16 %v2630_v31, %v2630_v31 }
 0x871   :  { %1633 = vmatprep.mubr.bf16.mxu1 %v1600_v13 }
 0x872   :  { %1634 = vmatmul.mubr.bf16.vlgmr.msra.gmra.mxu1 %v1599_v32 }
 0x873   :  { %1695 = vmatpush1.bf16.msra.mxu1 %v4160_v44  ;;  %v2292_v44 = vld [vmem:[%s4836_s0 + $0x70] sm:$0xff] }
 0x874   :  { %1696 = vmatprep.subr.bf16.mxu1 %v4166_v62 }
 0x877   :  { %1697 = vmatpush1.bf16.msra.mxu1 %v4172_v18  ;;  %v2293_v18 = vld [vmem:[%s4836_s0 + $0x78] sm:$0xff] }
 0x878   :  { %1698 = vmatprep.subr.bf16.mxu1 %v4178_v49 }
 0x87b   :  { %1699 = vmatpush1.bf16.msra.mxu1 %v4184_v19 }
 0x87c   :  { %1700 = vmatprep.subr.bf16.mxu1 %v4190_v60 }
 0x87f   :  { %1701 = vmatpush1.bf16.msra.mxu1 %v4196_v61 }
 0x880   :  { %1702 = vmatprep.subr.bf16.mxu1 %v5341_v45 }
 0x883   :  { %1703 = vmatpush1.bf16.msra.mxu1 %v5342_v46 }
 0x884   :  { %1704 = vmatprep.subr.bf16.mxu1 %v5343_v41 }
 0x887   :  { %1705 = vmatpush1.bf16.msra.mxu1 %v5391_v56  ;;  %v2525_v56 = vld [vmem:[%s4838_s5 + $0x34] ss:$8 sps:$4 sm:$0xff]  }
 0x888   :  { %1706 = vmatprep.subr.bf16.mxu1 %v5392_v58  ;;  %v2523_v58 = vld [vmem:[%s4838_s5 + $0x30] ss:$8 sps:$4 sm:$0xff]  }
 0x88b   :  { %1707 = vmatpush1.bf16.msra.mxu1 %v5393_v22  ;;  %v2528_v22 = vld [vmem:[%s4838_s5 + $0x24] ss:$8 sps:$4 sm:$0xff]  }
 0x88c   :  { %1708 = vmatprep.subr.bf16.mxu1 %v5394_v25  ;;  %v2526_v25 = vld [vmem:[%s4838_s5 + $0x20] ss:$8 sps:$4 sm:$0xff]  }
 0x88f   :  { %1709 = vmatpush1.bf16.msra.mxu1 %v5395_v26  ;;  %v2531_v26 = vld [vmem:[%s4838_s5 + $0x14] ss:$8 sps:$4 sm:$0xff]  }
 0x890   :  { %1710 = vmatprep.subr.bf16.mxu1 %v5396_v29  ;;  %v2529_v29 = vld [vmem:[%s4838_s5 + $0x10] ss:$8 sps:$4 sm:$0xff]  }
 0x893   :  { %1711 = vmatpush2.bf16.msra.mxu1 %v5397_v39  ;;  %v2534_v39 = vld [vmem:[%s4838_s5 + $0x4] ss:$8 sps:$4 sm:$0xff]  }
 0x894   :  { %1712 = vmatprep.subr.bf16.mxu1 %v5398_v27  ;;  %v2532_v27 = vld [vmem:[%s4838_s5] ss:$8 sps:$4 sm:$0xff]  }
 0x897   :  { %1713 = vmatpush2.bf16.msra.mxu1 %v5399_v2  ;;  %v2537_v2 = vld [vmem:[%s4838_s5 + $0xf4] ss:$8 sps:$4 sm:$0xff]  }
 0x898   :  { %1714 = vmatprep.subr.bf16.mxu1 %v5400_v3  ;;  %v2535_v3 = vld [vmem:[%s4838_s5 + $0xf0] ss:$8 sps:$4 sm:$0xff]  }
 0x89b   :  { %1715 = vmatpush2.bf16.msra.mxu1 %v5401_v17  ;;  %v2540_v17 = vld [vmem:[%s4838_s5 + $0xe4] ss:$8 sps:$4 sm:$0xff]  }
 0x89c   :  { %v1681_v62 = vpop.f32.mrf.mxu0  ;;  %1716 = vmatprep.subr.bf16.mxu1 %v5355_v15  ;;  %v2522_v15 = vld [vmem:[%s4838_s5 + $0x44] ss:$8 sps:$4 sm:$0xff]  }
 0x89d   :  { %v1688_v49 = vadd.f32 %v2292_v44, %v1681_v62 }
 0x89e   :  { %v1683_v19 = vpop.f32.mrf.mxu0 }
 0x89f   :  { %v1689_v60 = vadd.f32 %v2293_v18, %v1683_v19  ;;  %1717 = vmatpush2.bf16.msra.mxu1 %v4298_v54  ;;  %2631 = vtanh.f32 %v1688_v49 }
 0x8a0   :  { %v1685_v61 = vpop.f32.mrf.mxu0  ;;  %1718 = vmatprep.subr.bf16.mxu1 %v4304_v21 }
 0x8a1   :  { %2633 = vtanh.f32 %v1689_v60 }
 0x8a2   :  { %v1686_v45 = vpop.f32.mrf.mxu0 }
 0x8a3   :  { %1719 = vmatpush2.bf16.msra.mxu1 %v5356_v51  ;;  %v2511_v51 = vld [vmem:[%s4838_s5 + $0x70] ss:$8 sps:$4 sm:$0xff]  }
 0x8a4   :  { %1720 = vmatprep.subr.bf16.mxu1 %v5357_v20  ;;  %v2520_v20 = vld [vmem:[%s4838_s5 + $0x40] ss:$8 sps:$4 sm:$0xff]  }
 0x8a7   :  { %1721 = vmatpush2.bf16.msra.mxu1 %v5358_v50  ;;  %v2517_v50 = vld [vmem:[%s4838_s5 + $0x50] ss:$8 sps:$4 sm:$0xff]  }
 0x8a8   :  { %1722 = vmatprep.subr.bf16.mxu1 %v5359_v42  ;;  %v2513_v42 = vld [vmem:[%s4838_s5 + $0x74] ss:$8 sps:$4 sm:$0xff]  }
 0x8a9   :  { %1945 = vmatprep.subr.bf16.mxu0 %v2513_v42  ;;  %v5402_v42 = vld [vmem:[#allocation3_spill] sm:$0xff] }
 0x8aa   :  { %1946 = vmatpush1.bf16.msra.mxu0 %v2511_v51  ;;  %v1773_v51 = vld [vmem:[%s4840_s6] sm:$0x3] }
 0x8ab   :  { %1723 = vmatpush2.bf16.msra.mxu1 %v4334_v43  ;;  %v2516_v43 = vld [vmem:[%s4838_s5 + $0x64] ss:$8 sps:$4 sm:$0xff]  }
 0x8ac   :  { %1724 = vmatprep.subr.bf16.mxu1 %v4340_v47  ;;  %v2632_v46 = vpop.eup %2631  ;;  %1947 = vmatprep.subr.bf16.mxu0 %v2516_v43  ;;  %v2519_v47 = vld [vmem:[%s4838_s5 + $0x54] ss:$8 sps:$4 sm:$0xff]   ;;  %v5403_v43 = vsub.s32 0, %v5402_v42 }
 0x8ad   :  { %v1692_v21 = vpack.c.bf16 %v2632_v46, %v2632_v46 }
 0x8ae   :  { %v2634_v54 = vpop.eup %2633 }
 0x8af   :  { %1725 = vmatpush2.bf16.msra.mxu1 %v4346_v57  ;;  %v1693_v41 = vpack.c.bf16 %v2634_v54, %v2634_v54  ;;  %v2514_v57 = vld [vmem:[%s4838_s5 + $0x60] ss:$8 sps:$4 sm:$0xff]  }
 0x8b0   :  { %1948 = vmatpush1.bf16.msra.mxu0 %v2514_v57  ;;  %2344 = vmatprep.subr.bf16.mxu1 %v2559_v30  ;;  %v1778_v57 = vrot.slane %v1773_v51, %v5403_v43 }
 0x8b1   :  { %1726 = vmatprep.mubr.bf16.mxu1 %v1693_v41  ;;  %1949 = vmatprep.subr.bf16.mxu0 %v2519_v47  ;;  %v2573_v41 = vld [vmem:[%s4839_s7 + $0x40] sm:$0xff]   ;;  %v5404_v47 = vsub.s32 1, %v5402_v42 }
 0x8b2   :  { %1727 = vmatmul.mubr.bf16.vlgmr.msra.gmra.mxu1 %v1692_v21  ;;  %v2574_v21 = vld [vmem:[%s4839_s7] sm:$0xff]  }
 0x8b3   :  { %2345 = vmatpush3.bf16.msra.mxu1 %v2560_v36 }
 0x8b4   :  { %1950 = vmatpush1.bf16.msra.mxu0 %v2517_v50  ;;  %2346 = vmatprep.subr.bf16.mxu1 %v2561_v35  ;;  %v1782_v50 = vrot.slane %v1773_v51, %v5404_v47 }
 0x8b5   :  { %1951 = vmatprep.subr.bf16.mxu0 %v2522_v15 }
 0x8b7   :  { %2347 = vmatpush3.bf16.msra.mxu1 %v2562_v63 }
 0x8b8   :  { %1952 = vmatpush1.bf16.msra.mxu0 %v2520_v20  ;;  %2348 = vmatprep.subr.bf16.mxu1 %v2563_v5 }
 0x8b9   :  { %1953 = vmatprep.subr.bf16.mxu0 %v2525_v56 }
 0x8bb   :  { %2349 = vmatpush3.bf16.msra.mxu1 %v2564_v37 }
 0x8bc   :  { %1954 = vmatpush1.bf16.msra.mxu0 %v2523_v58  ;;  %2350 = vmatprep.subr.bf16.mxu1 %v2565_v6 }
 0x8bd   :  { %1955 = vmatprep.subr.bf16.mxu0 %v2528_v22 }
 0x8bf   :  { %2351 = vmatpush3.bf16.msra.mxu1 %v2566_v7 }
 0x8c0   :  { %1956 = vmatpush1.bf16.msra.mxu0 %v2526_v25  ;;  %2352 = vmatprep.subr.bf16.mxu1 %v2567_v8 }
 0x8c1   :  { %1957 = vmatprep.subr.bf16.mxu0 %v2531_v26 }
 0x8c3   :  { %2353 = vmatpush3.bf16.msra.mxu1 %v2568_v59 }
 0x8c4   :  { %1958 = vmatpush1.bf16.msra.mxu0 %v2529_v29  ;;  %2354 = vmatprep.subr.bf16.mxu1 %v2569_v9 }
 0x8c5   :  { %1959 = vmatprep.subr.bf16.mxu0 %v2534_v39 }
 0x8c7   :  { %2355 = vmatpush3.bf16.msra.mxu1 %v2570_v38 }
 0x8c8   :  { %1960 = vmatpush1.bf16.msra.mxu0 %v2532_v27 }
 0x8c9   :  { %1961 = vmatprep.subr.bf16.mxu0 %v2537_v2 }
 0x8cc   :  { %1962 = vmatpush2.bf16.msra.mxu0 %v2535_v3  ;;  %v2326_v3 = vld [vmem:[%s4841_s8] ss:$0 sm:$0xff] }
 0x8cd   :  { %1963 = vmatprep.subr.bf16.mxu0 %v2540_v17 }
 0x8d0   :  { %1964 = vmatpush2.bf16.msra.mxu0 %v2538_v52 }
 0x8d1   :  { %1965 = vmatprep.subr.bf16.mxu0 %v2543_v55 }
 0x8d4   :  { %1966 = vmatpush2.bf16.msra.mxu0 %v2541_v4 }
 0x8d5   :  { %1967 = vmatprep.subr.bf16.mxu0 %v2546_v0 }
 0x8d8   :  { %1968 = vmatpush2.bf16.msra.mxu0 %v2544_v24 }
 0x8d9   :  { %1969 = vmatprep.subr.bf16.mxu0 %v2549_v48 }
 0x8dc   :  { %1970 = vmatpush2.bf16.msra.mxu0 %v2547_v40 }
 0x8dd   :  { %1971 = vmatprep.subr.bf16.mxu0 %v2552_v14 }
 0x8e0   :  { %1972 = vmatpush2.bf16.msra.mxu0 %v2550_v16 }
 0x8e1   :  { %1973 = vmatprep.subr.bf16.mxu0 %v2555_v23 }
 0x8e4   :  { %1974 = vmatpush2.bf16.msra.mxu0 %v2553_v33 }
 0x8e5   :  { %1975 = vmatprep.subr.bf16.mxu0 %v2558_v34 }
 0x8e8   :  { %1976 = vmatpush2.bf16.msra.mxu0 %v2556_v28 }
 0x932   :  { %v1635_v10 = vpop.f32.mrf.mxu1 }
 0x933   :  { %v1636_v13 = vadd.f32 %v1635_v10, %v3510_v1  ;;  %v2571_v1 = vld [vmem:[%s4839_s7 + $0x48] sm:$0xff]  }
 0x934   :  { %v1637_v11 = vpop.f32.mrf.mxu1  ;;  %2356 = vmatprep.subr.bf16.mxu1 %v2571_v1 }
 0x935   :  { %v1638_v44 = vadd.f32 %v1637_v11, %v3514_v53  ;;  %v2572_v53 = vld [vmem:[%s4839_s7 + $0x8] sm:$0xff]  }
 0x936   :  { %v1639_v12 = vpop.f32.mrf.mxu1  ;;  %2357 = vmatpush3.bf16.msra.mxu1 %v2572_v53 }
 0x937   :  { %2358 = vmatprep.subr.bf16.mxu1 %v2573_v41 }
 0x938   :  { %v1640_v31 = vpop.f32.mrf.mxu1 }
 0x93a   :  { %2359 = vmatpush3.bf16.msra.mxu1 %v2574_v21 }
 0x972   :  { %v1728_v32 = vpop.f32.mrf.mxu1 }
 0x973   :  { %v1735_v62 = vadd.f32 %v1728_v32, %v1636_v13 }
 0x974   :  { %v1730_v18 = vpop.f32.mrf.mxu1 }
 0x975   :  { %v1736_v49 = vadd.f32 %v1730_v18, %v1638_v44  ;;  %2635 = vtanh.f32 %v1735_v62 }
 0x976   :  { %v1732_v19 = vpop.f32.mrf.mxu1 }
 0x977   :  { %2637 = vtanh.f32 %v1736_v49 }
 0x978   :  { %v1733_v60 = vpop.f32.mrf.mxu1 }
 0x982   :  { %v2636_v61 = vpop.eup %2635 }
 0x983   :  { %v1739_v54 = vpack.c.bf16 %v2636_v61, %v2636_v61 }
 0x984   :  { %v2638_v45 = vpop.eup %2637 }
 0x985   :  { %v1740_v46 = vpack.c.bf16 %v2638_v45, %v2638_v45 }
 0x987   :  { %1977 = vmatprep.mubr.bf16.mxu0 %v1740_v46 }
 0x988   :  { %1978 = vmatmul.mubr.bf16.vlgmr.msra.gmra.mxu0 %v1739_v54 }
 0xa48   :  { %v1979_v15 = vpop.f32.mrf.mxu0 }
 0xa49   :  { %v1980_v20 = vadd.f32 %v1979_v15, %v1778_v57 }
 0xa4a   :  { %v1981_v56 = vpop.f32.mrf.mxu0 }
 0xa4b   :  { %v1982_v58 = vadd.f32 %v1981_v56, %v1782_v50  ;;  %v1986_v22 = vmax.f32 %v1980_v20, 0.0 }
 0xa4c   :  { %v1983_v25 = vpop.f32.mrf.mxu0 }
 0xa4d   :  { %v1987_v26 = vmax.f32 %v1982_v58, 0.0  ;;  %v1988_v27 = vpack.c.bf16 %v1986_v22, %v1986_v22 }
 0xa4e   :  { %v1984_v29 = vpop.f32.mrf.mxu0 }
 0xa4f   :  { %v1989_v39 = vpack.c.bf16 %v1987_v26, %v1987_v26 }
 0xa51   :  { %2157 = vmatprep.mubr.bf16.mxu1 %v1989_v39 }
 0xa52   :  { %2158 = vmatmul.mubr.bf16.vlgmr.msra.gmra.mxu1 %v1988_v27 }
 0xb12   :  { %v2360_v2 = vpop.f32.mrf.mxu1 }
 0xb14   :  { %v2361_v17 = vpop.f32.mrf.mxu1 }
 0xb15   :  { %v2362_v52 = vadd.f32 %v2361_v17, %v2360_v2 }
 0xb16   :  { %v2363_v55 = vpop.f32.mrf.mxu1 }
 0xb17   :  { %v2160_v4 = vadd.f32 %v2362_v52, %v2326_v3 }
 0xb18   :  { %v2364_v0 = vpop.f32.mrf.mxu1 }
 0xb19   :  { %v2343_v24 = vmul.f32 -1.442695, %v2160_v4 }
 0xb1b   :  { %2639 = vpow2.f32 %v2343_v24 }
 0xb28   :  { %v2640_v48 = vpop.eup %2639 }
 0xb29   :  { %v2168_v40 = vadd.f32 1.0, %v2640_v48 }
 0xb2b   :  { %2641 = vrcp.f32 %v2168_v40 }
 0xb38   :  { %v2642_v14 = vpop.eup %2641 }
 0xb39   :  { %2172 = vst.msk [vmem:[%s4842_s9] sm:$0xff] %vm2171_vm0, %v2642_v14 }

</bundles_post_ra>
